<compile_context>
chip_gen: v7x
topology: tpu7x:2x2x1
jax: 0.10.0
libtpu: 0.0.40
codegen_flags: <defaults>
</compile_context>

<pallas_src>
import functools
import math
from types import SimpleNamespace

import jax
import jax.numpy as jnp
from jax.experimental import pallas as pl
from jax.experimental.pallas import tpu as pltpu

_LMIN = math.log(1e-4)
_LMAX = math.log(1.0 - 1e-4)


def _round_up(x, m):
    return ((x + m - 1) // m) * m


# --------------------------------------------------------------------------
# Kernel 1: fused clamped sigmoid (_sigmoid), focal-loss partial sums
# (FocalLoss/_neg_loss) and (optionally) the pre-multiplied unsup weight
# w = clamp(sigmoid(7*(pred-0.5)), 1e-4, 1-1e-4) * used_mask  (bf16),
# all on a lane-dense (rows, 128) view.  Ragged last blocks are masked
# in-kernel; per-block partial sums are reduced outside.
# --------------------------------------------------------------------------
def _focal_core(x, gt, valid):
    e = jnp.exp(-jnp.abs(x))                          # 1 EUP exp, reused 3x
    ls_raw = jnp.minimum(x, 0.0) - jnp.log(1.0 + e)   # stable log(sigmoid(x))
    lp = jnp.clip(ls_raw, _LMIN, _LMAX)               # log(pred)
    lomp = jnp.clip(ls_raw - x, _LMIN, _LMAX)         # log(1 - pred)
    r = pl.reciprocal(1.0 + e, approx=True)           # EUP vrcp (idle slot)
    pred = jnp.clip(jnp.where(x >= 0.0, r, e * r), 1e-4, 1.0 - 1e-4)

    is_pos = gt == 1.0
    is_neg = gt < 1.0
    if valid is not None:
        is_pos = is_pos & valid
        is_neg = is_neg & valid
    neg_w = jnp.square(jnp.square(1.0 - gt))          # (1 - gt)^4
    pos_term = lp * jnp.square(1.0 - pred)
    neg_term = lomp * jnp.square(pred) * neg_w

    pos_sum = jnp.sum(jnp.where(is_pos, pos_term, 0.0))
    neg_sum = jnp.sum(jnp.where(is_neg, neg_term, 0.0))
    num_pos = jnp.sum(jnp.where(is_pos, 1.0, 0.0))
    return pred, pos_sum, neg_sum, num_pos


def _write_sums(sums_ref, pos_sum, neg_sum, num_pos):
    sub = jax.lax.broadcasted_iota(jnp.int32, sums_ref.shape, 1)
    lane = jax.lax.broadcasted_iota(jnp.int32, sums_ref.shape, 2)
    sums_ref[...] = (jnp.where((sub == 0) & (lane == 0), pos_sum, 0.0)
                     + jnp.where((sub == 0) & (lane == 1), neg_sum, 0.0)
                     + jnp.where((sub == 0) & (lane == 2), num_pos, 0.0))


def _valid_rows(shape, rows_total, block_rows, ragged):
    if not ragged:
        return None
    row = (jax.lax.broadcasted_iota(jnp.int32, shape, 0)
           + pl.program_id(0) * block_rows)
    return row < rows_total


def _focal_sums_kernel(hm_ref, gt_ref, sums_ref, *, rows_total, block_rows, ragged):
    x = hm_ref[...]
    gt = gt_ref[...]
    valid = _valid_rows(x.shape, rows_total, block_rows, ragged)
    _, ps, ns, npos = _focal_core(x, gt, valid)
    _write_sums(sums_ref, ps, ns, npos)


def _focal_weight_kernel(hm_ref, gt_ref, um_ref, w_ref, sums_ref, *,
                         rows_total, block_rows, ragged):
    x = hm_ref[...]
    gt = gt_ref[...]
    valid = _valid_rows(x.shape, rows_total, block_rows, ragged)
    pred, ps, ns, npos = _focal_core(x, gt, valid)
    # out_mask = clamp(sigmoid(7*(pred-0.5)), 1e-4, 1-1e-4) via tanh (1 EUP op)
    out_mask = jnp.clip(0.5 + 0.5 * jnp.tanh(3.5 * (pred - 0.5)), 1e-4, 1.0 - 1e-4)
    w_ref[...] = (out_mask * um_ref[...]).astype(w_ref.dtype)
    _write_sums(sums_ref, ps, ns, npos)


@jax.jit
def _focal_call(hm, gt, used_mask=None):
    """Returns (w2d [rows,128] bf16 or None, pos_sum, neg_sum, num_pos)."""
    B, D, H, W = hm.shape
    total = B * D * H * W
    lanes = 128
    # TODO(synk): totals not divisible by 128 would need a (rare) pad fallback.
    assert total % lanes == 0, "B*D*H*W must be a multiple of 128"
    rows = total // lanes

    # >=2 blocks (both v7x TCs get work); 16-row alignment for the bf16 weight tile.
    block_rows = max(16, min(2048, _round_up(pl.cdiv(rows, 2), 16)))
    n_blocks = pl.cdiv(rows, block_rows)
    ragged = bool(rows % block_rows)

    hm2d = hm.astype(jnp.float32).reshape(rows, lanes)   # bitcast reshape in jit
    gt2d = gt.astype(jnp.float32).reshape(rows, lanes)

    blk_in = block_rows * lanes * 4
    sums_blk = 8 * 128 * 4
    in_spec = pl.BlockSpec((block_rows, lanes), lambda i: (i, 0))
    sums_spec = pl.BlockSpec((1, 8, 128), lambda i: (i, 0, 0))
    sums_shape = jax.ShapeDtypeStruct((n_blocks, 8, 128), jnp.float32)

    if used_mask is not None:
        um2d = used_mask.astype(jnp.float32).reshape(rows, lanes)
        w_blk = block_rows * lanes * 2
        vmem_limit = int(2 * (3 * blk_in + sums_blk + w_blk) + (8 << 20))
        w2d, partials = pl.pallas_call(
            functools.partial(_focal_weight_kernel, rows_total=rows,
                              block_rows=block_rows, ragged=ragged),
            grid=(n_blocks,),
            out_shape=(jax.ShapeDtypeStruct((rows, lanes), jnp.bfloat16), sums_shape),
            in_specs=[in_spec, in_spec, in_spec],
            out_specs=(pl.BlockSpec((block_rows, lanes), lambda i: (i, 0)), sums_spec),
            compiler_params=pltpu.CompilerParams(
                dimension_semantics=("parallel",), vmem_limit_bytes=vmem_limit),
        )(hm2d, gt2d, um2d)
    else:
        w2d = None
        vmem_limit = int(2 * (2 * blk_in + sums_blk) + (8 << 20))
        partials = pl.pallas_call(
            functools.partial(_focal_sums_kernel, rows_total=rows,
                              block_rows=block_rows, ragged=ragged),
            grid=(n_blocks,),
            out_shape=sums_shape,
            in_specs=[in_spec, in_spec],
            out_specs=sums_spec,
            compiler_params=pltpu.CompilerParams(
                dimension_semantics=("parallel",), vmem_limit_bytes=vmem_limit),
        )(hm2d, gt2d)

    sums = jnp.sum(partials[:, 0, :3], axis=0)
    return w2d, sums[0], sums[1], sums[2]


# --------------------------------------------------------------------------
# Kernel 2: unsupervised contrastive loss (UnSupConLoss(0.2), negs=False):
# positive anchors vs. every spatial location, soft-weighted by
# out_mask*used_mask (the bf16 weight stream from kernel 1).  The f32 [C, M]
# proj slab is streamed as large tiles, column L2 norm and bf16 MXU matmul are
# fused; per-block (pos, den) partials are emitted on a 'parallel' grid and
# reduced outside.  |sim| <= 1/T for unit vectors so no online max is needed.
# TODO(synk): exact UnSupConLoss source is not part of the given module; this
#             is a masked InfoNCE-style approximation with the same interface.
# --------------------------------------------------------------------------
def _unsup_kernel(anchor_ref, fm_ref, w_ref, part_ref, *, inv_t, m_total,
                  tile_m, ragged):
    a = anchor_ref[...]                          # [A_pad, C] f32 unit rows (zero pad)
    f = fm_ref[...]                              # [C, T]    f32 feature tile
    w = w_ref[...].astype(jnp.float32)           # [1, T]    out_mask*used_mask (bf16)

    inv_norm = jax.lax.rsqrt(jnp.sum(f * f, axis=0, keepdims=True) + 1e-12)
    sim = jnp.dot(a.astype(jnp.bfloat16), f.astype(jnp.bfloat16),
                  preferred_element_type=jnp.float32) * (inv_norm * inv_t)

    if ragged:
        col = (jax.lax.broadcasted_iota(jnp.int32, (1, tile_m), 1)
               + pl.program_id(0) * tile_m)
        valid = col < m_total
        sim = jnp.where(valid, sim, -1e30)
        w = jnp.where(valid, w, 0.0)

    # anchors & columns are unit-norm => sim <= inv_t : fixed shift, exp <= ~1
    e = jnp.exp(sim - inv_t)
    pos = jnp.sum(e * w, axis=-1, keepdims=True)      # [A_pad, 1]
    den = jnp.sum(e, axis=-1, keepdims=True)          # [A_pad, 1]

    lane = jax.lax.broadcasted_iota(jnp.int32, part_ref.shape[1:], 1)
    part_ref[0] = jnp.where(lane == 0, pos, 0.0) + jnp.where(lane == 1, den, 0.0)


@functools.partial(jax.jit, static_argnames=("temperature", "max_tile_m"))
def _unsup_call(anchors, proj, w2d, temperature=0.2, max_tile_m=32768):
    B, C, D, H, W = proj.shape
    assert B == 1, "contrastive path assumes batch size 1 (reference indexes [0])"
    M = D * H * W
    assert w2d.size == M

    A, _ = anchors.shape
    A_pad = _round_up(A, 8)
    anchors_p = jnp.pad(anchors.astype(jnp.float32), ((0, A_pad - A), (0, 0)))

    fm = proj[0].reshape(C, M).astype(jnp.float32)    # bitcast reshape in jit
    w_row = w2d.reshape(1, M)                         # bf16 row, bitcast

    tile_m = max(128, min(max_tile_m, _round_up(pl.cdiv(M, 2), 128)))
    n_blocks = pl.cdiv(M, tile_m)
    ragged = bool(M % tile_m)

    fm_blk = C * tile_m * 4
    w_blk = tile_m * 2
    sim_blk = A_pad * tile_m * 4
    vmem_limit = int(2 * (fm_blk + w_blk + A_pad * C * 4 + A_pad * 128 * 4)
                     + 4 * sim_blk + (4 << 20))

    partials = pl.pallas_call(
        functools.partial(_unsup_kernel, inv_t=float(1.0 / temperature),
                          m_total=M, tile_m=tile_m, ragged=ragged),
        grid=(n_blocks,),
        out_shape=jax.ShapeDtypeStruct((n_blocks, A_pad, 128), jnp.float32),
        in_specs=[
            pl.BlockSpec((A_pad, C), lambda i: (0, 0)),     # anchors stay resident
            pl.BlockSpec((C, tile_m), lambda i: (0, i)),    # f32 feature-map tile
            pl.BlockSpec((1, tile_m), lambda i: (0, i)),    # bf16 weight tile
        ],
        out_specs=pl.BlockSpec((1, A_pad, 128), lambda i: (i, 0, 0)),
        compiler_params=pltpu.CompilerParams(
            dimension_semantics=("parallel",), vmem_limit_bytes=vmem_limit),
    )(anchors_p, fm, w_row)

    sums = jnp.sum(partials, axis=0)                  # [A_pad, 128]
    ratio = sums[:A, 0] / sums[:A, 1]
    return jnp.mean(-jnp.log(ratio + 1e-12))


# --------------------------------------------------------------------------
# SupConLoss(0.2, 0.2, 0.2): the matmul is ~[10,16]x[16,15], far below one MXU
# pass, so it is plain jnp inside jit (per perf review) instead of a pallas_call.
# TODO(synk): exact SupConLoss source is not part of the given module; this
#             implements the standard supervised-contrastive formula.
# --------------------------------------------------------------------------
@functools.partial(jax.jit, static_argnames=("temperature", "base_temperature"))
def _supcon_jnp(anchors, contrast, temperature=0.2, base_temperature=0.2):
    P, _ = anchors.shape
    N, _ = contrast.shape
    logits = jnp.dot(anchors, contrast.T) / temperature
    logits = logits - jnp.max(logits, axis=-1, keepdims=True)
    row = jnp.arange(P)[:, None]
    col = jnp.arange(N)[None, :]
    self_mask = (col != row).astype(jnp.float32)
    pos_mask = ((col < P) & (col != row)).astype(jnp.float32)
    exp_logits = jnp.exp(logits) * self_mask
    log_prob = logits - jnp.log(jnp.sum(exp_logits, axis=-1, keepdims=True))
    pos_count = jnp.maximum(jnp.sum(pos_mask, axis=-1, keepdims=True), 1.0)
    mean_log_prob_pos = jnp.sum(pos_mask * log_prob, axis=-1, keepdims=True) / pos_count
    return jnp.mean(-(temperature / base_temperature) * mean_log_prob_pos)


# --------------------------------------------------------------------------
# Glue (plain JAX, jitted): feature gathering, L2 norm, scalar combination.
# --------------------------------------------------------------------------
def _l2norm(x, axis=-1):
    n = jnp.sqrt(jnp.sum(jnp.square(x), axis=axis, keepdims=True))
    return x / (n + 1e-12)


def _gather_feats(proj, coords):
    """proj: [B, C, D, H, W]; coords: [1, N, 3] (x, y, z) -> [N, C]."""
    _, C, D, H, W = proj.shape
    xs = coords[0, :, 0].astype(jnp.int32)
    ys = coords[0, :, 1].astype(jnp.int32)
    zs = coords[0, :, -1].astype(jnp.int32)
    flat = zs * (H * W) + ys * W + xs
    fm_flat = proj[0].reshape(C, D * H * W)
    return jnp.transpose(fm_flat[:, flat])


@jax.jit
def _contrastive_feats(proj, gt_det, soft_neg, hard_neg):
    pos = jnp.concatenate([_gather_feats(proj, gt_det),
                           _gather_feats(proj, soft_neg)], axis=0)
    hard = _gather_feats(proj, hard_neg)
    return _l2norm(pos), _l2norm(hard)


def tomo_loss_forward(outputs, batch, epoch, phase, opt):
    # Reference leaves `loss` undefined for epoch == 0 (NameError); require epoch > 0.
    if epoch <= 0:
        raise ValueError("epoch must be > 0 (reference forward is undefined for epoch == 0)")
    if opt.mse_loss:
        # TODO(synk): opt.mse_loss=True path (plain MSELoss, no _sigmoid/out_mask) not implemented.
        raise NotImplementedError("mse_loss path not implemented")

    hm_loss = jnp.float32(0.0)
    wh_loss = jnp.float32(0.0)    # crit_reg / crit_wh are never invoked in forward
    off_loss = jnp.float32(0.0)
    cr_loss = jnp.float32(0.0)

    # only the last stack feeds the losses (reference computes crit outside the loop)
    output = dict(outputs[opt.num_stacks - 1])

    need_weight = bool(opt.contrastive and phase == 'train')
    used_mask = batch['used_mask'] if need_weight else None
    w2d, pos_sum, neg_sum, num_pos = _focal_call(output['hm'], batch['hm'], used_mask)

    focal = jnp.where(num_pos == 0.0, -neg_sum,
                      -(pos_sum + neg_sum) / jnp.maximum(num_pos, 1.0))
    hm_loss = hm_loss + focal / opt.num_stacks

    if opt.contrastive and phase == 'train':
        output_fm = output['proj']                       # [B, C, D, H, W]
        pos_n, hard_n = _contrastive_feats(output_fm, batch['gt_det'],
                                           batch['soft_neg'], batch['hard_neg'])
        total_pos_features = pos_n.shape[0]
        contrast = jnp.concatenate([pos_n, hard_n], axis=0)
        cr_loss = cr_loss + _supcon_jnp(pos_n, contrast,
                                        temperature=0.2, base_temperature=0.2)
        if epoch > 0:
            # negs=False -> only positive anchors contrasted against the dense map.
            anchors = contrast[:total_pos_features]
            unsup_cr_loss = _unsup_call(anchors, output_fm, w2d, temperature=0.2)
            cr_loss = cr_loss + 0.1 * unsup_cr_loss

    if phase == 'train':
        loss = (opt.hm_weight * hm_loss + opt.wh_weight * wh_loss
                + opt.off_weight * off_loss + 0.5 * cr_loss)
    else:
        cr_loss = hm_loss * 0
        loss = (opt.hm_weight * hm_loss + opt.wh_weight * wh_loss
                + opt.off_weight * off_loss)

    loss_stats = {'loss': loss, 'hm_loss': hm_loss, 'cr_loss': cr_loss}
    return loss, loss_stats


if __name__ == "__main__":
    key = jax.random.PRNGKey(0)
    # Sized so both kernels run multi-block 'parallel' grids but stay small/fast.
    B, C, D, H, W = 1, 16, 16, 64, 64
    n_gt, n_soft, n_hard = 6, 4, 5

    ks = jax.random.split(key, 8)
    hm_logits = jax.random.normal(ks[0], (B, D, H, W), jnp.float32)
    gt_hm = jax.random.uniform(ks[1], (B, D, H, W), jnp.float32, 0.0, 0.95)
    proj = jax.random.normal(ks[2], (B, C, D, H, W), jnp.float32)

    def rand_coords(k, n):
        kx, ky, kz = jax.random.split(k, 3)
        xs = jax.random.randint(kx, (1, n, 1), 0, W)
        ys = jax.random.randint(ky, (1, n, 1), 0, H)
        zs = jax.random.randint(kz, (1, n, 1), 0, D)
        return jnp.concatenate([xs, ys, zs], axis=-1).astype(jnp.int32)

    gt_det = rand_coords(ks[3], n_gt)
    soft_neg = rand_coords(ks[4], n_soft)
    hard_neg = rand_coords(ks[5], n_hard)

    # plant exact 1.0 peaks at the ground-truth detections (CenterNet-style gt)
    gt_hm = gt_hm.at[0, gt_det[0, :, 2], gt_det[0, :, 1], gt_det[0, :, 0]].set(1.0)
    used_mask = (jax.random.uniform(ks[6], (B, D, H, W)) > 0.3).astype(jnp.float32)

    opt = SimpleNamespace(num_stacks=1, mse_loss=False, reg_loss='l1',
                          contrastive=True, hm_weight=1.0, wh_weight=0.1,
                          off_weight=1.0)

    outputs = [{'hm': hm_logits, 'proj': proj}]
    batch = {'hm': gt_hm, 'gt_det': gt_det, 'soft_neg': soft_neg,
             'hard_neg': hard_neg, 'used_mask': used_mask}

    loss, loss_stats = tomo_loss_forward(outputs, batch, epoch=1, phase='train',
                                         opt=opt)
    jax.block_until_ready(loss)
    jax.block_until_ready(loss_stats['hm_loss'])
    jax.block_until_ready(loss_stats['cr_loss'])
    print("KERNEL_OK")
</pallas_src>

<mosaic_0001>
module attributes {stable_mosaic.version = 11 : i64} {
  func.func @_focal_weight_kernel(%arg0: i32, %arg1: memref<256x128xf32, #tpu.memory_space<vmem>>, %arg2: memref<256x128xf32, #tpu.memory_space<vmem>>, %arg3: memref<256x128xf32, #tpu.memory_space<vmem>>, %arg4: memref<256x128xbf16, #tpu.memory_space<vmem>>, %arg5: memref<1x8x128xf32, #tpu.memory_space<vmem>>) attributes {dimension_semantics = [#tpu.dimension_semantics<parallel>], iteration_bounds = array<i64: 2>, scalar_prefetch = 0 : i64, scratch_operands = 0 : i64, tpu.core_type = #tpu.core_type<tc>, window_params = [{transform_indices = @transform_0, window_bounds = array<i64: 256, 128>}, {transform_indices = @transform_1, window_bounds = array<i64: 256, 128>}, {transform_indices = @transform_2, window_bounds = array<i64: 256, 128>}, {transform_indices = @transform_3, window_bounds = array<i64: 256, 128>}, {transform_indices = @transform_4, window_bounds = array<i64: 1, 8, 128>}]} {
    %c0 = arith.constant 0 : index
    %c0_0 = arith.constant 0 : index
    %0 = vector.load %arg1[%c0, %c0_0] : memref<256x128xf32, #tpu.memory_space<vmem>>, vector<256x128xf32>
    %c0_1 = arith.constant 0 : index
    %c0_2 = arith.constant 0 : index
    %1 = vector.load %arg2[%c0_1, %c0_2] : memref<256x128xf32, #tpu.memory_space<vmem>>, vector<256x128xf32>
    %2 = math.absf %0 : vector<256x128xf32>
    %cst = arith.constant 0.000000e+00 : f32
    %3 = vector.broadcast %cst : f32 to vector<256x128xf32>
    %4 = arith.subf %3, %2 : vector<256x128xf32>
    %5 = math.exp %4 : vector<256x128xf32>
    %cst_3 = arith.constant 0.000000e+00 : f32
    %6 = vector.broadcast %cst_3 : f32 to vector<256x128xf32>
    %7 = arith.minimumf %0, %6 : vector<256x128xf32>
    %cst_4 = arith.constant 1.000000e+00 : f32
    %8 = vector.broadcast %cst_4 : f32 to vector<256x128xf32>
    %9 = arith.addf %8, %5 : vector<256x128xf32>
    %10 = math.log %9 : vector<256x128xf32>
    %11 = arith.subf %7, %10 : vector<256x128xf32>
    %cst_5 = arith.constant -9.21034049 : f32
    %cst_6 = arith.constant -1.000050e-04 : f32
    %12 = vector.broadcast %cst_5 : f32 to vector<256x128xf32>
    %13 = arith.maximumf %12, %11 : vector<256x128xf32>
    %14 = vector.broadcast %cst_6 : f32 to vector<256x128xf32>
    %15 = arith.minimumf %14, %13 : vector<256x128xf32>
    %16 = arith.subf %11, %0 : vector<256x128xf32>
    %cst_7 = arith.constant -9.21034049 : f32
    %cst_8 = arith.constant -1.000050e-04 : f32
    %17 = vector.broadcast %cst_7 : f32 to vector<256x128xf32>
    %18 = arith.maximumf %17, %16 : vector<256x128xf32>
    %19 = vector.broadcast %cst_8 : f32 to vector<256x128xf32>
    %20 = arith.minimumf %19, %18 : vector<256x128xf32>
    %cst_9 = arith.constant 1.000000e+00 : f32
    %21 = vector.broadcast %cst_9 : f32 to vector<256x128xf32>
    %22 = arith.addf %21, %5 : vector<256x128xf32>
    %23 = tpu.reciprocal %22 {approx = true} : vector<256x128xf32> -> vector<256x128xf32>
    %cst_10 = arith.constant 0.000000e+00 : f32
    %24 = vector.broadcast %cst_10 : f32 to vector<256x128xf32>
    %25 = arith.cmpf oge, %0, %24 : vector<256x128xf32>
    %26 = arith.mulf %5, %23 : vector<256x128xf32>
    %27 = arith.select %25, %23, %26 : vector<256x128xi1>, vector<256x128xf32>
    %cst_11 = arith.constant 9.99999974E-5 : f32
    %cst_12 = arith.constant 0.999899983 : f32
    %28 = vector.broadcast %cst_11 : f32 to vector<256x128xf32>
    %29 = arith.maximumf %28, %27 : vector<256x128xf32>
    %30 = vector.broadcast %cst_12 : f32 to vector<256x128xf32>
    %31 = arith.minimumf %30, %29 : vector<256x128xf32>
    %cst_13 = arith.constant 1.000000e+00 : f32
    %32 = vector.broadcast %cst_13 : f32 to vector<256x128xf32>
    %33 = arith.cmpf oeq, %1, %32 : vector<256x128xf32>
    %cst_14 = arith.constant 1.000000e+00 : f32
    %34 = vector.broadcast %cst_14 : f32 to vector<256x128xf32>
    %35 = arith.cmpf olt, %1, %34 : vector<256x128xf32>
    %cst_15 = arith.constant 1.000000e+00 : f32
    %36 = vector.broadcast %cst_15 : f32 to vector<256x128xf32>
    %37 = arith.subf %36, %1 : vector<256x128xf32>
    %38 = arith.mulf %37, %37 : vector<256x128xf32>
    %39 = arith.mulf %38, %38 : vector<256x128xf32>
    %cst_16 = arith.constant 1.000000e+00 : f32
    %40 = vector.broadcast %cst_16 : f32 to vector<256x128xf32>
    %41 = arith.subf %40, %31 : vector<256x128xf32>
    %42 = arith.mulf %41, %41 : vector<256x128xf32>
    %43 = arith.mulf %15, %42 : vector<256x128xf32>
    %44 = arith.mulf %31, %31 : vector<256x128xf32>
    %45 = arith.mulf %20, %44 : vector<256x128xf32>
    %46 = arith.mulf %45, %39 : vector<256x128xf32>
    %cst_17 = arith.constant 0.000000e+00 : f32
    %47 = vector.broadcast %cst_17 : f32 to vector<256x128xf32>
    %48 = arith.select %33, %43, %47 : vector<256x128xi1>, vector<256x128xf32>
    %49 = vector.shape_cast %48 : vector<256x128xf32> to vector<1x256x128xf32>
    %cst_18 = arith.constant dense<0.000000e+00> : vector<1xf32>
    %50 = vector.multi_reduction <add>, %49, %cst_18 [1, 2] : vector<1x256x128xf32> to vector<1xf32>
    %51 = vector.shape_cast %50 : vector<1xf32> to vector<1x1x1xf32>
    %52 = vector.extract %51[0, 0, 0] : f32 from vector<1x1x1xf32>
    %cst_19 = arith.constant 0.000000e+00 : f32
    %53 = vector.broadcast %cst_19 : f32 to vector<256x128xf32>
    %54 = arith.select %35, %46, %53 : vector<256x128xi1>, vector<256x128xf32>
    %55 = vector.shape_cast %54 : vector<256x128xf32> to vector<1x256x128xf32>
    %cst_20 = arith.constant dense<0.000000e+00> : vector<1xf32>
    %56 = vector.multi_reduction <add>, %55, %cst_20 [1, 2] : vector<1x256x128xf32> to vector<1xf32>
    %57 = vector.shape_cast %56 : vector<1xf32> to vector<1x1x1xf32>
    %58 = vector.extract %57[0, 0, 0] : f32 from vector<1x1x1xf32>
    %cst_21 = arith.constant 1.000000e+00 : f32
    %cst_22 = arith.constant 0.000000e+00 : f32
    %59 = vector.broadcast %cst_21 : f32 to vector<256x128xf32>
    %60 = vector.broadcast %cst_22 : f32 to vector<256x128xf32>
    %61 = arith.select %33, %59, %60 : vector<256x128xi1>, vector<256x128xf32>
    %62 = vector.shape_cast %61 : vector<256x128xf32> to vector<1x256x128xf32>
    %cst_23 = arith.constant dense<0.000000e+00> : vector<1xf32>
    %63 = vector.multi_reduction <add>, %62, %cst_23 [1, 2] : vector<1x256x128xf32> to vector<1xf32>
    %64 = vector.shape_cast %63 : vector<1xf32> to vector<1x1x1xf32>
    %65 = vector.extract %64[0, 0, 0] : f32 from vector<1x1x1xf32>
    %cst_24 = arith.constant 5.000000e-01 : f32
    %66 = vector.broadcast %cst_24 : f32 to vector<256x128xf32>
    %67 = arith.subf %31, %66 : vector<256x128xf32>
    %cst_25 = arith.constant 3.500000e+00 : f32
    %68 = vector.broadcast %cst_25 : f32 to vector<256x128xf32>
    %69 = arith.mulf %68, %67 : vector<256x128xf32>
    %70 = math.tanh %69 : vector<256x128xf32>
    %cst_26 = arith.constant 5.000000e-01 : f32
    %71 = vector.broadcast %cst_26 : f32 to vector<256x128xf32>
    %72 = arith.mulf %71, %70 : vector<256x128xf32>
    %cst_27 = arith.constant 5.000000e-01 : f32
    %73 = vector.broadcast %cst_27 : f32 to vector<256x128xf32>
    %74 = arith.addf %73, %72 : vector<256x128xf32>
    %cst_28 = arith.constant 9.99999974E-5 : f32
    %cst_29 = arith.constant 0.999899983 : f32
    %75 = vector.broadcast %cst_28 : f32 to vector<256x128xf32>
    %76 = arith.maximumf %75, %74 : vector<256x128xf32>
    %77 = vector.broadcast %cst_29 : f32 to vector<256x128xf32>
    %78 = arith.minimumf %77, %76 : vector<256x128xf32>
    %c0_30 = arith.constant 0 : index
    %c0_31 = arith.constant 0 : index
    %79 = vector.load %arg3[%c0_30, %c0_31] : memref<256x128xf32, #tpu.memory_space<vmem>>, vector<256x128xf32>
    %80 = arith.mulf %78, %79 : vector<256x128xf32>
    %81 = arith.truncf %80 : vector<256x128xf32> to vector<256x128xbf16>
    %c0_32 = arith.constant 0 : index
    %c0_33 = arith.constant 0 : index
    %82 = vector.load %arg4[%c0_32, %c0_33] : memref<256x128xbf16, #tpu.memory_space<vmem>>, vector<256x128xbf16>
    tpu.vector_store %arg4[%c0_32, %c0_33], %81 {strides = array<i32>} : memref<256x128xbf16, #tpu.memory_space<vmem>>, vector<256x128xbf16>,
    %83 = tpu.iota {dimensions = array<i32: 1>} : vector<1x8x128xi32>
    %84 = tpu.iota {dimensions = array<i32: 2>} : vector<1x8x128xi32>
    %c0_i32 = arith.constant 0 : i32
    %85 = vector.broadcast %c0_i32 : i32 to vector<1x8x128xi32>
    %86 = arith.cmpi eq, %83, %85 : vector<1x8x128xi32>
    %c0_i32_34 = arith.constant 0 : i32
    %87 = vector.broadcast %c0_i32_34 : i32 to vector<1x8x128xi32>
    %88 = arith.cmpi eq, %84, %87 : vector<1x8x128xi32>
    %89 = arith.andi %86, %88 : vector<1x8x128xi1>
    %cst_35 = arith.constant 0.000000e+00 : f32
    %90 = vector.broadcast %52 : f32 to vector<1x8x128xf32>
    %91 = vector.broadcast %cst_35 : f32 to vector<1x8x128xf32>
    %92 = arith.select %89, %90, %91 : vector<1x8x128xi1>, vector<1x8x128xf32>
    %c0_i32_36 = arith.constant 0 : i32
    %93 = vector.broadcast %c0_i32_36 : i32 to vector<1x8x128xi32>
    %94 = arith.cmpi eq, %83, %93 : vector<1x8x128xi32>
    %c1_i32 = arith.constant 1 : i32
    %95 = vector.broadcast %c1_i32 : i32 to vector<1x8x128xi32>
    %96 = arith.cmpi eq, %84, %95 : vector<1x8x128xi32>
    %97 = arith.andi %94, %96 : vector<1x8x128xi1>
    %cst_37 = arith.constant 0.000000e+00 : f32
    %98 = vector.broadcast %58 : f32 to vector<1x8x128xf32>
    %99 = vector.broadcast %cst_37 : f32 to vector<1x8x128xf32>
    %100 = arith.select %97, %98, %99 : vector<1x8x128xi1>, vector<1x8x128xf32>
    %101 = arith.addf %92, %100 : vector<1x8x128xf32>
    %c0_i32_38 = arith.constant 0 : i32
    %102 = vector.broadcast %c0_i32_38 : i32 to vector<1x8x128xi32>
    %103 = arith.cmpi eq, %83, %102 : vector<1x8x128xi32>
    %c2_i32 = arith.constant 2 : i32
    %104 = vector.broadcast %c2_i32 : i32 to vector<1x8x128xi32>
    %105 = arith.cmpi eq, %84, %104 : vector<1x8x128xi32>
    %106 = arith.andi %103, %105 : vector<1x8x128xi1>
    %cst_39 = arith.constant 0.000000e+00 : f32
    %107 = vector.broadcast %65 : f32 to vector<1x8x128xf32>
    %108 = vector.broadcast %cst_39 : f32 to vector<1x8x128xf32>
    %109 = arith.select %106, %107, %108 : vector<1x8x128xi1>, vector<1x8x128xf32>
    %110 = arith.addf %101, %109 : vector<1x8x128xf32>
    %c0_40 = arith.constant 0 : index
    %c0_41 = arith.constant 0 : index
    %c0_42 = arith.constant 0 : index
    %111 = vector.load %arg5[%c0_40, %c0_41, %c0_42] : memref<1x8x128xf32, #tpu.memory_space<vmem>>, vector<1x8x128xf32>
    tpu.vector_store %arg5[%c0_40, %c0_41, %c0_42], %110 {strides = array<i32>} : memref<1x8x128xf32, #tpu.memory_space<vmem>>, vector<1x8x128xf32>,
    return
  }
  func.func @transform_0(%arg0: i32) -> (i32, i32) {
    %c0_i32 = arith.constant 0 : i32
    %c0_i32_0 = arith.constant 0 : i32
    return %arg0, %c0_i32 : i32, i32
  }
  func.func @transform_1(%arg0: i32) -> (i32, i32) {
    %c0_i32 = arith.constant 0 : i32
    %c0_i32_0 = arith.constant 0 : i32
    return %arg0, %c0_i32 : i32, i32
  }
  func.func @transform_2(%arg0: i32) -> (i32, i32) {
    %c0_i32 = arith.constant 0 : i32
    %c0_i32_0 = arith.constant 0 : i32
    return %arg0, %c0_i32 : i32, i32
  }
  func.func @transform_3(%arg0: i32) -> (i32, i32) {
    %c0_i32 = arith.constant 0 : i32
    %c0_i32_0 = arith.constant 0 : i32
    return %arg0, %c0_i32 : i32, i32
  }
  func.func @transform_4(%arg0: i32) -> (i32, i32, i32) {
    %c0_i32 = arith.constant 0 : i32
    %c0_i32_0 = arith.constant 0 : i32
    %c0_i32_1 = arith.constant 0 : i32
    return %arg0, %c0_i32, %c0_i32_0 : i32, i32, i32
  }
}

</mosaic_0001>

<bundles_post_ra>
// kernel: _focal_call.1
= control target key start
LH: loop header
LB: loop body
LE: loop exit
PB: predicated region body
PF: predicated region fallthrough
CT: control target
= control target key end

     0   :  { %10 = vsyncpa [#allocation3], 0  ;;  %s5060_s0 = inlined_call_operand.vmem [shape: f32[512,128], index: 0, kind: input, shape index: {}]   ;;  %s5061_s1 = inlined_call_operand.vmem [shape: f32[512,128], index: 1, kind: input, shape index: {}]   ;;  %s5062_s2 = inlined_call_operand.vmem [shape: f32[512,128], index: 2, kind: input, shape index: {}]   ;;  %s5063_s3 = inlined_call_operand.hbm [shape: bf16[512,128], index: 3, kind: output, shape index: {0}]   ;;  %s5064_s4 = inlined_call_operand.vmem [shape: f32[2,8,128], index: 4, kind: output, shape index: {1}]  }
   0x1   :  { %12 = vsyncpa [#allocation3 + $0x1], 0  ;;  %s2795_s15 = smov 0   ;;  %s2797_s16 = smov 0  }
   0x2   :  { %s2799_s17 = smov 0   ;;  %s2801_s18 = smov 0  }
   0x3 LB: > { %s2816_s19 = sadd.s32 4294967295, %s2764_s18   ;;  %s2125_s20 = sadd.s32 4294967294, %s2764_s18   ;;  %s2764_s18 = sphi %s2801_s18, %s5797_s18   ;;  %s2760_s17 = sphi %s2799_s17, %s5796_s17   ;;  %s2756_s16 = sphi %s2797_s16, %s5795_s16   ;;  %s2752_s15 = sphi %s2795_s15, %s5794_s15  }
   0x4   : > { %s2820_s21 = sadd.s32 1, %s2764_s18   ;;  %s103_s22 = sadd.s32 1, %s2760_s17 }
   0x5   : > { %s100_s23 = ssub.s32 %s2764_s18, %s2820_s21  ;;  %p113_p0 = scmp.ne.s32.totalorder %s2760_s17, %s2756_s16 }
   0x6   : > { %p101_p1 = scmp.eq.s32.totalorder %s100_s23, 0  ;;  %p114_p2 = scmp.eq.s32.totalorder %s2816_s19, 1 }
   0x7   : > { %p119_p3 = scmp.ne.s32.totalorder %s2756_s16, %s2752_s15  ;;  %p120_p4 = scmp.eq.s32.totalorder %s2125_s20, 1 }
   0x8   : > { %s2831_s24 = scalar_select %p101_p1, %s2760_s17, %s103_s22  }
   0x9   : > { %p2833_p5 = por %p114_p2, %p113_p0  ;;  %p2837_p6 = por %p120_p4, %p119_p3 }
   0xa   : > { %p2128_p7 = scmp.ge.s32.totalorder %s2764_s18, 1  ;;  %p191_p8 = scmp.lt.s32.totalorder %s2764_s18, 3 }
   0xc   : > { %p192_p9 = pnand %p2128_p7, %p191_p8 }
   0xe   : > { %195 = sbr.rel (%p192_p9) target bundleno = 597 (0x255), region = 32 }
  0x15   : > { %s2130_s27 = sshll.u32 %s2816_s19, 5  ;;  %v2766_v4 = vmov 0.0   ;;  %s222_s9 = sand.u32 1, %s2756_s16  }
  0x16   : > { %p232_p10 = scmp.lt.s32.totalorder %s2130_s27, 63  ;;  %s4833_s10 = sshll.u32 %s222_s9, 7 }
  0x17   : > { %s2238_s14 = sshll.u32 %s2816_s19, 11  ;;  %s4978_s20 = scalar_lea.vmem [#allocation2], %s4833_s10 }
  0x18   : > { %s5799_s27 = smov (!%p232_p10, %s2130_s27), 63  ;;  %s2012_s22 = sshll.u32 %s4978_s20, 4  ;;  %s4997_s22 = int_to_ptr.vmem [resolvable:$true] %s2012_s22 }
  0x19   : > { %s2844_s28 = sshll.u32 %s5799_s27, 3  ;;  %s5013_s29 = scalar_lea.sflag [#allocation3], %s222_s9 }
  0x1a   : > { %s2850_s5 = scalar_lea.vmem %s5061_s1, %s2844_s28  ;;  %s3060_s8 = scalar_lea.vmem %s5060_s0, %s2844_s28 }
  0x1b   : > { %v2853_v0 = vld [vmem:[%s2850_s5] sm:$0xff]  ;;  %v2856_v1 = vld [vmem:[%s2850_s5 + $0x8] sm:$0xff]  ;;  %v2861_v2 = vld [vmem:[%s2850_s5 + $0x10] sm:$0xff]  ;;  %s4858_s13 = scalar_lea.vmem %s5062_s2, %s2844_s28  ;;  %s4995_s28 = scalar_lea.hbm %s5063_s3, %s2238_s14 }
  0x1c   : > { %5302 = vst [vmem:[#allocation5_spill] sm:$0xff] %v2853_v0  ;;  %5303 = vst [vmem:[#allocation6_spill] sm:$0xff] %v2856_v1  ;;  %vm958_vm0 = vcmp.eq.f32.partialorder %v2853_v0, 1.0  ;;  %vm959_vm1 = vcmp.eq.f32.partialorder %v2856_v1, 1.0  ;;  %vm960_vm2 = vcmp.eq.f32.partialorder %v2861_v2, 1.0  ;;  %v2865_v3 = vld [vmem:[%s2850_s5 + $0x18] sm:$0xff] }
  0x1d   : > { %5304 = vst [vmem:[#allocation7_spill] sm:$0xff] %v2861_v2  ;;  %5305 = vst [vmem:[#allocation8_spill] sm:$0xff] %v2865_v3  ;;  %v1454_v5 = vsel %vm958_vm0, 1.0, %v2766_v4  ;;  %v1455_v6 = vsel %vm959_vm1, 1.0, %v2766_v4  ;;  %vm5234_vm3 = vcmp.eq.f32.partialorder %v2865_v3, 1.0  ;;  %v2875_v7 = vld [vmem:[%s2850_s5 + $0x20] sm:$0xff] }
  0x1e   : > { %5306 = vst [vmem:[#allocation9_spill] sm:$0xff] %v2875_v7  ;;  %v1456_v8 = vsel %vm960_vm2, 1.0, %v2766_v4  ;;  %vm5232_vm4 = vcmp.eq.f32.partialorder %v2875_v7, 1.0  ;;  %v1486_v9 = vadd.f32 %v1455_v6, %v1454_v5  ;;  %v2882_v10 = vld [vmem:[%s2850_s5 + $0x28] sm:$0xff]  ;;  %v1457_v11 = vsel %vm5234_vm3, 1.0, %v2766_v4  ;;  %v2889_v13 = vld [vmem:[%s2850_s5 + $0x30] sm:$0xff] }
  0x1f   : > { %5307 = vst [vmem:[#allocation10_spill] sm:$0xff] %v2882_v10  ;;  %vm5228_vm5 = vcmp.eq.f32.partialorder %v2882_v10, 1.0  ;;  %5308 = vst [vmem:[#allocation11_spill] sm:$0xff] %v2889_v13  ;;  %v1458_v14 = vsel %vm5232_vm4, 1.0, %v2766_v4  ;;  %vm5227_vm6 = vcmp.eq.f32.partialorder %v2889_v13, 1.0  ;;  %v2896_v16 = vld [vmem:[%s2850_s5 + $0x38] sm:$0xff] }
  0x20   : > { %v1487_v12 = vadd.f32 %v1486_v9, %v1456_v8  ;;  %5309 = vst [vmem:[#allocation12_spill] sm:$0xff] %v2896_v16  ;;  %v1459_v17 = vsel %vm5228_vm5, 1.0, %v2766_v4  ;;  %vm5218_vm7 = vcmp.eq.f32.partialorder %v2896_v16, 1.0  ;;  %v2903_v19 = vld [vmem:[%s2850_s5 + $0x40] sm:$0xff]  ;;  %v1460_v20 = vsel %vm5227_vm6, 1.0, %v2766_v4  ;;  %v2910_v22 = vld [vmem:[%s2850_s5 + $0x48] sm:$0xff] }
  0x21   : > { %5310 = vst [vmem:[#allocation13_spill] sm:$0xff] %v2903_v19  ;;  %vm5211_vm8 = vcmp.eq.f32.partialorder %v2903_v19, 1.0  ;;  %5311 = vst [vmem:[#allocation14_spill] sm:$0xff] %v2910_v22  ;;  %v1461_v23 = vsel %vm5218_vm7, 1.0, %v2766_v4  ;;  %vm5210_vm9 = vcmp.eq.f32.partialorder %v2910_v22, 1.0  ;;  %v2917_v25 = vld [vmem:[%s2850_s5 + $0x50] sm:$0xff] }
  0x22   : > { %v1488_v15 = vadd.f32 %v1487_v12, %v1457_v11  ;;  %5312 = vst [vmem:[#allocation15_spill] sm:$0xff] %v2917_v25  ;;  %v1462_v26 = vsel %vm5211_vm8, 1.0, %v2766_v4  ;;  %vm5202_vm10 = vcmp.eq.f32.partialorder %v2917_v25, 1.0  ;;  %v2924_v28 = vld [vmem:[%s2850_s5 + $0x58] sm:$0xff]  ;;  %v1463_v29 = vsel %vm5210_vm9, 1.0, %v2766_v4  ;;  %v2931_v31 = vld [vmem:[%s2850_s5 + $0x60] sm:$0xff] }
  0x23   : > { %5313 = vst [vmem:[#allocation16_spill] sm:$0xff] %v2924_v28  ;;  %vm5198_vm11 = vcmp.eq.f32.partialorder %v2924_v28, 1.0  ;;  %5314 = vst [vmem:[#allocation17_spill] sm:$0xff] %v2931_v31  ;;  %v1464_v32 = vsel %vm5202_vm10, 1.0, %v2766_v4  ;;  %vm5065_vm12 = vcmp.eq.f32.partialorder %v2931_v31, 1.0  ;;  %v2938_v34 = vld [vmem:[%s2850_s5 + $0x68] sm:$0xff] }
  0x24   : > { %v1489_v18 = vadd.f32 %v1488_v15, %v1458_v14  ;;  %5315 = vst [vmem:[#allocation18_spill] sm:$0xff] %v2938_v34  ;;  %v1465_v35 = vsel %vm5198_vm11, 1.0, %v2766_v4  ;;  %vm5066_vm13 = vcmp.eq.f32.partialorder %v2938_v34, 1.0  ;;  %v2945_v37 = vld [vmem:[%s2850_s5 + $0x70] sm:$0xff]  ;;  %v1466_v38 = vsel %vm5065_vm12, 1.0, %v2766_v4  ;;  %v2952_v40 = vld [vmem:[%s2850_s5 + $0x78] sm:$0xff] }
  0x25   : > { %5316 = vst [vmem:[#allocation19_spill] sm:$0xff] %v2945_v37  ;;  %vm5067_vm14 = vcmp.eq.f32.partialorder %v2945_v37, 1.0  ;;  %5317 = vst [vmem:[#allocation20_spill] sm:$0xff] %v2952_v40  ;;  %v1467_v41 = vsel %vm5066_vm13, 1.0, %v2766_v4  ;;  %vm5068_vm15 = vcmp.eq.f32.partialorder %v2952_v40, 1.0  ;;  %v2959_v43 = vld [vmem:[%s2850_s5 + $0x80] sm:$0xff] }
  0x26   : > { %v1490_v21 = vadd.f32 %v1489_v18, %v1459_v17  ;;  %5318 = vst [vmem:[#allocation21_spill] sm:$0xff] %v2959_v43  ;;  %v1468_v44 = vsel %vm5067_vm14, 1.0, %v2766_v4  ;;  %vm5069_vm12 = vcmp.eq.f32.partialorder %v2959_v43, 1.0  ;;  %v2966_v46 = vld [vmem:[%s2850_s5 + $0x88] sm:$0xff]  ;;  %v1469_v47 = vsel %vm5068_vm15, 1.0, %v2766_v4  ;;  %v2973_v49 = vld [vmem:[%s2850_s5 + $0x90] sm:$0xff] }
  0x27   : > { %5319 = vst [vmem:[#allocation22_spill] sm:$0xff] %v2966_v46  ;;  %vm5070_vm13 = vcmp.eq.f32.partialorder %v2966_v46, 1.0  ;;  %5320 = vst [vmem:[#allocation23_spill] sm:$0xff] %v2973_v49  ;;  %v1470_v50 = vsel %vm5069_vm12, 1.0, %v2766_v4  ;;  %vm5071_vm14 = vcmp.eq.f32.partialorder %v2973_v49, 1.0  ;;  %v2980_v52 = vld [vmem:[%s2850_s5 + $0x98] sm:$0xff] }
  0x28   : > { %v1491_v24 = vadd.f32 %v1490_v21, %v1460_v20  ;;  %5321 = vst [vmem:[#allocation24_spill] sm:$0xff] %v2980_v52  ;;  %v1471_v53 = vsel %vm5070_vm13, 1.0, %v2766_v4  ;;  %vm5072_vm15 = vcmp.eq.f32.partialorder %v2980_v52, 1.0  ;;  %v2987_v55 = vld [vmem:[%s2850_s5 + $0xa0] sm:$0xff]  ;;  %v1472_v56 = vsel %vm5071_vm14, 1.0, %v2766_v4  ;;  %v2994_v58 = vld [vmem:[%s2850_s5 + $0xa8] sm:$0xff] }
  0x29   : > { %5322 = vst [vmem:[#allocation25_spill] sm:$0xff] %v2987_v55  ;;  %vm5073_vm12 = vcmp.eq.f32.partialorder %v2987_v55, 1.0  ;;  %5323 = vst [vmem:[#allocation26_spill] sm:$0xff] %v2994_v58  ;;  %v1473_v59 = vsel %vm5072_vm15, 1.0, %v2766_v4  ;;  %vm5074_vm13 = vcmp.eq.f32.partialorder %v2994_v58, 1.0  ;;  %v3001_v61 = vld [vmem:[%s2850_s5 + $0xb0] sm:$0xff] }
  0x2a   : > { %v1492_v27 = vadd.f32 %v1491_v24, %v1461_v23  ;;  %5324 = vst [vmem:[#allocation27_spill] sm:$0xff] %v3001_v61  ;;  %v1474_v62 = vsel %vm5073_vm12, 1.0, %v2766_v4  ;;  %vm5075_vm14 = vcmp.eq.f32.partialorder %v3001_v61, 1.0  ;;  %v3008_v5 = vld [vmem:[%s2850_s5 + $0xb8] sm:$0xff]  ;;  %v1475_v6 = vsel %vm5074_vm13, 1.0, %v2766_v4  ;;  %v3015_v9 = vld [vmem:[%s2850_s5 + $0xc0] sm:$0xff] }
  0x2b   : > { %5325 = vst [vmem:[#allocation28_spill] sm:$0xff] %v3008_v5  ;;  %vm5076_vm15 = vcmp.eq.f32.partialorder %v3008_v5, 1.0  ;;  %5326 = vst [vmem:[#allocation29_spill] sm:$0xff] %v3015_v9  ;;  %v1476_v11 = vsel %vm5075_vm14, 1.0, %v2766_v4  ;;  %vm5077_vm12 = vcmp.eq.f32.partialorder %v3015_v9, 1.0  ;;  %v3022_v14 = vld [vmem:[%s2850_s5 + $0xc8] sm:$0xff] }
  0x2c   : > { %v1493_v30 = vadd.f32 %v1492_v27, %v1462_v26  ;;  %5327 = vst [vmem:[#allocation30_spill] sm:$0xff] %v3022_v14  ;;  %v1477_v15 = vsel %vm5076_vm15, 1.0, %v2766_v4  ;;  %vm5078_vm13 = vcmp.eq.f32.partialorder %v3022_v14, 1.0  ;;  %v3029_v18 = vld [vmem:[%s2850_s5 + $0xd0] sm:$0xff]  ;;  %v1478_v20 = vsel %vm5077_vm12, 1.0, %v2766_v4  ;;  %v3036_v23 = vld [vmem:[%s2850_s5 + $0xd8] sm:$0xff] }
  0x2d   : > { %5328 = vst [vmem:[#allocation31_spill] sm:$0xff] %v3029_v18  ;;  %vm5080_vm14 = vcmp.eq.f32.partialorder %v3029_v18, 1.0  ;;  %5329 = vst [vmem:[#allocation32_spill] sm:$0xff] %v3036_v23  ;;  %v1479_v24 = vsel %vm5078_vm13, 1.0, %v2766_v4  ;;  %vm5079_vm15 = vcmp.eq.f32.partialorder %v3036_v23, 1.0  ;;  %v3043_v27 = vld [vmem:[%s2850_s5 + $0xe0] sm:$0xff] }
  0x2e   : > { %v1494_v33 = vadd.f32 %v1493_v30, %v1463_v29  ;;  %5330 = vst [vmem:[#allocation33_spill] sm:$0xff] %v3043_v27  ;;  %v1480_v29 = vsel %vm5080_vm14, 1.0, %v2766_v4  ;;  %vm5197_vm12 = vcmp.eq.f32.partialorder %v3043_v27, 1.0  ;;  %v3144_v27 = vld [vmem:[%s3060_s8 + $0x80] sm:$0xff]  ;;  %v3148_v18 = vld [vmem:[%s3060_s8 + $0x88] sm:$0xff]  ;;  %v3168_v55 = vld [vmem:[%s3060_s8 + $0xb0] sm:$0xff] }
  0x2f   : > { %v3172_v52 = vld [vmem:[%s3060_s8 + $0xb8] sm:$0xff]  ;;  %v3176_v49 = vld [vmem:[%s3060_s8 + $0xc0] sm:$0xff]  ;;  %v3206_v28 = vld [vmem:[%s3060_s8 + $0xe8] sm:$0xff]  ;;  %s2702_s30 = scalar_lea.vmem %s4997_s22, 2048 }
  0x30   : > { %v1495_v36 = vadd.f32 %v1494_v33, %v1464_v32  ;;  %v3050_v32 = vld [vmem:[%s2850_s5 + $0xe8] sm:$0xff]  ;;  %v1481_v33 = vsel %vm5079_vm15, 1.0, %v2766_v4  ;;  %5337 = vst [vmem:[#allocation40_spill] sm:$0xff] %v3172_v52  ;;  %5338 = vst [vmem:[#allocation41_spill] sm:$0xff] %v3176_v49  ;;  %v341_v43 = vand.u32 2147483647, %v3172_v52  ;;  %p2703_p11 = scmp.ne.s32.totalorder %s4997_s22, %s2702_s30 }
  0x31   : > { %5331 = vst [vmem:[#allocation34_spill] sm:$0xff] %v3050_v32  ;;  %vm5195_vm13 = vcmp.eq.f32.partialorder %v3050_v32, 1.0  ;;  %v3194_v40 = vld [vmem:[%s3060_s8 + $0xd8] sm:$0xff]  ;;  %v342_v37 = vand.u32 2147483647, %v3176_v49  ;;  %v3200_v34 = vld [vmem:[%s3060_s8 + $0xe0] sm:$0xff] }
  0x32   : > { %v1496_v39 = vadd.f32 %v1495_v36, %v1465_v35  ;;  %v3063_v36 = vld [vmem:[%s2850_s5 + $0xf0] sm:$0xff]  ;;  %5344 = vst [vmem:[#allocation47_spill] sm:$0xff] %v3200_v34  ;;  %5346 = vst [vmem:[#allocation49_spill] sm:$0xff] %v3206_v28  ;;  %v345_v19 = vand.u32 2147483647, %v3194_v40  ;;  %v373_v16 = vsub.f32 0.0, %v341_v43  ;;  %p2704_p12 = pnand %p2703_p11, %p2833_p5 }
  0x33   : > { %5332 = vst [vmem:[#allocation35_spill] sm:$0xff] %v3063_v36  ;;  %vm5194_vm15 = vcmp.eq.f32.partialorder %v3063_v36, 1.0  ;;  %v3140_v36 = vld [vmem:[%s3060_s8 + $0x78] sm:$0xff]  ;;  %v3212_v22 = vld [vmem:[%s3060_s8 + $0xf0] sm:$0xff]  ;;  %v346_v13 = vand.u32 2147483647, %v3200_v34 }
  0x34   : > { %v1497_v42 = vadd.f32 %v1496_v39, %v1466_v38  ;;  %v1482_v38 = vsel %vm5197_vm12, 1.0, %v2766_v4  ;;  %5348 = vst [vmem:[#allocation51_spill] sm:$0xff] %v3212_v22  ;;  %v374_v10 = vsub.f32 0.0, %v342_v37  ;;  %v348_v43 = vand.u32 2147483647, %v3212_v22  ;;  %p2705_p13 = pneg %p2704_p12 }
  0x36   : > { %v1498_v45 = vadd.f32 %v1497_v42, %v1467_v41  ;;  %v3070_v41 = vld [vmem:[%s2850_s5 + $0xf8] sm:$0xff]  ;;  %v1483_v42 = vsel %vm5195_vm13, 1.0, %v2766_v4 }
  0x37   : > { %5333 = vst [vmem:[#allocation36_spill] sm:$0xff] %v3070_v41  ;;  %vm5193_vm14 = vcmp.eq.f32.partialorder %v3070_v41, 1.0 }
  0x38   : > { %v1499_v48 = vadd.f32 %v1498_v45, %v1468_v44  ;;  %v3076_v44 = vld [vmem:[%s3060_s8] sm:$0xff] }
  0x39   : > { %v5387_v52 = vld [vmem:[#allocation47_spill] sm:$0xff] }
  0x3a   : > { %v1500_v51 = vadd.f32 %v1499_v48, %v1469_v47  ;;  %v3080_v47 = vld [vmem:[%s3060_s8 + $0x8] sm:$0xff]  ;;  %v1484_v48 = vsel %vm5194_vm15, 1.0, %v2766_v4 }
  0x3b   : > { %vm799_vm15 = vcmp.ge.f32.partialorder %v3080_v47, 0.0 }
  0x3c   : > { %v1501_v54 = vadd.f32 %v1500_v51, %v1470_v50  ;;  %v3086_v50 = vld [vmem:[%s3060_s8 + $0x10] sm:$0xff] }
  0x3d   : > { %vm800_vm13 = vcmp.ge.f32.partialorder %v3086_v50, 0.0 }
  0x3e   : > { %v1502_v57 = vadd.f32 %v1501_v54, %v1471_v53  ;;  %v3089_v53 = vld [vmem:[%s3060_s8 + $0x18] sm:$0xff]  ;;  %v318_v54 = vand.u32 2147483647, %v3076_v44 }
  0x3f   : > { %5334 = vst [vmem:[#allocation37_spill] sm:$0xff] %v3089_v53 }
  0x40   : > { %v1503_v60 = vadd.f32 %v1502_v57, %v1472_v56  ;;  %v1485_v56 = vsel %vm5193_vm14, 1.0, %v2766_v4  ;;  %v3096_v57 = vld [vmem:[%s3060_s8 + $0x20] sm:$0xff]  ;;  %vm798_vm14 = vcmp.ge.f32.partialorder %v3076_v44, 0.0 }
  0x41   : > { %5335 = vst [vmem:[#allocation38_spill] sm:$0xff] %v3096_v57  ;;  %v322_v4 = vand.u32 2147483647, %v3096_v57 }
  0x42   : > { %v1504_v63 = vadd.f32 %v1503_v60, %v1473_v59  ;;  %v319_v59 = vand.u32 2147483647, %v3080_v47 }
  0x44   : > { %v1505_v8 = vadd.f32 %v1504_v63, %v1474_v62  ;;  %v3100_v62 = vld [vmem:[%s3060_s8 + $0x28] sm:$0xff]  ;;  %v320_v63 = vand.u32 2147483647, %v3086_v50 }
  0x45   : > { %5336 = vst [vmem:[#allocation39_spill] sm:$0xff] %v3100_v62 }
  0x46   : > { %v1506_v12 = vadd.f32 %v1505_v8, %v1475_v6  ;;  %v3104_v6 = vld [vmem:[%s3060_s8 + $0x30] sm:$0xff]  ;;  %v321_v8 = vand.u32 2147483647, %v3089_v53 }
  0x47   : > { %vm804_vm9 = vcmp.ge.f32.partialorder %v3104_v6, 0.0 }
  0x48   : > { %v1507_v17 = vadd.f32 %v1506_v12, %v1476_v11  ;;  %v3108_v12 = vld [vmem:[%s3060_s8 + $0x38] sm:$0xff] }
  0x49   : > { %vm805_vm8 = vcmp.ge.f32.partialorder %v3108_v12, 0.0 }
  0x4a   : > { %v1508_v21 = vadd.f32 %v1507_v17, %v1477_v15  ;;  %v350_v15 = vsub.f32 0.0, %v318_v54  ;;  %v3112_v17 = vld [vmem:[%s3060_s8 + $0x40] sm:$0xff] }
  0x4b   : > { %vm806_vm7 = vcmp.ge.f32.partialorder %v3112_v17, 0.0 }
  0x4c   : > { %v1509_v26 = vadd.f32 %v1508_v21, %v1478_v20  ;;  %v323_v20 = vand.u32 2147483647, %v3100_v62  ;;  %v351_v21 = vsub.f32 0.0, %v319_v59  ;;  %v3132_v59 = vld [vmem:[%s3060_s8 + $0x68] sm:$0xff] }
  0x4e   : > { %v1510_v30 = vadd.f32 %v1509_v26, %v1479_v24  ;;  %v3116_v24 = vld [vmem:[%s3060_s8 + $0x48] sm:$0xff]  ;;  %v324_v26 = vand.u32 2147483647, %v3104_v6  ;;  %v355_v54 = vsub.f32 0.0, %v323_v20 }
  0x4f   : > { %vm807_vm6 = vcmp.ge.f32.partialorder %v3116_v24, 0.0 }
  0x50   : > { %v1511_v35 = vadd.f32 %v1510_v30, %v1480_v29  ;;  %v352_v29 = vsub.f32 0.0, %v320_v63  ;;  %v3120_v30 = vld [vmem:[%s3060_s8 + $0x50] sm:$0xff]  ;;  %v356_v63 = vsub.f32 0.0, %v324_v26  ;;  %v331_v26 = vand.u32 2147483647, %v3132_v59 }
  0x51   : > { %v392_v23 = vmul.f32 1.442695, %v355_v54  ;;  %v334_v54 = vand.u32 2147483647, %v3144_v27  ;;  %vm808_vm5 = vcmp.ge.f32.partialorder %v3120_v30, 0.0 }
  0x52   : > { %v1512_v39 = vadd.f32 %v1511_v35, %v1481_v33  ;;  %v325_v33 = vand.u32 2147483647, %v3108_v12  ;;  %v353_v35 = vsub.f32 0.0, %v321_v8  ;;  %v386_v8 = vmul.f32 1.442695, %v352_v29 }
  0x53   : > { %v394_v14 = vmul.f32 1.442695, %v356_v63  ;;  %v335_v63 = vand.u32 2147483647, %v3148_v18 }
  0x54   : > { %v1513_v45 = vadd.f32 %v1512_v39, %v1482_v38  ;;  %v3124_v38 = vld [vmem:[%s3060_s8 + $0x58] sm:$0xff]  ;;  %v326_v39 = vand.u32 2147483647, %v3112_v17 }
  0x55   : > { %v329_v41 = vand.u32 2147483647, %v3124_v38  ;;  %vm809_vm4 = vcmp.ge.f32.partialorder %v3124_v38, 0.0 }
  0x56   : > { %v1514_v51 = vadd.f32 %v1513_v45, %v1483_v42  ;;  %v354_v42 = vsub.f32 0.0, %v322_v4  ;;  %v382_v45 = vmul.f32 1.442695, %v350_v15  ;;  %v357_v4 = vsub.f32 0.0, %v325_v33 }
  0x57   : > { %v388_v15 = vmul.f32 1.442695, %v353_v35  ;;  %v358_v20 = vsub.f32 0.0, %v326_v39  ;;  %v3152_v39 = vld [vmem:[%s3060_s8 + $0x90] sm:$0xff] }
  0x58   : > { %v1515_v60 = vadd.f32 %v1514_v51, %v1484_v48  ;;  %v3128_v48 = vld [vmem:[%s3060_s8 + $0x60] sm:$0xff]  ;;  %v327_v51 = vand.u32 2147483647, %v3116_v24  ;;  %2382 = vpow2.f32 %v382_v45  ;;  %v361_v45 = vsub.f32 0.0, %v329_v41  ;;  %v3164_v41 = vld [vmem:[%s3060_s8 + $0xa8] sm:$0xff] }
  0x59   : > { %v330_v32 = vand.u32 2147483647, %v3128_v48  ;;  %v396_v9 = vmul.f32 1.442695, %v357_v4  ;;  %v398_v5 = vmul.f32 1.442695, %v358_v20 }
  0x5a   : > { %v1516_v11 = vadd.f32 %v1515_v60, %v1485_v56  ;;  %v384_v56 = vmul.f32 1.442695, %v351_v21  ;;  %v328_v60 = vand.u32 2147483647, %v3120_v30  ;;  %v390_v21 = vmul.f32 1.442695, %v354_v42 }
  0x5b   : > { %v359_v29 = vsub.f32 0.0, %v327_v51  ;;  %v333_v42 = vand.u32 2147483647, %v3140_v36  ;;  %v3156_v51 = vld [vmem:[%s3060_s8 + $0x98] sm:$0xff]  ;;  %v336_v4 = vand.u32 2147483647, %v3152_v39 }
  0x5c   : > { %1517 = vadd.xlane.f32.xlu1 %v1516_v11  ;;  %v3136_v11 = vld [vmem:[%s3060_s8 + $0x70] sm:$0xff]  ;;  %2384 = vpow2.f32 %v384_v56  ;;  %v360_v35 = vsub.f32 0.0, %v328_v60  ;;  %v362_v56 = vsub.f32 0.0, %v330_v32  ;;  %v3160_v60 = vld [vmem:[%s3060_s8 + $0xa0] sm:$0xff]  ;;  %v337_v32 = vand.u32 2147483647, %v3156_v51 }
  0x5d   : > { %v332_v33 = vand.u32 2147483647, %v3136_v11  ;;  %2386 = vpow2.f32 %v386_v8  ;;  %v363_v8 = vsub.f32 0.0, %v331_v26  ;;  %v400_v61 = vmul.f32 1.442695, %v359_v29 }
  0x5e   : > { %2388 = vpow2.f32 %v388_v15  ;;  %v402_v58 = vmul.f32 1.442695, %v360_v35  ;;  %v365_v20 = vsub.f32 0.0, %v333_v42  ;;  %v366_v26 = vsub.f32 0.0, %v334_v54 }
  0x5f   : > { %2390 = vpow2.f32 %v390_v21  ;;  %v364_v15 = vsub.f32 0.0, %v332_v33  ;;  %v404_v21 = vmul.f32 1.442695, %v361_v45  ;;  %v406_v29 = vmul.f32 1.442695, %v362_v56  ;;  %v3188_v56 = vld [vmem:[%s3060_s8 + $0xd0] sm:$0xff] }
  0x60   : > { %2392 = vpow2.f32 %v392_v23  ;;  %v338_v23 = vand.u32 2147483647, %v3160_v60  ;;  %v367_v33 = vsub.f32 0.0, %v335_v63  ;;  %v408_v35 = vmul.f32 1.442695, %v363_v8 }
  0x61   : > { %2394 = vpow2.f32 %v394_v14  ;;  %v339_v14 = vand.u32 2147483647, %v3164_v41  ;;  %v340_v42 = vand.u32 2147483647, %v3168_v55  ;;  %v368_v45 = vsub.f32 0.0, %v336_v4 }
  0x62   : > { %2396 = vpow2.f32 %v396_v9  ;;  %v3179_v46 = vpop.eup %2382  ;;  %v3182_v9 = vld [vmem:[%s3060_s8 + $0xc8] sm:$0xff]  ;;  %v410_v54 = vmul.f32 1.442695, %v364_v15  ;;  %v369_v63 = vsub.f32 0.0, %v337_v32  ;;  %v370_v4 = vsub.f32 0.0, %v338_v23 }
  0x63   : > { %2398 = vpow2.f32 %v398_v5  ;;  %5339 = vst [vmem:[#allocation42_spill] sm:$0xff] %v3179_v46  ;;  %5340 = vst [vmem:[#allocation43_spill] sm:$0xff] %v3182_v9  ;;  %v343_v31 = vand.u32 2147483647, %v3182_v9  ;;  %v371_v32 = vsub.f32 0.0, %v339_v14  ;;  %v372_v23 = vsub.f32 0.0, %v340_v42 }
  0x64   : > { %2400 = vpow2.f32 %v400_v61  ;;  %v412_v61 = vmul.f32 1.442695, %v365_v20  ;;  %v416_v20 = vmul.f32 1.442695, %v367_v33  ;;  %v344_v25 = vand.u32 2147483647, %v3188_v56 }
  0x65   : > { %2402 = vpow2.f32 %v402_v58  ;;  %v414_v58 = vmul.f32 1.442695, %v366_v26  ;;  %v420_v14 = vmul.f32 1.442695, %v369_v63  ;;  %v3218_v33 = vld [vmem:[%s3060_s8 + $0xf8] sm:$0xff]  ;;  %v375_v7 = vsub.f32 0.0, %v343_v31 }
  0x66   : > { %v3185_v5 = vpop.eup %2384  ;;  %2404 = vpow2.f32 %v404_v21  ;;  %5350 = vst [vmem:[#allocation53_spill] sm:$0xff] %v3218_v33  ;;  %v422_v42 = vmul.f32 1.442695, %v370_v4  ;;  %v424_v3 = vmul.f32 1.442695, %v371_v32  ;;  %v376_v63 = vsub.f32 0.0, %v344_v25 }
  0x67   : > { %5341 = vst [vmem:[#allocation44_spill] sm:$0xff] %v3185_v5  ;;  %v3191_v8 = vpop.eup %2386  ;;  %2406 = vpow2.f32 %v406_v29  ;;  %v418_v29 = vmul.f32 1.442695, %v368_v45  ;;  %v347_v45 = vand.u32 2147483647, %v3206_v28  ;;  %v378_v28 = vsub.f32 0.0, %v346_v13 }
  0x68   : > { %5342 = vst [vmem:[#allocation45_spill] sm:$0xff] %v3191_v8  ;;  %v3197_v15 = vpop.eup %2388  ;;  %2408 = vpow2.f32 %v408_v35  ;;  %v349_v37 = vand.u32 2147483647, %v3218_v33  ;;  %v428_v4 = vmul.f32 1.442695, %v373_v16  ;;  %vm810_vm3 = vcmp.ge.f32.partialorder %v3128_v48, 0.0 }
  0x69   : > { %5343 = vst [vmem:[#allocation46_spill] sm:$0xff] %v3197_v15  ;;  %v3203_v21 = vpop.eup %2390  ;;  %2410 = vpow2.f32 %v410_v54  ;;  %v430_v31 = vmul.f32 1.442695, %v374_v10  ;;  %v432_v22 = vmul.f32 1.442695, %v375_v7 }
  0x6a   : > { %5345 = vst [vmem:[#allocation48_spill] sm:$0xff] %v3203_v21  ;;  %v3209_v26 = vpop.eup %2392  ;;  %2412 = vpow2.f32 %v412_v61  ;;  %v426_v61 = vmul.f32 1.442695, %v372_v23  ;;  %v380_v23 = vsub.f32 0.0, %v348_v43  ;;  %v438_v13 = vmul.f32 1.442695, %v378_v28 }
  0x6b   : > { %5347 = vst [vmem:[#allocation50_spill] sm:$0xff] %v3209_v26  ;;  %v3215_v35 = vpop.eup %2394  ;;  %2414 = vpow2.f32 %v414_v58  ;;  %v377_v58 = vsub.f32 0.0, %v345_v19  ;;  %v381_v19 = vsub.f32 0.0, %v349_v37 }
  0x6c   : > { %5349 = vst [vmem:[#allocation52_spill] sm:$0xff] %v3215_v35  ;;  %v3221_v54 = vpop.eup %2396  ;;  %2416 = vpow2.f32 %v416_v20  ;;  %v379_v20 = vsub.f32 0.0, %v347_v45  ;;  %v442_v7 = vmul.f32 1.442695, %v380_v23 }
  0x6d   : > { %5351 = vst [vmem:[#allocation54_spill] sm:$0xff] %v3221_v54  ;;  %v3224_v2 = vpop.eup %2398  ;;  %2418 = vpow2.f32 %v418_v29  ;;  %v434_v29 = vmul.f32 1.442695, %v376_v63  ;;  %v436_v16 = vmul.f32 1.442695, %v377_v58 }
  0x6e   : > { %5352 = vst [vmem:[#allocation55_spill] sm:$0xff] %v3224_v2  ;;  %v3227_v1 = vpop.eup %2400  ;;  %2420 = vpow2.f32 %v420_v14  ;;  %v444_v43 = vmul.f32 1.442695, %v381_v19  ;;  %v3267_v19 = vadd.f32 1.0, %v3191_v8 }
  0x6f   : > { %5353 = vst [vmem:[#allocation56_spill] sm:$0xff] %v3227_v1  ;;  %v3230_v0 = vpop.eup %2402  ;;  %2422 = vpow2.f32 %v422_v42  ;;  %v440_v42 = vmul.f32 1.442695, %v379_v20 }
  0x70   : > { %5354 = vst [vmem:[#allocation57_spill] sm:$0xff] %v3230_v0  ;;  %v3232_v32 = vpop.eup %2404  ;;  %2424 = vpow2.f32 %v424_v3 }
  0x71   : > { %5355 = vst [vmem:[#allocation58_spill] sm:$0xff] %v3232_v32  ;;  %v3234_v25 = vpop.eup %2406  ;;  %2426 = vpow2.f32 %v426_v61 }
  0x72   : > { %5356 = vst [vmem:[#allocation59_spill] sm:$0xff] %v3234_v25  ;;  %v3236_v34 = vpop.eup %2408  ;;  %2428 = vpow2.f32 %v428_v4  ;;  %v3283_v4 = vadd.f32 1.0, %v3203_v21  ;;  %v3299_v21 = vadd.f32 1.0, %v3215_v35  ;;  %v3315_v35 = vadd.f32 1.0, %v3224_v2 }
  0x73   : > { %5357 = vst [vmem:[#allocation60_spill] sm:$0xff] %v3236_v34  ;;  %v3238_v14 = vpop.eup %2410  ;;  %2430 = vpow2.f32 %v430_v31  ;;  %v3260_v31 = vadd.f32 1.0, %v3185_v5  ;;  %v3331_v2 = vadd.f32 1.0, %v3230_v0  ;;  %v3345_v0 = vadd.f32 1.0, %v3234_v25 }
  0x74   : > { %5358 = vst [vmem:[#allocation61_spill] sm:$0xff] %v3238_v14  ;;  %v3240_v10 = vpop.eup %2412  ;;  %2432 = vpow2.f32 %v432_v22  ;;  %v3253_v22 = vadd.f32 1.0, %v3179_v46  ;;  %5369 = vst [vmem:[#allocation72_spill] sm:$0xff] %v3283_v4  ;;  %v3357_v25 = vadd.f32 1.0, %v3238_v14 }
  0x75   : > { %5359 = vst [vmem:[#allocation62_spill] sm:$0xff] %v3240_v10  ;;  %v3242_v3 = vpop.eup %2414  ;;  %2434 = vpow2.f32 %v434_v29  ;;  %5373 = vst [vmem:[#allocation76_spill] sm:$0xff] %v3299_v21 }
  0x76   : > { %5360 = vst [vmem:[#allocation63_spill] sm:$0xff] %v3242_v3  ;;  %v3244_v45 = vpop.eup %2416  ;;  %2436 = vpow2.f32 %v436_v16  ;;  %5377 = vst [vmem:[#allocation80_spill] sm:$0xff] %v3315_v35  ;;  %v3369_v14 = vadd.f32 1.0, %v3242_v3 }
  0x77   : > { %5361 = vst [vmem:[#allocation64_spill] sm:$0xff] %v3244_v45  ;;  %v3246_v63 = vpop.eup %2418  ;;  %2438 = vpow2.f32 %v438_v13  ;;  %5381 = vst [vmem:[#allocation84_spill] sm:$0xff] %v3331_v2  ;;  %v3373_v13 = vadd.f32 1.0, %v3244_v45 }
  0x78   : > { %5362 = vst [vmem:[#allocation65_spill] sm:$0xff] %v3246_v63  ;;  %v3248_v61 = vpop.eup %2420  ;;  %2440 = vpow2.f32 %v440_v42  ;;  %5384 = vst [vmem:[#allocation87_spill] sm:$0xff] %v3345_v0  ;;  %v3376_v42 = vadd.f32 1.0, %v3246_v63 }
  0x79   : > { %5363 = vst [vmem:[#allocation66_spill] sm:$0xff] %v3248_v61  ;;  %v3250_v37 = vpop.eup %2422  ;;  %2442 = vpow2.f32 %v442_v7  ;;  %v3275_v7 = vadd.f32 1.0, %v3197_v15  ;;  %v3291_v15 = vadd.f32 1.0, %v3209_v26  ;;  %v3307_v26 = vadd.f32 1.0, %v3221_v54  ;;  %5386 = vst [vmem:[#allocation89_spill] sm:$0xff] %v3357_v25 }
  0x7a   : > { %5364 = vst [vmem:[#allocation67_spill] sm:$0xff] %v3250_v37  ;;  %v3255_v28 = vpop.eup %2424  ;;  %2444 = vpow2.f32 %v444_v43  ;;  %v3323_v54 = vadd.f32 1.0, %v3227_v1  ;;  %v3339_v1 = vadd.f32 1.0, %v3232_v32  ;;  %v3351_v32 = vadd.f32 1.0, %v3236_v34  ;;  %5391 = vst [vmem:[#allocation90_spill] sm:$0xff] %v3369_v14 }
  0x7b   : > { %5365 = vst [vmem:[#allocation68_spill] sm:$0xff] %v3255_v28  ;;  %v3262_v20 = vpop.eup %2426  ;;  %2446 = vlog2.f32 %v3253_v22  ;;  %5371 = vst [vmem:[#allocation74_spill] sm:$0xff] %v3291_v15  ;;  %v3363_v34 = vadd.f32 1.0, %v3240_v10  ;;  %v3380_v23 = vadd.f32 1.0, %v3248_v61  ;;  %v3387_v45 = vadd.f32 1.0, %v3255_v28 }
  0x7c   : > { %5366 = vst [vmem:[#allocation69_spill] sm:$0xff] %v3262_v20  ;;  %v3270_v16 = vpop.eup %2428  ;;  %2448 = vlog2.f32 %v3260_v31  ;;  %5375 = vst [vmem:[#allocation78_spill] sm:$0xff] %v3307_v26 }
  0x7d   : > { %5367 = vst [vmem:[#allocation70_spill] sm:$0xff] %v3270_v16  ;;  %v3278_v43 = vpop.eup %2430  ;;  %2450 = vlog2.f32 %v3267_v19  ;;  %5379 = vst [vmem:[#allocation82_spill] sm:$0xff] %v3323_v54  ;;  %v3394_v61 = vadd.f32 1.0, %v3270_v16 }
  0x7e   : > { %5368 = vst [vmem:[#allocation71_spill] sm:$0xff] %v3278_v43  ;;  %v3286_v58 = vpop.eup %2432  ;;  %2452 = vlog2.f32 %v3275_v7  ;;  %5383 = vst [vmem:[#allocation86_spill] sm:$0xff] %v3339_v1 }
  0x7f   : > { %5370 = vst [vmem:[#allocation73_spill] sm:$0xff] %v3286_v58  ;;  %v3294_v8 = vpop.eup %2434  ;;  %2454 = vlog2.f32 %v3283_v4  ;;  %5385 = vst [vmem:[#allocation88_spill] sm:$0xff] %v3351_v32  ;;  %v3401_v28 = vadd.f32 1.0, %v3286_v58 }
  0x80   : > { %5372 = vst [vmem:[#allocation75_spill] sm:$0xff] %v3294_v8  ;;  %v3302_v5 = vpop.eup %2436  ;;  %2456 = vlog2.f32 %v3291_v15  ;;  %5389 = vst [vmem:[#allocation47_spill] sm:$0xff] %v3363_v34 }
  0x81   : > { %5374 = vst [vmem:[#allocation77_spill] sm:$0xff] %v3302_v5  ;;  %v3310_v46 = vpop.eup %2438  ;;  %2458 = vlog2.f32 %v3299_v21  ;;  %5392 = vst [vmem:[#allocation91_spill] sm:$0xff] %v3373_v13  ;;  %v3411_v16 = vadd.f32 1.0, %v3302_v5 }
  0x82   : > { %5376 = vst [vmem:[#allocation79_spill] sm:$0xff] %v3310_v46  ;;  %v3318_v4 = vpop.eup %2440  ;;  %2460 = vlog2.f32 %v3307_v26  ;;  %5393 = vst [vmem:[#allocation92_spill] sm:$0xff] %v3376_v42 }
  0x83   : > { %5378 = vst [vmem:[#allocation81_spill] sm:$0xff] %v3318_v4  ;;  %v3326_v15 = vpop.eup %2442  ;;  %2462 = vlog2.f32 %v3315_v35  ;;  %5394 = vst [vmem:[#allocation93_spill] sm:$0xff] %v3380_v23 }
  0x84   : > { %5380 = vst [vmem:[#allocation83_spill] sm:$0xff] %v3326_v15  ;;  %v3334_v21 = vpop.eup %2444  ;;  %2464 = vlog2.f32 %v3323_v54  ;;  %5396 = vst [vmem:[#allocation95_spill] sm:$0xff] %v3387_v45 }
  0x85   : > { %5382 = vst [vmem:[#allocation85_spill] sm:$0xff] %v3334_v21  ;;  %v2447_v26 = vpop.eup %2446  ;;  %2466 = vlog2.f32 %v3331_v2  ;;  %5398 = vst [vmem:[#allocation97_spill] sm:$0xff] %v3394_v61 }
  0x86   : > { %v2449_v35 = vpop.eup %2448  ;;  %2468 = vlog2.f32 %v3339_v1  ;;  %v511_v10 = vmul.f32 0.6931472, %v2447_v26  ;;  %5400 = vst [vmem:[#allocation99_spill] sm:$0xff] %v3401_v28  ;;  %5404 = vst [vmem:[#allocation102_spill] sm:$0xff] %v3411_v16 }
  0x87   : > { %v2451_v54 = vpop.eup %2450  ;;  %2470 = vlog2.f32 %v3345_v0  ;;  %v513_v29 = vmul.f32 0.6931472, %v2449_v35 }
  0x88   : > { %v2453_v2 = vpop.eup %2452  ;;  %2472 = vlog2.f32 %v3351_v32  ;;  %v515_v33 = vmul.f32 0.6931472, %v2451_v54 }
  0x89   : > { %v2455_v1 = vpop.eup %2454  ;;  %2474 = vlog2.f32 %v3357_v25  ;;  %v3384_v25 = vadd.f32 1.0, %v3250_v37  ;;  %v517_v63 = vmul.f32 0.6931472, %v2453_v2  ;;  %v3398_v37 = vadd.f32 1.0, %v3278_v43 }
  0x8a   : > { %v2457_v0 = vpop.eup %2456  ;;  %2476 = vlog2.f32 %v3363_v34  ;;  %v3391_v34 = vadd.f32 1.0, %v3262_v20  ;;  %v519_v35 = vmul.f32 0.6931472, %v2455_v1  ;;  %v3404_v2 = vadd.f32 1.0, %v3294_v8 }
  0x8b   : > { %v2459_v32 = vpop.eup %2458  ;;  %2478 = vlog2.f32 %v3369_v14  ;;  %5395 = vst [vmem:[#allocation94_spill] sm:$0xff] %v3384_v25  ;;  %5399 = vst [vmem:[#allocation98_spill] sm:$0xff] %v3398_v37  ;;  %v521_v1 = vmul.f32 0.6931472, %v2457_v0  ;;  %v5407_v43 = vmin.f32 %v3086_v50, 0.0  ;;  %v3422_v8 = vadd.f32 1.0, %v3310_v46 }
  0x8c   : > { %v2461_v3 = vpop.eup %2460  ;;  %2480 = vlog2.f32 %v3373_v13  ;;  %5397 = vst [vmem:[#allocation96_spill] sm:$0xff] %v3391_v34  ;;  %5401 = vst [vmem:[#allocation100_spill] sm:$0xff] %v3404_v2  ;;  %v5402_v13 = vmin.f32 %v3076_v44, 0.0 }
  0x8d   : > { %v2463_v26 = vpop.eup %2462  ;;  %2482 = vlog2.f32 %v3376_v42  ;;  %v5405_v42 = vmin.f32 %v3080_v47, 0.0  ;;  %v3419_v58 = vsub.f32 %v5407_v43, %v515_v33  ;;  %5409 = vst [vmem:[#allocation105_spill] sm:$0xff] %v3422_v8  ;;  %v5414_v33 = vmin.f32 %v3096_v57, 0.0  ;;  %v5528_v47 = vld [vmem:[#allocation55_spill] sm:$0xff] }
  0x8e   : > { %v2465_v54 = vpop.eup %2464  ;;  %v3408_v20 = vsub.f32 %v5402_v13, %v511_v10  ;;  %v3425_v10 = vadd.f32 1.0, %v3318_v4  ;;  %2484 = vlog2.f32 %v3380_v23  ;;  %v5411_v13 = vmin.f32 %v3089_v53, 0.0 }
  0x8f   : > { %v2467_v14 = vpop.eup %2466  ;;  %v3415_v9 = vsub.f32 %v5405_v42, %v513_v29  ;;  %5408 = vst [vmem:[#allocation104_spill] sm:$0xff] %v3419_v58  ;;  %v3433_v29 = vadd.f32 1.0, %v3326_v15  ;;  %v523_v42 = vmul.f32 0.6931472, %v2459_v32  ;;  %2486 = vlog2.f32 %v3384_v25 }
  0x90   : > { %5403 = vst [vmem:[#allocation101_spill] sm:$0xff] %v3408_v20  ;;  %v2469_v49 = vpop.eup %2468  ;;  %5410 = vst [vmem:[#allocation106_spill] sm:$0xff] %v3425_v10  ;;  %v3430_v0 = vsub.f32 %v5411_v13, %v517_v63  ;;  %v3438_v43 = vsub.f32 %v5414_v33, %v519_v35  ;;  %v3441_v4 = vadd.f32 1.0, %v3334_v21  ;;  %v525_v23 = vmul.f32 0.6931472, %v2461_v3 }
  0x91   : > { %5406 = vst [vmem:[#allocation103_spill] sm:$0xff] %v3415_v9  ;;  %v2471_v5 = vpop.eup %2470  ;;  %5413 = vst [vmem:[#allocation108_spill] sm:$0xff] %v3433_v29  ;;  %2488 = vlog2.f32 %v3387_v45  ;;  %v5417_v32 = vmin.f32 %v3100_v62, 0.0  ;;  %v527_v57 = vmul.f32 0.6931472, %v2463_v26  ;;  %v5421_v26 = vmin.f32 %v3108_v12, 0.0 }
  0x92   : > { %5412 = vst [vmem:[#allocation107_spill] sm:$0xff] %v3430_v0  ;;  %5415 = vst [vmem:[#allocation109_spill] sm:$0xff] %v3438_v43  ;;  %v2473_v46 = vpop.eup %2472  ;;  %2490 = vlog2.f32 %v3391_v34  ;;  %v529_v21 = vmul.f32 0.6931472, %v2465_v54  ;;  %v531_v63 = vmul.f32 0.6931472, %v2467_v14 }
  0x93   : > { %5416 = vst [vmem:[#allocation110_spill] sm:$0xff] %v3441_v4  ;;  %v2475_v13 = vpop.eup %2474  ;;  %v3448_v15 = vsub.f32 %v5417_v32, %v521_v1  ;;  %2492 = vlog2.f32 %v3394_v61  ;;  %v5419_v34 = vmin.f32 %v3104_v6, 0.0  ;;  %v533_v25 = vmul.f32 0.6931472, %v2469_v49 }
  0x94   : > { %v2477_v33 = vpop.eup %2476  ;;  %2494 = vlog2.f32 %v3398_v37  ;;  %v535_v35 = vmul.f32 0.6931472, %v2471_v5  ;;  %v3463_v54 = vsub.f32 %v5421_v26, %v525_v23  ;;  %v537_v61 = vmul.f32 0.6931472, %v2473_v46 }
  0x95   : > { %5418 = vst [vmem:[#allocation111_spill] sm:$0xff] %v3448_v15  ;;  %v2479_v45 = vpop.eup %2478  ;;  %v3457_v62 = vsub.f32 %v5419_v34, %v523_v42  ;;  %2496 = vlog2.f32 %v3401_v28  ;;  %v539_v14 = vmul.f32 0.6931472, %v2475_v13  ;;  %v541_v53 = vmul.f32 0.6931472, %v2477_v33 }
  0x96   : > { %v2481_v32 = vpop.eup %2480  ;;  %5422 = vst [vmem:[#allocation113_spill] sm:$0xff] %v3463_v54  ;;  %2498 = vlog2.f32 %v3404_v2  ;;  %v543_v37 = vmul.f32 0.6931472, %v2479_v45  ;;  %v5423_v34 = vmin.f32 %v3112_v17, 0.0  ;;  %v5425_v49 = vmin.f32 %v3116_v24, 0.0  ;;  %v5543_v24 = vld [vmem:[#allocation61_spill] sm:$0xff] }
  0x97   : > { %5420 = vst [vmem:[#allocation112_spill] sm:$0xff] %v3457_v62  ;;  %v2483_v3 = vpop.eup %2482  ;;  %2500 = vlog2.f32 %v3411_v16  ;;  %v545_v1 = vmul.f32 0.6931472, %v2481_v32  ;;  %v5427_v46 = vmin.f32 %v3120_v30, 0.0  ;;  %v5429_v26 = vmin.f32 %v3124_v38, 0.0  ;;  %v5546_v30 = vld [vmem:[#allocation62_spill] sm:$0xff] }
  0x98   : > { %v3469_v42 = vsub.f32 %v5423_v34, %v527_v57  ;;  %v3473_v5 = vsub.f32 %v5425_v49, %v529_v21  ;;  %2502 = vlog2.f32 %v3422_v8  ;;  %v2485_v45 = vpop.eup %2484  ;;  %v547_v33 = vmul.f32 0.6931472, %v2483_v3 }
  0x99   : > { %v3478_v23 = vsub.f32 %v5427_v46, %v531_v63  ;;  %v3483_v16 = vsub.f32 %v5429_v26, %v533_v25  ;;  %v5431_v57 = vmin.f32 %v3128_v48, 0.0  ;;  %v2487_v32 = vpop.eup %2486  ;;  %v5433_v49 = vmin.f32 %v3132_v59, 0.0 }
  0x9a   : > { %5424 = vst [vmem:[#allocation114_spill] sm:$0xff] %v3469_v42  ;;  %5426 = vst [vmem:[#allocation115_spill] sm:$0xff] %v3473_v5  ;;  %v5435_v63 = vmin.f32 %v3136_v11, 0.0  ;;  %v5437_v3 = vmin.f32 %v3140_v36, 0.0  ;;  %2504 = vlog2.f32 %v3425_v10  ;;  %v551_v10 = vmul.f32 0.6931472, %v2487_v32 }
  0x9b   : > { %5428 = vst [vmem:[#allocation116_spill] sm:$0xff] %v3478_v23  ;;  %5430 = vst [vmem:[#allocation117_spill] sm:$0xff] %v3483_v16  ;;  %v3487_v34 = vsub.f32 %v5431_v57, %v535_v35  ;;  %v3492_v8 = vsub.f32 %v5433_v49, %v537_v61  ;;  %v2489_v26 = vpop.eup %2488  ;;  %v5439_v35 = vmin.f32 %v3144_v27, 0.0  ;;  %2506 = vlog2.f32 %v3433_v29 }
  0x9c   : > { %v3496_v46 = vsub.f32 %v5435_v63, %v539_v14  ;;  %v3500_v13 = vsub.f32 %v5437_v3, %v541_v53  ;;  %v2491_v21 = vpop.eup %2490  ;;  %v549_v14 = vmul.f32 0.6931472, %v2485_v45  ;;  %v5441_v53 = vmin.f32 %v3148_v18, 0.0 }
  0x9d   : > { %5432 = vst [vmem:[#allocation118_spill] sm:$0xff] %v3487_v34  ;;  %5434 = vst [vmem:[#allocation119_spill] sm:$0xff] %v3492_v8  ;;  %v3506_v57 = vsub.f32 %v5439_v35, %v543_v37  ;;  %v2493_v25 = vpop.eup %2492  ;;  %v5443_v2 = vmin.f32 %v3152_v39, 0.0  ;;  %2508 = vlog2.f32 %v3441_v4  ;;  %v553_v29 = vmul.f32 0.6931472, %v2489_v26 }
  0x9e   : > { %5436 = vst [vmem:[#allocation120_spill] sm:$0xff] %v3496_v46  ;;  %5438 = vst [vmem:[#allocation121_spill] sm:$0xff] %v3500_v13  ;;  %v3513_v63 = vsub.f32 %v5441_v53, %v545_v1  ;;  %v2495_v61 = vpop.eup %2494  ;;  %v555_v32 = vmul.f32 0.6931472, %v2491_v21  ;;  %2510 = vrcp.f32 %v3253_v22  ;;  %v5447_v45 = vmax.f32 %v3408_v20, -9.2103405 }
  0x9f   : > { %5440 = vst [vmem:[#allocation122_spill] sm:$0xff] %v3506_v57  ;;  %v3518_v37 = vsub.f32 %v5443_v2, %v547_v33  ;;  %v2497_v3 = vpop.eup %2496  ;;  %v5445_v33 = vmin.f32 %v3156_v51, 0.0  ;;  %2512 = vrcp.f32 %v3260_v31  ;;  %v557_v26 = vmul.f32 0.6931472, %v2493_v25  ;;  %v5453_v22 = vld [vmem:[#allocation72_spill] sm:$0xff] }
  0xa0   : > { %5442 = vst [vmem:[#allocation123_spill] sm:$0xff] %v3513_v63  ;;  %v2499_v2 = vpop.eup %2498  ;;  %v3535_v4 = vmin.f32 %v5447_v45, -0.000100005  ;;  %v5448_v21 = vmin.f32 %v3160_v60, 0.0  ;;  %2514 = vrcp.f32 %v3267_v19  ;;  %v561_v1 = vmul.f32 0.6931472, %v2497_v3 }
  0xa1   : > { %5444 = vst [vmem:[#allocation124_spill] sm:$0xff] %v3518_v37  ;;  %v3530_v49 = vsub.f32 %v5445_v33, %v549_v14  ;;  %v2501_v53 = vpop.eup %2500  ;;  %v559_v33 = vmul.f32 0.6931472, %v2495_v61  ;;  %v5450_v35 = vmax.f32 %v3415_v9, -9.2103405  ;;  %2516 = vrcp.f32 %v3275_v7  ;;  %v5456_v9 = vld [vmem:[#allocation74_spill] sm:$0xff] }
  0xa2   : > { %v3540_v28 = vsub.f32 %v5448_v21, %v551_v10  ;;  %v2503_v14 = vpop.eup %2502  ;;  %v563_v31 = vmul.f32 0.6931472, %v2499_v2  ;;  %v5451_v25 = vmin.f32 %v3164_v41, 0.0  ;;  %v5452_v10 = vmin.f32 %v3168_v55, 0.0  ;;  %v5457_v41 = vld [vmem:[#allocation40_spill] sm:$0xff] }
  0xa3   : > { %5446 = vst [vmem:[#allocation125_spill] sm:$0xff] %v3530_v49  ;;  %v3546_v20 = vmin.f32 %v5450_v35, -0.000100005  ;;  %2518 = vrcp.f32 %v5453_v22  ;;  %v565_v19 = vmul.f32 0.6931472, %v2501_v53  ;;  %v5461_v53 = vld [vmem:[#allocation41_spill] sm:$0xff] }
  0xa4   : > { %5449 = vst [vmem:[#allocation126_spill] sm:$0xff] %v3540_v28  ;;  %v3551_v45 = vsub.f32 %v5451_v25, %v553_v29  ;;  %v3555_v21 = vsub.f32 %v5452_v10, %v555_v32  ;;  %v5454_v3 = vmax.f32 %v3419_v58, -9.2103405  ;;  %2520 = vrcp.f32 %v5456_v9  ;;  %v2505_v7 = vpop.eup %2504  ;;  %v5460_v32 = vld [vmem:[#allocation76_spill] sm:$0xff]  ;;  %v5464_v58 = vld [vmem:[#allocation43_spill] sm:$0xff] }
  0xa5   : > { %v567_v2 = vmul.f32 0.6931472, %v2503_v14  ;;  %v5458_v29 = vmin.f32 %v5457_v41, 0.0  ;;  %2522 = vrcp.f32 %v5460_v32  ;;  %v2507_v22 = vpop.eup %2506  ;;  %v5462_v10 = vmin.f32 %v5461_v53, 0.0  ;;  %v5468_v41 = vld [vmem:[#allocation78_spill] sm:$0xff] }
  0xa6   : > { %v3561_v35 = vmin.f32 %v5454_v3, -0.000100005  ;;  %v5465_v3 = vmin.f32 %v5464_v58, 0.0  ;;  %v5467_v9 = vmax.f32 %v3430_v0, -9.2103405  ;;  %2524 = vrcp.f32 %v5468_v41  ;;  %v5475_v41 = vld [vmem:[#allocation80_spill] sm:$0xff] }
  0xa7   : > { %v3566_v25 = vsub.f32 %v5458_v29, %v557_v26  ;;  %v3572_v61 = vsub.f32 %v5462_v10, %v559_v33  ;;  %v5469_v26 = vmin.f32 %v3188_v56, 0.0  ;;  %v5471_v33 = vmax.f32 %v3438_v43, -9.2103405  ;;  %v2509_v58 = vpop.eup %2508  ;;  %v5488_v0 = vld [vmem:[#allocation49_spill] sm:$0xff] }
  0xa8   : > { %5455 = vst [vmem:[#allocation72_spill] sm:$0xff] %v3561_v35  ;;  %v3576_v35 = vsub.f32 %v5465_v3, %v561_v1  ;;  %v3580_v14 = vmin.f32 %v5467_v9, -0.000100005  ;;  %v569_v1 = vmul.f32 0.6931472, %v2505_v7  ;;  %v5472_v3 = vmin.f32 %v3194_v40, 0.0 }
  0xa9   : > { %5459 = vst [vmem:[#allocation74_spill] sm:$0xff] %v3566_v25  ;;  %5463 = vst [vmem:[#allocation40_spill] sm:$0xff] %v3572_v61  ;;  %v3585_v29 = vsub.f32 %v5469_v26, %v563_v31  ;;  %v3591_v10 = vmin.f32 %v5471_v33, -0.000100005  ;;  %v5474_v56 = vmax.f32 %v3448_v15, -9.2103405  ;;  %2526 = vrcp.f32 %v5475_v41  ;;  %v2511_v26 = vpop.eup %2510 }
  0xaa   : > { %5466 = vst [vmem:[#allocation76_spill] sm:$0xff] %v3576_v35  ;;  %v3596_v9 = vsub.f32 %v5472_v3, %v565_v19  ;;  %v571_v33 = vmul.f32 0.6931472, %v2507_v22  ;;  %v5476_v53 = vmin.f32 %v5387_v52, 0.0  ;;  %v629_v40 = vmax.f32 %v3566_v25, -9.2103405  ;;  %v2513_v3 = vpop.eup %2512 }
  0xab   : > { %5470 = vst [vmem:[#allocation41_spill] sm:$0xff] %v3585_v29  ;;  %v3600_v31 = vmin.f32 %v5474_v56, -0.000100005  ;;  %v5478_v19 = vmax.f32 %v3457_v62, -9.2103405  ;;  %v5480_v22 = vld [vmem:[#allocation82_spill] sm:$0xff] }
  0xac   : > { %5473 = vst [vmem:[#allocation43_spill] sm:$0xff] %v3596_v9  ;;  %v3607_v32 = vsub.f32 %v5476_v53, %v567_v2  ;;  %v5479_v55 = vmax.f32 %v3463_v54, -9.2103405  ;;  %2528 = vrcp.f32 %v5480_v22  ;;  %v5481_v52 = vld [vmem:[#allocation37_spill] sm:$0xff]  ;;  %v5482_v2 = vld [vmem:[#allocation38_spill] sm:$0xff]  ;;  %v2515_v53 = vpop.eup %2514  ;;  %v5485_v54 = vld [vmem:[#allocation84_spill] sm:$0xff] }
  0xad   : > { %v3612_v7 = vmin.f32 %v5478_v19, -0.000100005  ;;  %vm801_vm12 = vcmp.ge.f32.partialorder %v5481_v52, 0.0  ;;  %vm802_vm11 = vcmp.ge.f32.partialorder %v5482_v2, 0.0  ;;  %v5483_v19 = vmax.f32 %v3469_v42, -9.2103405  ;;  %v2517_v22 = vpop.eup %2516 }
  0xae   : > { %5477 = vst [vmem:[#allocation78_spill] sm:$0xff] %v3607_v32  ;;  %v3618_v15 = vmin.f32 %v5479_v55, -0.000100005  ;;  %v5484_v56 = vmax.f32 %v3473_v5, -9.2103405  ;;  %2530 = vrcp.f32 %v5485_v54  ;;  %v5486_v55 = vld [vmem:[#allocation39_spill] sm:$0xff] }
  0xaf   : > { %v3626_v62 = vmin.f32 %v5483_v19, -0.000100005  ;;  %vm803_vm10 = vcmp.ge.f32.partialorder %v5486_v55, 0.0  ;;  %v3634_v43 = vmul.f32 0.6931472, %v2509_v58  ;;  %v5489_v35 = vmin.f32 %v5488_v0, 0.0 }
  0xb0   : > { %v3630_v41 = vmin.f32 %v5484_v56, -0.000100005  ;;  %v5491_v42 = vld [vmem:[#allocation86_spill] sm:$0xff]  ;;  %v2519_v56 = vpop.eup %2518  ;;  %v5492_v19 = vld [vmem:[#allocation51_spill] sm:$0xff]  ;;  %v5495_v29 = vmax.f32 %v3478_v23, -9.2103405 }
  0xb1   : > { %5487 = vst [vmem:[#allocation80_spill] sm:$0xff] %v3634_v43  ;;  %v3638_v61 = vsub.f32 %v5489_v35, %v569_v1  ;;  %2532 = vrcp.f32 %v5491_v42  ;;  %v5493_v54 = vmin.f32 %v5492_v19, 0.0  ;;  %v5496_v35 = vld [vmem:[#allocation87_spill] sm:$0xff]  ;;  %v2521_v1 = vpop.eup %2520  ;;  %v5497_v42 = vmax.f32 %v3483_v16, -9.2103405  ;;  %v5503_v16 = vld [vmem:[#allocation88_spill] sm:$0xff] }
  0xb2   : > { %v3651_v0 = vmin.f32 %v5495_v29, -0.000100005  ;;  %2534 = vrcp.f32 %v5496_v35  ;;  %v5498_v9 = vmax.f32 %v3487_v34, -9.2103405  ;;  %v2523_v58 = vpop.eup %2522  ;;  %v5502_v35 = vmax.f32 %v3496_v46, -9.2103405 }
  0xb3   : > { %5490 = vst [vmem:[#allocation82_spill] sm:$0xff] %v3638_v61  ;;  %v3646_v5 = vsub.f32 %v5493_v54, %v571_v33  ;;  %v3656_v25 = vmin.f32 %v5497_v42, -0.000100005  ;;  %v5499_v33 = vmax.f32 %v3492_v8, -9.2103405  ;;  %v5501_v54 = vld [vmem:[#allocation42_spill] sm:$0xff]  ;;  %2536 = vrcp.f32 %v5503_v16 }
  0xb4   : > { %v3660_v61 = vmin.f32 %v5498_v9, -0.000100005  ;;  %v830_v29 = vmul.f32 %v2511_v26, %v5501_v54  ;;  %v3670_v23 = vmin.f32 %v5502_v35, -0.000100005  ;;  %v5504_v42 = vld [vmem:[#allocation44_spill] sm:$0xff]  ;;  %v5505_v34 = vld [vmem:[#allocation45_spill] sm:$0xff] }
  0xb5   : > { %5494 = vst [vmem:[#allocation37_spill] sm:$0xff] %v3646_v5  ;;  %v3664_v19 = vmin.f32 %v5499_v33, -0.000100005  ;;  %v831_v32 = vmul.f32 %v2513_v3, %v5504_v42  ;;  %v832_v9 = vmul.f32 %v2515_v53, %v5505_v34  ;;  %v2525_v5 = vpop.eup %2524  ;;  %v5506_v8 = vmax.f32 %v3500_v13, -9.2103405  ;;  %v5512_v35 = vld [vmem:[#allocation89_spill] sm:$0xff] }
  0xb6   : > { %v5508_v43 = vmax.f32 %v3506_v57, -9.2103405  ;;  %v5510_v54 = vmax.f32 %v3513_v63, -9.2103405  ;;  %2538 = vrcp.f32 %v5512_v35  ;;  %v5513_v16 = vmax.f32 %v3518_v37, -9.2103405 }
  0xb7   : > { %5500 = vst [vmem:[#allocation38_spill] sm:$0xff] %v3664_v19  ;;  %v3677_v33 = vmin.f32 %v5506_v8, -0.000100005  ;;  %v5515_v42 = vld [vmem:[#allocation47_spill] sm:$0xff]  ;;  %v5516_v8 = vld [vmem:[#allocation46_spill] sm:$0xff]  ;;  %v5530_v52 = vld [vmem:[#allocation56_spill] sm:$0xff] }
  0xb8   : > { %v3681_v19 = vmin.f32 %v5508_v43, -0.000100005  ;;  %v3685_v46 = vmin.f32 %v5510_v54, -0.000100005  ;;  %v3691_v34 = vmin.f32 %v5513_v16, -0.000100005  ;;  %2540 = vrcp.f32 %v5515_v42 }
  0xb9   : > { %5507 = vst [vmem:[#allocation84_spill] sm:$0xff] %v3677_v33  ;;  %v833_v57 = vmul.f32 %v2517_v22, %v5516_v8  ;;  %v5517_v43 = vld [vmem:[#allocation48_spill] sm:$0xff]  ;;  %v5518_v54 = vmax.f32 %v3530_v49, -9.2103405  ;;  %v5519_v35 = vmax.f32 %v3540_v28, -9.2103405  ;;  %v862_v42 = vsel %vm798_vm14, %v2511_v26, %v830_v29 }
  0xba   : > { %5509 = vst [vmem:[#allocation39_spill] sm:$0xff] %v3681_v19  ;;  %5511 = vst [vmem:[#allocation49_spill] sm:$0xff] %v3685_v46  ;;  %v834_v13 = vmul.f32 %v2519_v56, %v5517_v43  ;;  %v2527_v19 = vpop.eup %2526  ;;  %v5521_v16 = vld [vmem:[#allocation50_spill] sm:$0xff]  ;;  %v5522_v8 = vld [vmem:[#allocation52_spill] sm:$0xff]  ;;  %v5524_v49 = vmax.f32 %v3551_v45, -9.2103405 }
  0xbb   : > { %5514 = vst [vmem:[#allocation86_spill] sm:$0xff] %v3691_v34  ;;  %v3699_v63 = vmin.f32 %v5518_v54, -0.000100005  ;;  %v3703_v46 = vmin.f32 %v5519_v35, -0.000100005  ;;  %v835_v37 = vmul.f32 %v2521_v1, %v5521_v16  ;;  %v836_v43 = vmul.f32 %v2523_v58, %v5522_v8  ;;  %v5523_v34 = vld [vmem:[#allocation54_spill] sm:$0xff]  ;;  %v2529_v28 = vpop.eup %2528 }
  0xbc   : > { %v837_v33 = vmul.f32 %v2525_v5, %v5523_v34  ;;  %v863_v54 = vsel %vm799_vm15, %v2513_v3, %v831_v32  ;;  %v864_v35 = vsel %vm800_vm13, %v2515_v53, %v832_v9  ;;  %v5525_v44 = vmax.f32 %v3555_v21, -9.2103405  ;;  %v5526_v16 = vld [vmem:[#allocation90_spill] sm:$0xff]  ;;  %v2531_v34 = vpop.eup %2530  ;;  %v5527_v8 = vld [vmem:[#allocation91_spill] sm:$0xff]  ;;  %v5532_v55 = vld [vmem:[#allocation57_spill] sm:$0xff] }
  0xbd   : > { %5520 = vst [vmem:[#allocation51_spill] sm:$0xff] %v3703_v46  ;;  %v3718_v46 = vmin.f32 %v5524_v49, -0.000100005  ;;  %v3724_v29 = vmin.f32 %v629_v40, -0.000100005  ;;  %2542 = vrcp.f32 %v5526_v16  ;;  %vm811_vm14 = vcmp.ge.f32.partialorder %v3132_v59, 0.0  ;;  %v2533_v3 = vpop.eup %2532 }
  0xbe   : > { %v3722_v26 = vmin.f32 %v5525_v44, -0.000100005  ;;  %2544 = vrcp.f32 %v5527_v8  ;;  %v838_v50 = vmul.f32 %v2527_v19, %v5528_v47  ;;  %v865_v32 = vsel %vm801_vm12, %v2517_v22, %v833_v57  ;;  %v2535_v16 = vpop.eup %2534  ;;  %v5529_v8 = vld [vmem:[#allocation92_spill] sm:$0xff] }
  0xbf   : > { %v866_v49 = vsel %vm802_vm11, %v2519_v56, %v834_v13  ;;  %vm812_vm13 = vcmp.ge.f32.partialorder %v3136_v11, 0.0  ;;  %v3737_v40 = vsel %vm803_vm10, %v2521_v1, %v835_v37  ;;  %v894_v53 = vmax.f32 %v862_v42, 0.0001  ;;  %v5531_v37 = vld [vmem:[#allocation93_spill] sm:$0xff]  ;;  %v2537_v42 = vpop.eup %2536 }
  0xc0   : > { %v895_v9 = vmax.f32 %v863_v54, 0.0001  ;;  %v896_v44 = vmax.f32 %v864_v35, 0.0001  ;;  %2546 = vrcp.f32 %v5529_v8  ;;  %vm813_vm15 = vcmp.ge.f32.partialorder %v3140_v36, 0.0  ;;  %v5533_v54 = vld [vmem:[#allocation94_spill] sm:$0xff]  ;;  %v2539_v12 = vpop.eup %2538 }
  0xc1   : > { %v839_v57 = vmul.f32 %v2529_v28, %v5530_v52  ;;  %v3744_v13 = vsel %vm804_vm9, %v2523_v58, %v836_v43  ;;  %v3748_v2 = vsel %vm805_vm8, %v2525_v5, %v837_v33  ;;  %2548 = vrcp.f32 %v5531_v37  ;;  %v5534_v35 = vld [vmem:[#allocation58_spill] sm:$0xff]  ;;  %v5535_v5 = vld [vmem:[#allocation95_spill] sm:$0xff]  ;;  %v5537_v52 = vld [vmem:[#allocation96_spill] sm:$0xff] }
  0xc2   : > { %v840_v22 = vmul.f32 %v2531_v34, %v5532_v55  ;;  %v897_v56 = vmax.f32 %v865_v32, 0.0001  ;;  %v898_v1 = vmax.f32 %v866_v49, 0.0001  ;;  %2550 = vrcp.f32 %v5533_v54  ;;  %v5536_v33 = vld [vmem:[#allocation59_spill] sm:$0xff]  ;;  %v2541_v8 = vpop.eup %2540  ;;  %v5541_v37 = vld [vmem:[#allocation60_spill] sm:$0xff] }
  0xc3   : > { %v841_v47 = vmul.f32 %v2533_v3, %v5534_v35  ;;  %v3756_v6 = vsel %vm806_vm7, %v2527_v19, %v838_v50  ;;  %v899_v58 = vmax.f32 %v3737_v40, 0.0001  ;;  %2552 = vrcp.f32 %v5535_v5  ;;  %v5540_v40 = vld [vmem:[#allocation97_spill] sm:$0xff]  ;;  %v5542_v54 = vld [vmem:[#allocation98_spill] sm:$0xff]  ;;  %v5545_v35 = vld [vmem:[#allocation99_spill] sm:$0xff] }
  0xc4   : > { %vm814_vm8 = vcmp.ge.f32.partialorder %v3144_v27, 0.0  ;;  %v842_v43 = vmul.f32 %v2535_v16, %v5536_v33  ;;  %v900_v32 = vmax.f32 %v3744_v13, 0.0001  ;;  %v901_v49 = vmax.f32 %v3748_v2, 0.0001  ;;  %v5556_v36 = vld [vmem:[#allocation65_spill] sm:$0xff] }
  0xc5   : > { %2554 = vrcp.f32 %v5537_v52  ;;  %vm815_vm9 = vcmp.ge.f32.partialorder %v3148_v18, 0.0  ;;  %v3768_v17 = vsel %vm807_vm6, %v2529_v28, %v839_v57  ;;  %v3770_v19 = vmin.f32 %v894_v53, 0.9999  ;;  %v5547_v52 = vld [vmem:[#allocation100_spill] sm:$0xff] }
  0xc6   : > { %v3772_v50 = vmin.f32 %v895_v9, 0.9999  ;;  %2556 = vrcp.f32 %v5540_v40  ;;  %v843_v55 = vmul.f32 %v2537_v42, %v5541_v37  ;;  %v3778_v13 = vsel %vm808_vm5, %v2531_v34, %v840_v22  ;;  %v5550_v37 = vld [vmem:[#allocation63_spill] sm:$0xff] }
  0xc7   : > { %5538 = vst [vmem:[#allocation87_spill] sm:$0xff] %v3770_v19  ;;  %2558 = vrcp.f32 %v5542_v54  ;;  %vm816_vm7 = vcmp.ge.f32.partialorder %v3152_v39, 0.0  ;;  %v844_v28 = vmul.f32 %v2539_v12, %v5543_v24  ;;  %v3786_v53 = vsel %vm809_vm4, %v2533_v3, %v841_v47  ;;  %v2543_v57 = vpop.eup %2542 }
  0xc8   : > { %5539 = vst [vmem:[#allocation42_spill] sm:$0xff] %v3772_v50  ;;  %v3788_v9 = vmin.f32 %v896_v44, 0.9999  ;;  %2560 = vrcp.f32 %v5545_v35  ;;  %v845_v34 = vmul.f32 %v2541_v8, %v5546_v30  ;;  %v3794_v22 = vsel %vm810_vm3, %v2535_v16, %v842_v43  ;;  %v2545_v33 = vpop.eup %2544  ;;  %v5549_v44 = vld [vmem:[#allocation102_spill] sm:$0xff] }
  0xc9   : > { %2562 = vrcp.f32 %v5547_v52  ;;  %v3798_v40 = vmin.f32 %v897_v56, 0.9999  ;;  %v1118_v38 = vsub.f32 1.0, %v3770_v19  ;;  %v1119_v3 = vsub.f32 1.0, %v3772_v50 }
  0xca   : > { %5544 = vst [vmem:[#allocation88_spill] sm:$0xff] %v3788_v9  ;;  %2564 = vrcp.f32 %v5549_v44  ;;  %v3805_v47 = vsel %vm811_vm14, %v2537_v42, %v843_v55  ;;  %v2547_v43 = vpop.eup %2546  ;;  %vm817_vm3 = vcmp.ge.f32.partialorder %v3156_v51, 0.0  ;;  %v846_v56 = vmul.f32 %v2543_v57, %v5550_v37  ;;  %v5552_v42 = vld [vmem:[#allocation105_spill] sm:$0xff]  ;;  %v5553_v55 = vld [vmem:[#allocation64_spill] sm:$0xff] }
  0xcb   : > { %5548 = vst [vmem:[#allocation44_spill] sm:$0xff] %v3798_v40  ;;  %v3813_v54 = vsel %vm812_vm13, %v2539_v12, %v844_v28  ;;  %v3815_v24 = vmin.f32 %v898_v1, 0.9999  ;;  %v1120_v35 = vsub.f32 1.0, %v3788_v9  ;;  %v2549_v59 = vpop.eup %2548  ;;  %2566 = vrcp.f32 %v5552_v42  ;;  %v5555_v42 = vld [vmem:[#allocation106_spill] sm:$0xff] }
  0xcc   : > { %v847_v30 = vmul.f32 %v2545_v33, %v5553_v55  ;;  %v3822_v52 = vsel %vm813_vm15, %v2541_v8, %v845_v34  ;;  %v3825_v37 = vpop.eup %2550  ;;  %vm818_vm4 = vcmp.ge.f32.partialorder %v3160_v60, 0.0  ;;  %v3828_v11 = vmin.f32 %v899_v58, 0.9999 }
  0xcd   : > { %5551 = vst [vmem:[#allocation45_spill] sm:$0xff] %v3815_v24  ;;  %v1121_v1 = vsub.f32 1.0, %v3798_v40  ;;  %v1150_v12 = vmul.f32 %v1118_v38, %v1118_v38  ;;  %v1151_v28 = vmul.f32 %v1119_v3, %v1119_v3  ;;  %v3831_v16 = vpop.eup %2552  ;;  %2568 = vrcp.f32 %v5555_v42  ;;  %v5558_v42 = vld [vmem:[#allocation108_spill] sm:$0xff] }
  0xce   : > { %5554 = vst [vmem:[#allocation89_spill] sm:$0xff] %v3828_v11  ;;  %v848_v8 = vmul.f32 %v2547_v43, %v5556_v36  ;;  %v3841_v58 = vsel %vm814_vm8, %v2543_v57, %v846_v56  ;;  %v3843_v48 = vmin.f32 %v900_v32, 0.9999  ;;  %v1122_v38 = vsub.f32 1.0, %v3815_v24  ;;  %v3859_v32 = vld [vmem:[%s3060_s8 + $0xa8] sm:$0xff] }
  0xcf   : > { %v3837_v44 = vpop.eup %2554  ;;  %v1152_v3 = vmul.f32 %v1120_v35, %v1120_v35  ;;  %2570 = vrcp.f32 %v5558_v42  ;;  %v3851_v36 = vsel %vm815_vm9, %v2545_v33, %v847_v30  ;;  %v3854_v34 = vmin.f32 %v901_v49, 0.9999  ;;  %v5560_v30 = vld [vmem:[#allocation110_spill] sm:$0xff] }
  0xd0   : > { %5557 = vst [vmem:[#allocation47_spill] sm:$0xff] %v3843_v48  ;;  %v3846_v5 = vpop.eup %2556  ;;  %vm819_vm5 = vcmp.ge.f32.partialorder %v3859_v32, 0.0  ;;  %v1123_v57 = vsub.f32 1.0, %v3828_v11  ;;  %v1153_v56 = vmul.f32 %v1121_v1, %v1121_v1  ;;  %v1182_v35 = vmul.f32 %v1150_v12, %v3535_v4  ;;  %v5561_v42 = vld [vmem:[#allocation66_spill] sm:$0xff]  ;;  %v3877_v11 = vld [vmem:[%s3060_s8 + $0xb0] sm:$0xff] }
  0xd1   : > { %5559 = vst [vmem:[#allocation46_spill] sm:$0xff] %v3854_v34  ;;  %v3856_v27 = vpop.eup %2558  ;;  %v1183_v18 = vmul.f32 %v1151_v28, %v3546_v20  ;;  %2572 = vrcp.f32 %v5560_v30  ;;  %v849_v49 = vmul.f32 %v2549_v59, %v5561_v42  ;;  %v3871_v55 = vsel %vm816_vm7, %v2547_v43, %v848_v8  ;;  %v5564_v28 = vld [vmem:[#allocation72_spill] sm:$0xff]  ;;  %v5565_v8 = vld [vmem:[#allocation67_spill] sm:$0xff] }
  0xd2   : > { %v3865_v33 = vpop.eup %2560  ;;  %vm820_vm6 = vcmp.ge.f32.partialorder %v3877_v11, 0.0  ;;  %v5562_v4 = vmax.f32 %v3756_v6, 0.0001  ;;  %v1124_v1 = vsub.f32 1.0, %v3843_v48  ;;  %v1154_v12 = vmul.f32 %v1122_v38, %v1122_v38 }
  0xd3   : > { %v3874_v24 = vpop.eup %2562  ;;  %v1184_v39 = vmul.f32 %v1152_v3, %v5564_v28  ;;  %v850_v30 = vmul.f32 %v3825_v37, %v5565_v8  ;;  %v5566_v2 = vmax.f32 %v3768_v17, 0.0001  ;;  %v1125_v6 = vsub.f32 1.0, %v3854_v34  ;;  %v5570_v8 = vld [vmem:[#allocation68_spill] sm:$0xff] }
  0xd4   : > { %v3882_v20 = vmin.f32 %v5562_v4, 0.9999  ;;  %v3886_v43 = vpop.eup %2564  ;;  %v1155_v4 = vmul.f32 %v1123_v57, %v1123_v57  ;;  %v1185_v48 = vmul.f32 %v1153_v56, %v3580_v14  ;;  %v1310_v9 = vsel %vm958_vm0, %v1182_v35, 0.0  ;;  %v3915_v56 = vld [vmem:[%s3060_s8 + $0xb8] sm:$0xff] }
  0xd5   : > { %v3893_v40 = vmin.f32 %v5566_v2, 0.9999  ;;  %v1311_v28 = vsel %vm959_vm1, %v1183_v18, 0.0  ;;  %v3901_v50 = vpop.eup %2566  ;;  %v851_v42 = vmul.f32 %v3831_v16, %v5570_v8  ;;  %v3907_v17 = vsel %vm817_vm3, %v2549_v59, %v849_v49  ;;  %v5574_v49 = vld [vmem:[#allocation69_spill] sm:$0xff]  ;;  %v5577_v3 = vld [vmem:[#allocation8_spill] sm:$0xff] }
  0xd6   : > { %5563 = vst [vmem:[#allocation48_spill] sm:$0xff] %v3882_v20  ;;  %v5571_v14 = vmax.f32 %v3778_v13, 0.0001  ;;  %vm821_vm0 = vcmp.ge.f32.partialorder %v3915_v56, 0.0  ;;  %v1126_v35 = vsub.f32 1.0, %v3882_v20  ;;  %v1156_v18 = vmul.f32 %v1124_v1, %v1124_v1  ;;  %v3936_v20 = vld [vmem:[%s3060_s8 + $0xc0] sm:$0xff] }
  0xd7   : > { %5567 = vst [vmem:[#allocation50_spill] sm:$0xff] %v3893_v40  ;;  %v1186_v38 = vmul.f32 %v1154_v12, %v3591_v10  ;;  %v1312_v51 = vsel %vm960_vm2, %v1184_v39, 0.0  ;;  %v3922_v59 = vpop.eup %2568  ;;  %v852_v8 = vmul.f32 %v3837_v44, %v5574_v49  ;;  %v3929_v13 = vsel %vm818_vm4, %v3825_v37, %v850_v30  ;;  %v5579_v30 = vld [vmem:[#allocation70_spill] sm:$0xff] }
  0xd8   : > { %v3912_v57 = vmin.f32 %v5571_v14, 0.9999  ;;  %v5575_v14 = vmax.f32 %v3786_v53, 0.0001  ;;  %v1342_v1 = vadd.f32 %v1311_v28, %v1310_v9  ;;  %vm822_vm1 = vcmp.ge.f32.partialorder %v3936_v20, 0.0  ;;  %v3988_v9 = vld [vmem:[%s3060_s8 + $0xd0] sm:$0xff] }
  0xd9   : > { %v1127_v10 = vsub.f32 1.0, %v3893_v40  ;;  %v1157_v12 = vmul.f32 %v1125_v6, %v1125_v6  ;;  %v1187_v39 = vmul.f32 %v1155_v4, %v3600_v31  ;;  %vm5578_vm2 = vcmp.eq.f32.partialorder %v5577_v3, 1.0  ;;  %v3943_v37 = vpop.eup %2570  ;;  %v5582_v4 = vld [vmem:[#allocation9_spill] sm:$0xff] }
  0xda   : > { %5572 = vst [vmem:[#allocation52_spill] sm:$0xff] %v3912_v57  ;;  %v3933_v2 = vmin.f32 %v5575_v14, 0.9999  ;;  %v1313_v60 = vsel %vm5578_vm2, %v1185_v48, 0.0  ;;  %v853_v53 = vmul.f32 %v3846_v5, %v5579_v30  ;;  %v5580_v28 = vmax.f32 %v3794_v22, 0.0001 }
  0xdb   : > { %v1343_v14 = vadd.f32 %v1342_v1, %v1312_v51  ;;  %v1128_v6 = vsub.f32 1.0, %v3912_v57  ;;  %v1158_v40 = vmul.f32 %v1126_v35, %v1126_v35  ;;  %v1188_v31 = vmul.f32 %v1156_v18, %v3612_v7  ;;  %v3956_v3 = vpop.eup %2572 }
  0xdc   : > { %5576 = vst [vmem:[#allocation54_spill] sm:$0xff] %v3933_v2  ;;  %v3950_v49 = vmin.f32 %v5580_v28, 0.9999  ;;  %vm5583_vm10 = vcmp.eq.f32.partialorder %v5582_v4, 1.0  ;;  %v3961_v30 = vsel %vm819_vm5, %v3831_v16, %v851_v42  ;;  %v5584_v51 = vmax.f32 %v3805_v47, 0.0001 }
  0xdd   : > { %v1314_v48 = vsel %vm5583_vm10, %v1186_v38, 0.0  ;;  %v1344_v35 = vadd.f32 %v1343_v14, %v1313_v60  ;;  %v3969_v28 = vld [vmem:[%s3060_s8 + $0xc8] sm:$0xff]  ;;  %v1129_v7 = vsub.f32 1.0, %v3933_v2  ;;  %v1159_v18 = vmul.f32 %v1127_v10, %v1127_v10  ;;  %v5588_v42 = vld [vmem:[#allocation71_spill] sm:$0xff]  ;;  %v5596_v2 = vld [vmem:[#allocation12_spill] sm:$0xff] }
  0xde   : > { %5581 = vst [vmem:[#allocation90_spill] sm:$0xff] %v3950_v49  ;;  %v3966_v1 = vmin.f32 %v5584_v51, 0.9999  ;;  %vm823_vm11 = vcmp.ge.f32.partialorder %v3969_v28, 0.0  ;;  %v1189_v38 = vmul.f32 %v1157_v12, %v3618_v15  ;;  %v5586_v4 = vld [vmem:[#allocation10_spill] sm:$0xff]  ;;  %v854_v22 = vmul.f32 %v3856_v27, %v5588_v42 }
  0xdf   : > { %vm5587_vm12 = vcmp.eq.f32.partialorder %v5586_v4, 1.0  ;;  %v3981_v47 = vsel %vm820_vm6, %v3837_v44, %v852_v8  ;;  %v5589_v60 = vmax.f32 %v3813_v54, 0.0001  ;;  %v1345_v51 = vadd.f32 %v1344_v35, %v1314_v48  ;;  %v5593_v44 = vld [vmem:[#allocation73_spill] sm:$0xff] }
  0xe0   : > { %5585 = vst [vmem:[#allocation91_spill] sm:$0xff] %v3966_v1  ;;  %v1315_v16 = vsel %vm5587_vm12, %v1187_v39, 0.0  ;;  %vm824_vm14 = vcmp.ge.f32.partialorder %v3988_v9, 0.0  ;;  %v1130_v15 = vsub.f32 1.0, %v3950_v49  ;;  %v1160_v10 = vmul.f32 %v1128_v6, %v1128_v6  ;;  %v5591_v39 = vld [vmem:[#allocation11_spill] sm:$0xff] }
  0xe1   : > { %v3985_v14 = vmin.f32 %v5589_v60, 0.9999  ;;  %v1190_v12 = vmul.f32 %v1158_v40, %v3626_v62  ;;  %vm5592_vm13 = vcmp.eq.f32.partialorder %v5591_v39, 1.0  ;;  %v855_v8 = vmul.f32 %v3865_v33, %v5593_v44  ;;  %v4036_v44 = vld [vmem:[%s3060_s8 + $0xe0] sm:$0xff] }
  0xe2   : > { %v1316_v4 = vsel %vm5592_vm13, %v1188_v31, 0.0  ;;  %v915_v54 = vmax.f32 %v3961_v30, 0.0001  ;;  %v5594_v48 = vmax.f32 %v3822_v52, 0.0001  ;;  %v1346_v42 = vadd.f32 %v1345_v51, %v1315_v16  ;;  %v4017_v51 = vld [vmem:[%s3060_s8 + $0xd8] sm:$0xff] }
  0xe3   : > { %5590 = vst [vmem:[#allocation55_spill] sm:$0xff] %v3985_v14  ;;  %v1131_v60 = vsub.f32 1.0, %v3966_v1  ;;  %v1161_v49 = vmul.f32 %v1129_v7, %v1129_v7  ;;  %v1191_v6 = vmul.f32 %v1159_v18, %v3630_v41  ;;  %vm5597_vm15 = vcmp.eq.f32.partialorder %v5596_v2, 1.0  ;;  %v5600_v18 = vld [vmem:[#allocation13_spill] sm:$0xff] }
  0xe4   : > { %v4000_v35 = vmin.f32 %v5594_v48, 0.9999  ;;  %v1317_v62 = vsel %vm5597_vm15, %v1189_v38, 0.0  ;;  %v4009_v40 = vsel %vm821_vm0, %v3846_v5, %v853_v53  ;;  %v916_v31 = vmax.f32 %v3981_v47, 0.0001  ;;  %v5602_v53 = vld [vmem:[#allocation75_spill] sm:$0xff] }
  0xe5   : > { %v5598_v52 = vmax.f32 %v3841_v58, 0.0001  ;;  %v1347_v16 = vadd.f32 %v1346_v42, %v1316_v4  ;;  %vm825_vm8 = vcmp.ge.f32.partialorder %v4017_v51, 0.0  ;;  %v1132_v41 = vsub.f32 1.0, %v3985_v14  ;;  %v5709_v14 = vld [vmem:[#allocation35_spill] sm:$0xff] }
  0xe6   : > { %5595 = vst [vmem:[#allocation92_spill] sm:$0xff] %v4000_v35  ;;  %v1162_v2 = vmul.f32 %v1130_v15, %v1130_v15  ;;  %v1192_v7 = vmul.f32 %v1160_v10, %v3651_v0  ;;  %vm5601_vm9 = vcmp.eq.f32.partialorder %v5600_v18, 1.0  ;;  %v856_v38 = vmul.f32 %v3874_v24, %v5602_v53  ;;  %v5610_v53 = vld [vmem:[#allocation15_spill] sm:$0xff] }
  0xe7   : > { %v4014_v30 = vmin.f32 %v5598_v52, 0.9999  ;;  %v1318_v5 = vsel %vm5601_vm9, %v1190_v12, 0.0  ;;  %v4029_v58 = vsel %vm822_vm1, %v3856_v27, %v854_v22  ;;  %v5603_v47 = vmax.f32 %v3851_v36, 0.0001  ;;  %v5605_v12 = vld [vmem:[#allocation14_spill] sm:$0xff] }
  0xe8   : > { %v1348_v4 = vadd.f32 %v1347_v16, %v1317_v62  ;;  %vm826_vm7 = vcmp.ge.f32.partialorder %v4036_v44, 0.0  ;;  %v1133_v0 = vsub.f32 1.0, %v4000_v35  ;;  %v1163_v15 = vmul.f32 %v1131_v60, %v1131_v60  ;;  %v5607_v27 = vld [vmem:[#allocation77_spill] sm:$0xff] }
  0xe9   : > { %5599 = vst [vmem:[#allocation56_spill] sm:$0xff] %v4014_v30  ;;  %v4033_v39 = vmin.f32 %v5603_v47, 0.9999  ;;  %v1193_v10 = vmul.f32 %v1161_v49, %v3656_v25  ;;  %vm5606_vm3 = vcmp.eq.f32.partialorder %v5605_v12, 1.0  ;;  %v857_v22 = vmul.f32 %v3886_v43, %v5607_v27  ;;  %v4063_v47 = vld [vmem:[%s3060_s8 + $0xe8] sm:$0xff] }
  0xea   : > { %v1319_v48 = vsel %vm5606_vm3, %v1191_v6, 0.0  ;;  %v917_v36 = vmax.f32 %v4009_v40, 0.0001  ;;  %v5608_v42 = vmax.f32 %v3871_v55, 0.0001  ;;  %v1349_v52 = vadd.f32 %v1348_v4, %v1318_v5  ;;  %v5615_v4 = vld [vmem:[#allocation16_spill] sm:$0xff] }
  0xeb   : > { %5604 = vst [vmem:[#allocation93_spill] sm:$0xff] %v4033_v39  ;;  %v1134_v16 = vsub.f32 1.0, %v4014_v30  ;;  %v1164_v18 = vmul.f32 %v1132_v41, %v1132_v41  ;;  %v1194_v60 = vmul.f32 %v1162_v2, %v3660_v61  ;;  %vm5611_vm4 = vcmp.eq.f32.partialorder %v5610_v53, 1.0  ;;  %v5614_v2 = vld [vmem:[#allocation38_spill] sm:$0xff]  ;;  %v5620_v53 = vld [vmem:[#allocation17_spill] sm:$0xff] }
  0xec   : > { %v4048_v62 = vmin.f32 %v5608_v42, 0.9999  ;;  %v1320_v25 = vsel %vm5611_vm4, %v1192_v7, 0.0  ;;  %v887_v49 = vsel %vm823_vm11, %v3865_v33, %v855_v8  ;;  %v918_v6 = vmax.f32 %v4029_v58, 0.0001  ;;  %v5617_v8 = vld [vmem:[#allocation79_spill] sm:$0xff] }
  0xed   : > { %v5612_v55 = vmax.f32 %v3907_v17, 0.0001  ;;  %v1350_v5 = vadd.f32 %v1349_v52, %v1319_v48  ;;  %vm827_vm5 = vcmp.ge.f32.partialorder %v4063_v47, 0.0  ;;  %v1135_v61 = vsub.f32 1.0, %v4033_v39  ;;  %v4080_v42 = vld [vmem:[%s3060_s8 + $0xf0] sm:$0xff]  ;;  %v5625_v39 = vld [vmem:[#allocation18_spill] sm:$0xff] }
  0xee   : > { %5609 = vst [vmem:[#allocation57_spill] sm:$0xff] %v4048_v62  ;;  %v1165_v41 = vmul.f32 %v1133_v0, %v1133_v0  ;;  %v1195_v7 = vmul.f32 %v1163_v15, %v5614_v2  ;;  %vm5616_vm6 = vcmp.eq.f32.partialorder %v5615_v4, 1.0  ;;  %v858_v58 = vmul.f32 %v3901_v50, %v5617_v8  ;;  %v4084_v0 = vld [vmem:[%s3060_s8 + $0xf8] sm:$0xff]  ;;  %v2666_v30 = vld [vmem:[%s3060_s8 + $0x88] sm:$0xff] }
  0xef   : > { %v4060_v40 = vmin.f32 %v5612_v55, 0.9999  ;;  %v1321_v33 = vsel %vm5616_vm6, %v1193_v10, 0.0  ;;  %v888_v17 = vsel %vm824_vm14, %v3874_v24, %v856_v38  ;;  %v5618_v12 = vmax.f32 %v3929_v13, 0.0001  ;;  %v5622_v13 = vld [vmem:[#allocation81_spill] sm:$0xff] }
  0xf0   : > { %v1351_v27 = vadd.f32 %v1350_v5, %v1320_v25  ;;  %vm828_vm0 = vcmp.ge.f32.partialorder %v4080_v42, 0.0  ;;  %vm829_vm1 = vcmp.ge.f32.partialorder %v4084_v0, 0.0  ;;  %v1136_v15 = vsub.f32 1.0, %v4048_v62  ;;  %v5624_v8 = vld [vmem:[#allocation84_spill] sm:$0xff]  ;;  %v2665_v62 = vld [vmem:[%s3060_s8 + $0x80] sm:$0xff] }
  0xf1   : > { %5613 = vst [vmem:[#allocation94_spill] sm:$0xff] %v4060_v40  ;;  %v4077_v48 = vmin.f32 %v5618_v12, 0.9999  ;;  %v1166_v10 = vmul.f32 %v1134_v16, %v1134_v16  ;;  %v1196_v52 = vmul.f32 %v1164_v18, %v3670_v23  ;;  %vm5621_vm2 = vcmp.eq.f32.partialorder %v5620_v53, 1.0 }
  0xf2   : > { %v1322_v24 = vsel %vm5621_vm2, %v1194_v60, 0.0  ;;  %v859_v38 = vmul.f32 %v3922_v59, %v5622_v13  ;;  %v919_v25 = vmax.f32 %v887_v49, 0.0001  ;;  %v4093_v55 = vmin.f32 %v915_v54, 0.9999  ;;  %v5629_v13 = vld [vmem:[#allocation19_spill] sm:$0xff] }
  0xf3   : > { %5619 = vst [vmem:[#allocation58_spill] sm:$0xff] %v4077_v48  ;;  %v1352_v5 = vadd.f32 %v1351_v27, %v1321_v33  ;;  %v1137_v2 = vsub.f32 1.0, %v4060_v40  ;;  %v1167_v4 = vmul.f32 %v1135_v61, %v1135_v61  ;;  %v1197_v12 = vmul.f32 %v1165_v41, %v5624_v8  ;;  %v5628_v33 = vld [vmem:[#allocation39_spill] sm:$0xff]  ;;  %v5636_v8 = vld [vmem:[#allocation85_spill] sm:$0xff] }
  0xf4   : > { %5623 = vst [vmem:[#allocation95_spill] sm:$0xff] %v4093_v55  ;;  %vm5626_vm10 = vcmp.eq.f32.partialorder %v5625_v39, 1.0  ;;  %v889_v23 = vsel %vm825_vm8, %v3886_v43, %v857_v22  ;;  %v920_v18 = vmax.f32 %v888_v17, 0.0001  ;;  %v4102_v60 = vmin.f32 %v916_v31, 0.9999 }
  0xf5   : > { %v1323_v16 = vsel %vm5626_vm10, %v1195_v7, 0.0  ;;  %v1353_v53 = vadd.f32 %v1352_v5, %v1322_v24  ;;  %v1138_v54 = vsub.f32 1.0, %v4077_v48  ;;  %v1168_v49 = vmul.f32 %v1136_v15, %v1136_v15  ;;  %v5631_v41 = vld [vmem:[#allocation83_spill] sm:$0xff]  ;;  %v5633_v24 = vld [vmem:[#allocation49_spill] sm:$0xff]  ;;  %v5634_v5 = vld [vmem:[#allocation20_spill] sm:$0xff] }
  0xf6   : > { %5627 = vst [vmem:[#allocation59_spill] sm:$0xff] %v4102_v60  ;;  %v1198_v27 = vmul.f32 %v1166_v10, %v5628_v33  ;;  %vm5630_vm11 = vcmp.eq.f32.partialorder %v5629_v13, 1.0  ;;  %v860_v39 = vmul.f32 %v3943_v37, %v5631_v41  ;;  %v890_v7 = vsel %vm826_vm7, %v3901_v50, %v858_v58  ;;  %v5638_v58 = vld [vmem:[#allocation86_spill] sm:$0xff]  ;;  %v2664_v48 = vld [vmem:[%s3060_s8 + $0x78] sm:$0xff] }
  0xf7   : > { %v1324_v61 = vsel %vm5630_vm11, %v1196_v52, 0.0  ;;  %v4113_v43 = vmin.f32 %v917_v36, 0.9999  ;;  %v1354_v31 = vadd.f32 %v1353_v53, %v1323_v16  ;;  %v1139_v22 = vsub.f32 1.0, %v4093_v55  ;;  %v5639_v53 = vld [vmem:[#allocation21_spill] sm:$0xff] }
  0xf8   : > { %v1169_v17 = vmul.f32 %v1137_v2, %v1137_v2  ;;  %v1199_v15 = vmul.f32 %v1167_v4, %v5633_v24  ;;  %vm5635_vm12 = vcmp.eq.f32.partialorder %v5634_v5, 1.0  ;;  %v861_v52 = vmul.f32 %v3956_v3, %v5636_v8  ;;  %v5699_v55 = vld [vmem:[#allocation117_spill] sm:$0xff] }
  0xf9   : > { %5632 = vst [vmem:[#allocation96_spill] sm:$0xff] %v4113_v43  ;;  %v1325_v10 = vsel %vm5635_vm12, %v1197_v12, 0.0  ;;  %v921_v33 = vmax.f32 %v889_v23, 0.0001  ;;  %v4121_v13 = vmin.f32 %v918_v6, 0.9999  ;;  %v1355_v41 = vadd.f32 %v1354_v31, %v1324_v61 }
  0xfa   : > { %v1140_v50 = vsub.f32 1.0, %v4102_v60  ;;  %v1170_v36 = vmul.f32 %v1138_v54, %v1138_v54  ;;  %v1200_v16 = vmul.f32 %v1168_v49, %v5638_v58  ;;  %vm5640_vm14 = vcmp.eq.f32.partialorder %v5639_v53, 1.0  ;;  %v5642_v31 = vld [vmem:[#allocation22_spill] sm:$0xff]  ;;  %v5651_v53 = vld [vmem:[#allocation24_spill] sm:$0xff] }
  0xfb   : > { %5637 = vst [vmem:[#allocation97_spill] sm:$0xff] %v4121_v13  ;;  %v1326_v2 = vsel %vm5640_vm14, %v1198_v27, 0.0  ;;  %v891_v4 = vsel %vm827_vm5, %v3922_v59, %v859_v38  ;;  %v922_v12 = vmax.f32 %v890_v7, 0.0001  ;;  %v4130_v24 = vmin.f32 %v919_v25, 0.9999 }
  0xfc   : > { %v1356_v5 = vadd.f32 %v1355_v41, %v1325_v10  ;;  %v1141_v6 = vsub.f32 1.0, %v4113_v43  ;;  %v1171_v23 = vmul.f32 %v1139_v22, %v1139_v22  ;;  %v1201_v61 = vmul.f32 %v1169_v17, %v3699_v63  ;;  %v5645_v22 = vld [vmem:[#allocation51_spill] sm:$0xff] }
  0xfd   : > { %5641 = vst [vmem:[#allocation60_spill] sm:$0xff] %v4130_v24  ;;  %vm5643_vm13 = vcmp.eq.f32.partialorder %v5642_v31, 1.0  ;;  %v892_v49 = vsel %vm828_vm0, %v3943_v37, %v860_v39  ;;  %v893_v59 = vsel %vm829_vm1, %v3956_v3, %v861_v52  ;;  %v4142_v38 = vmin.f32 %v920_v18, 0.9999  ;;  %v5646_v63 = vld [vmem:[#allocation23_spill] sm:$0xff] }
  0xfe   : > { %v1327_v54 = vsel %vm5643_vm13, %v1199_v15, 0.0  ;;  %v1357_v25 = vadd.f32 %v1356_v5, %v1326_v2  ;;  %v1142_v27 = vsub.f32 1.0, %v4121_v13  ;;  %v1172_v7 = vmul.f32 %v1140_v50, %v1140_v50  ;;  %v5648_v15 = vld [vmem:[#allocation40_spill] sm:$0xff] }
  0xff   : > { %5644 = vst [vmem:[#allocation98_spill] sm:$0xff] %v4142_v38  ;;  %v1202_v10 = vmul.f32 %v1170_v36, %v5645_v22  ;;  %vm5647_vm15 = vcmp.eq.f32.partialorder %v5646_v63, 1.0  ;;  %v5649_v8 = vmax.f32 %v5648_v15, -9.2103405  ;;  %v923_v58 = vmax.f32 %v891_v4, 0.0001 }
 0x100   : > { %v1328_v17 = vsel %vm5647_vm15, %v1200_v16, 0.0  ;;  %v4150_v37 = vmin.f32 %v921_v33, 0.9999  ;;  %v1358_v39 = vadd.f32 %v1357_v25, %v1327_v54  ;;  %v1143_v3 = vsub.f32 1.0, %v4130_v24  ;;  %v5654_v4 = vld [vmem:[#allocation25_spill] sm:$0xff]  ;;  %v5656_v25 = vld [vmem:[#allocation80_spill] sm:$0xff] }
 0x101   : > { %v662_v41 = vmin.f32 %v5649_v8, -0.000100005  ;;  %v1173_v18 = vmul.f32 %v1141_v6, %v1141_v6  ;;  %v1203_v52 = vmul.f32 %v1171_v23, %v3718_v46  ;;  %vm5652_vm8 = vcmp.eq.f32.partialorder %v5651_v53, 1.0  ;;  %v5657_v6 = vld [vmem:[#allocation53_spill] sm:$0xff]  ;;  %v5659_v23 = vld [vmem:[#allocation76_spill] sm:$0xff] }
 0x102   : > { %5650 = vst [vmem:[#allocation61_spill] sm:$0xff] %v4150_v37  ;;  %v1329_v50 = vsel %vm5652_vm8, %v1201_v61, 0.0  ;;  %v924_v2 = vmax.f32 %v892_v49, 0.0001  ;;  %v925_v36 = vmax.f32 %v893_v59, 0.0001  ;;  %v1359_v16 = vadd.f32 %v1358_v39, %v1328_v17 }
 0x103   : > { %v4156_v5 = vmin.f32 %v922_v12, 0.9999  ;;  %v1144_v31 = vsub.f32 1.0, %v4142_v38  ;;  %v1174_v22 = vmul.f32 %v1142_v27, %v1142_v27  ;;  %v1204_v33 = vmul.f32 %v1172_v7, %v3722_v26  ;;  %v5662_v26 = vld [vmem:[#allocation26_spill] sm:$0xff] }
 0x104   : > { %vm5655_vm9 = vcmp.eq.f32.partialorder %v5654_v4, 1.0  ;;  %v5658_v63 = vmin.f32 %v5657_v6, 0.0  ;;  %v5660_v61 = vmax.f32 %v5659_v23, -9.2103405  ;;  %v4169_v59 = vmin.f32 %v923_v58, 0.9999 }
 0x105   : > { %5653 = vst [vmem:[#allocation99_spill] sm:$0xff] %v4156_v5  ;;  %v1330_v54 = vsel %vm5655_vm9, %v1202_v10, 0.0  ;;  %v1360_v12 = vadd.f32 %v1359_v16, %v1329_v50  ;;  %v1145_v17 = vsub.f32 1.0, %v4150_v37  ;;  %v1175_v8 = vmul.f32 %v1143_v3, %v1143_v3  ;;  %v5664_v10 = vld [vmem:[#allocation41_spill] sm:$0xff]  ;;  %v5668_v16 = vld [vmem:[#allocation27_spill] sm:$0xff] }
 0x106   : > { %v4165_v46 = vsub.f32 %v5658_v63, %v5656_v25  ;;  %v663_v49 = vmin.f32 %v5660_v61, -0.000100005  ;;  %5661 = vst [vmem:[#allocation62_spill] sm:$0xff] %v4169_v59  ;;  %v1205_v27 = vmul.f32 %v1173_v18, %v3724_v29  ;;  %vm5663_vm7 = vcmp.eq.f32.partialorder %v5662_v26, 1.0  ;;  %v5670_v61 = vld [vmem:[#allocation82_spill] sm:$0xff]  ;;  %v5671_v18 = vld [vmem:[#allocation37_spill] sm:$0xff] }
 0x107   : > { %v1331_v7 = vsel %vm5663_vm7, %v1203_v52, 0.0  ;;  %v5665_v39 = vmax.f32 %v5664_v10, -9.2103405  ;;  %v4177_v4 = vmin.f32 %v924_v2, 0.9999  ;;  %v1361_v6 = vadd.f32 %v1360_v12, %v1330_v54  ;;  %v5672_v52 = vld [vmem:[#allocation43_spill] sm:$0xff] }
 0x108   : > { %v4179_v25 = vmin.f32 %v925_v36, 0.9999  ;;  %v1146_v58 = vsub.f32 1.0, %v4156_v5  ;;  %v1176_v63 = vmul.f32 %v1144_v31, %v1144_v31  ;;  %v1206_v50 = vmul.f32 %v1174_v22, %v662_v41  ;;  %v5674_v54 = vld [vmem:[#allocation28_spill] sm:$0xff]  ;;  %v5676_v31 = vld [vmem:[#allocation78_spill] sm:$0xff] }
 0x109   : > { %v664_v53 = vmin.f32 %v5665_v39, -0.000100005  ;;  %5666 = vst [vmem:[#allocation100_spill] sm:$0xff] %v4177_v4  ;;  %vm5669_vm3 = vcmp.eq.f32.partialorder %v5668_v16, 1.0  ;;  %v635_v29 = vmax.f32 %v5670_v61, -9.2103405  ;;  %v1362_v39 = vadd.f32 %v1361_v6, %v1331_v7 }
 0x10a   : > { %5667 = vst [vmem:[#allocation102_spill] sm:$0xff] %v4179_v25  ;;  %v1332_v3 = vsel %vm5669_vm3, %v1204_v33, 0.0  ;;  %v636_v26 = vmax.f32 %v5671_v18, -9.2103405  ;;  %v5673_v37 = vmax.f32 %v5672_v52, -9.2103405  ;;  %v1177_v36 = vmul.f32 %v1145_v17, %v1145_v17 }
 0x10b   : > { %v1147_v2 = vsub.f32 1.0, %v4169_v59  ;;  %v1207_v24 = vmul.f32 %v1175_v8, %v663_v49  ;;  %vm5675_vm4 = vcmp.eq.f32.partialorder %v5674_v54, 1.0  ;;  %v637_v41 = vmax.f32 %v4165_v46, -9.2103405  ;;  %v5678_v6 = vld [vmem:[#allocation29_spill] sm:$0xff]  ;;  %v5680_v59 = vld [vmem:[#allocation30_spill] sm:$0xff] }
 0x10c   : > { %v665_v38 = vmin.f32 %v5673_v37, -0.000100005  ;;  %v1333_v12 = vsel %vm5675_vm4, %v1205_v27, 0.0  ;;  %v5677_v22 = vmax.f32 %v5676_v31, -9.2103405  ;;  %v1148_v16 = vsub.f32 1.0, %v4177_v4 }
 0x10d   : > { %v1363_v5 = vadd.f32 %v1362_v39, %v1332_v3  ;;  %v1149_v13 = vsub.f32 1.0, %v4179_v25  ;;  %v1178_v37 = vmul.f32 %v1146_v58, %v1146_v58  ;;  %v1208_v7 = vmul.f32 %v1176_v63, %v664_v53  ;;  %v4201_v39 = vld [vmem:[%s3060_s8] sm:$0xff]  ;;  %v5692_v25 = vld [vmem:[#allocation112_spill] sm:$0xff] }
 0x10e   : > { %v666_v33 = vmin.f32 %v5677_v22, -0.000100005  ;;  %vm5679_vm5 = vcmp.eq.f32.partialorder %v5678_v6, 1.0  ;;  %v667_v8 = vmin.f32 %v635_v29, -0.000100005  ;;  %v1179_v27 = vmul.f32 %v1147_v2, %v1147_v2  ;;  %v5682_v53 = vld [vmem:[#allocation101_spill] sm:$0xff] }
 0x10f   : > { %v1334_v17 = vsel %vm5679_vm5, %v1206_v50, 0.0  ;;  %v1364_v49 = vadd.f32 %v1363_v5, %v1333_v12  ;;  %v1209_v54 = vmul.f32 %v1177_v36, %v665_v38  ;;  %vm5681_vm6 = vcmp.eq.f32.partialorder %v5680_v59, 1.0  ;;  %v5683_v29 = vld [vmem:[#allocation31_spill] sm:$0xff]  ;;  %v5686_v12 = vld [vmem:[#allocation104_spill] sm:$0xff] }
 0x110   : > { %v1335_v22 = vsel %vm5681_vm6, %v1207_v24, 0.0  ;;  %v668_v43 = vmin.f32 %v636_v26, -0.000100005  ;;  %v669_v4 = vmin.f32 %v637_v41, -0.000100005  ;;  %v1180_v63 = vmul.f32 %v1148_v16, %v1148_v16  ;;  %v2650_v24 = vld [vmem:[%s3060_s8 + $0x8] sm:$0xff] }
 0x111   : > { %v1365_v3 = vadd.f32 %v1364_v49, %v1334_v17  ;;  %v1181_v5 = vmul.f32 %v1149_v13, %v1149_v13  ;;  %v1210_v50 = vmul.f32 %v1178_v37, %v666_v33  ;;  %vm5684_vm0 = vcmp.eq.f32.partialorder %v5683_v29, 1.0  ;;  %v5685_v26 = vld [vmem:[#allocation103_spill] sm:$0xff]  ;;  %v2652_v6 = vld [vmem:[%s3060_s8 + $0x18] sm:$0xff]  ;;  %v2653_v33 = vld [vmem:[%s3060_s8 + $0x20] sm:$0xff] }
 0x112   : > { %v1336_v38 = vsel %vm5684_vm0, %v1208_v7, 0.0  ;;  %v671_v2 = vsub.f32 %v5685_v26, %v2650_v24  ;;  %v2651_v36 = vld [vmem:[%s3060_s8 + $0x10] sm:$0xff]  ;;  %v1211_v58 = vmul.f32 %v1179_v27, %v667_v8  ;;  %v5688_v16 = vld [vmem:[#allocation32_spill] sm:$0xff]  ;;  %v5690_v37 = vld [vmem:[#allocation109_spill] sm:$0xff]  ;;  %vm5710_vm11 = vcmp.eq.f32.partialorder %v5709_v14, 1.0 }
 0x113   : > { %v1366_v59 = vadd.f32 %v1365_v3, %v1335_v22  ;;  %v672_v41 = vsub.f32 %v5686_v12, %v2651_v36  ;;  %v5687_v17 = vld [vmem:[#allocation107_spill] sm:$0xff]  ;;  %vm5689_vm1 = vcmp.eq.f32.partialorder %v5688_v16, 1.0  ;;  %v674_v7 = vsub.f32 %v5690_v37, %v2653_v33  ;;  %v2654_v22 = vld [vmem:[%s3060_s8 + $0x28] sm:$0xff]  ;;  %v2656_v12 = vld [vmem:[%s3060_s8 + $0x38] sm:$0xff] }
 0x114   : > { %v673_v49 = vsub.f32 %v5687_v17, %v2652_v6  ;;  %v1337_v13 = vsel %vm5689_vm1, %v1209_v54, 0.0  ;;  %v5691_v3 = vld [vmem:[#allocation111_spill] sm:$0xff]  ;;  %v5693_v6 = vld [vmem:[#allocation113_spill] sm:$0xff]  ;;  %v5694_v17 = vld [vmem:[#allocation114_spill] sm:$0xff]  ;;  %v1212_v16 = vmul.f32 %v1180_v63, %v668_v43  ;;  %v1213_v33 = vmul.f32 %v1181_v5, %v669_v4 }
 0x115   : > { %v675_v29 = vsub.f32 %v5691_v3, %v2654_v22  ;;  %v1367_v24 = vadd.f32 %v1366_v59, %v1336_v38  ;;  %v2655_v26 = vld [vmem:[%s3060_s8 + $0x30] sm:$0xff]  ;;  %v677_v8 = vsub.f32 %v5693_v6, %v2656_v12  ;;  %v2657_v27 = vld [vmem:[%s3060_s8 + $0x40] sm:$0xff]  ;;  %v2658_v3 = vld [vmem:[%s3060_s8 + $0x48] sm:$0xff] }
 0x116   : > { %v676_v36 = vsub.f32 %v5692_v25, %v2655_v26  ;;  %v678_v54 = vsub.f32 %v5694_v17, %v2657_v27  ;;  %v5695_v37 = vld [vmem:[#allocation33_spill] sm:$0xff]  ;;  %v5697_v38 = vld [vmem:[#allocation115_spill] sm:$0xff]  ;;  %v5698_v26 = vld [vmem:[#allocation116_spill] sm:$0xff] }
 0x117   : > { %vm5696_vm2 = vcmp.eq.f32.partialorder %v5695_v37, 1.0  ;;  %v679_v59 = vsub.f32 %v5697_v38, %v2658_v3  ;;  %v1368_v60 = vadd.f32 %v1367_v24, %v1337_v13  ;;  %v2659_v25 = vld [vmem:[%s3060_s8 + $0x50] sm:$0xff]  ;;  %v2660_v6 = vld [vmem:[%s3060_s8 + $0x58] sm:$0xff]  ;;  %v2661_v17 = vld [vmem:[%s3060_s8 + $0x60] sm:$0xff] }
 0x118   : > { %v1338_v22 = vsel %vm5696_vm2, %v1210_v50, 0.0  ;;  %v680_v12 = vsub.f32 %v5698_v26, %v2659_v25  ;;  %v681_v27 = vsub.f32 %v5699_v55, %v2660_v6  ;;  %v5700_v43 = vld [vmem:[#allocation118_spill] sm:$0xff]  ;;  %v5703_v37 = vld [vmem:[#allocation119_spill] sm:$0xff]  ;;  %v5704_v24 = vld [vmem:[#allocation120_spill] sm:$0xff] }
 0x119   : > { %v682_v4 = vsub.f32 %v5700_v43, %v2661_v17  ;;  %v5701_v63 = vld [vmem:[#allocation34_spill] sm:$0xff]  ;;  %v2663_v13 = vld [vmem:[%s3060_s8 + $0x70] sm:$0xff]  ;;  %v5705_v25 = vld [vmem:[#allocation121_spill] sm:$0xff]  ;;  %v1369_v40 = vadd.f32 %v1368_v60, %v1338_v22 }
 0x11a   : > { %vm5702_vm10 = vcmp.eq.f32.partialorder %v5701_v63, 1.0  ;;  %v2662_v50 = vld [vmem:[%s3060_s8 + $0x68] sm:$0xff]  ;;  %v684_v38 = vsub.f32 %v5704_v24, %v2663_v13  ;;  %v685_v26 = vsub.f32 %v5705_v25, %v2664_v48  ;;  %v5707_v17 = vld [vmem:[#allocation123_spill] sm:$0xff]  ;;  %v2668_v13 = vld [vmem:[%s3060_s8 + $0x98] sm:$0xff] }
 0x11b   : > { %v1339_v5 = vsel %vm5702_vm10, %v1211_v58, 0.0  ;;  %v683_v3 = vsub.f32 %v5703_v37, %v2662_v50  ;;  %v5706_v55 = vld [vmem:[#allocation122_spill] sm:$0xff]  ;;  %v687_v43 = vsub.f32 %v5707_v17, %v2666_v30  ;;  %v2667_v63 = vld [vmem:[%s3060_s8 + $0x90] sm:$0xff]  ;;  %v5708_v58 = vld [vmem:[#allocation124_spill] sm:$0xff]  ;;  %v1340_v50 = vsel %vm5710_vm11, %v1212_v16, 0.0 }
 0x11c   : > { %v686_v6 = vsub.f32 %v5706_v55, %v2665_v62  ;;  %v688_v35 = vsub.f32 %v5708_v58, %v2667_v63  ;;  %v5711_v37 = vld [vmem:[#allocation36_spill] sm:$0xff]  ;;  %v5713_v24 = vld [vmem:[#allocation125_spill] sm:$0xff]  ;;  %v5714_v60 = vld [vmem:[#allocation126_spill] sm:$0xff]  ;;  %v1370_v25 = vadd.f32 %v1369_v40, %v1339_v5  ;;  %v691_v62 = vsub.f32 %v3551_v45, %v3859_v32 }
 0x11d   : > { %vm5712_vm12 = vcmp.eq.f32.partialorder %v5711_v37, 1.0  ;;  %v689_v57 = vsub.f32 %v5713_v24, %v2668_v13  ;;  %v2669_v48 = vld [vmem:[%s3060_s8 + $0xa0] sm:$0xff]  ;;  %v692_v30 = vsub.f32 %v3555_v21, %v3877_v11  ;;  %v5715_v55 = vld [vmem:[#allocation74_spill] sm:$0xff]  ;;  %v694_v16 = vsub.f32 %v5648_v15, %v3936_v20  ;;  %v5719_v37 = vld [vmem:[#allocation88_spill] sm:$0xff] }
 0x11e   : > { %v1341_v1 = vsel %vm5712_vm12, %v1213_v33, 0.0  ;;  %v690_v22 = vsub.f32 %v5714_v60, %v2669_v48  ;;  %v693_v14 = vsub.f32 %v5715_v55, %v3915_v56  ;;  %v695_v33 = vsub.f32 %v5659_v23, %v3969_v28  ;;  %v5723_v55 = vld [vmem:[#allocation47_spill] sm:$0xff]  ;;  %v5724_v58 = vld [vmem:[#allocation48_spill] sm:$0xff]  ;;  %v4424_v60 = vld [vmem:[%s2850_s5 + $0x28] sm:$0xff] }
 0x11f   : > { %v696_v17 = vsub.f32 %v5664_v10, %v3988_v9  ;;  %v5716_v40 = vsub.f32 %v5682_v53, %v4201_v39  ;;  %v1371_v45 = vadd.f32 %v1370_v25, %v1340_v50  ;;  %v4274_v32 = vmax.f32 %v671_v2, -9.2103405 }
 0x120   : > { %v4276_v21 = vmax.f32 %v672_v41, -9.2103405  ;;  %v4278_v11 = vmax.f32 %v673_v49, -9.2103405  ;;  %v697_v20 = vsub.f32 %v5672_v52, %v4017_v51  ;;  %v4282_v56 = vmax.f32 %v674_v7, -9.2103405 }
 0x121   : > { %v4272_v5 = vmax.f32 %v5716_v40, -9.2103405  ;;  %v4284_v28 = vmax.f32 %v675_v29, -9.2103405  ;;  %v4286_v9 = vmax.f32 %v676_v36, -9.2103405  ;;  %v1372_v15 = vadd.f32 %v1371_v45, %v1341_v1 }
 0x122   : > { %v4288_v23 = vmax.f32 %v677_v8, -9.2103405  ;;  %v4290_v10 = vmax.f32 %v678_v54, -9.2103405  ;;  %v4292_v39 = vmax.f32 %v679_v59, -9.2103405  ;;  %v698_v53 = vsub.f32 %v5676_v31, %v4036_v44 }
 0x123   : > { %v4296_v2 = vmax.f32 %v680_v12, -9.2103405  ;;  %v4298_v41 = vmax.f32 %v681_v27, -9.2103405  ;;  %v4300_v51 = vmax.f32 %v682_v4, -9.2103405  ;;  %1373 = vadd.xlane.f32.xlu0 %v1372_v15  ;;  %v699_v52 = vsub.f32 %v5670_v61, %v4063_v47 }
 0x124   : > { %v4304_v1 = vmax.f32 %v683_v3, -9.2103405  ;;  %v4306_v49 = vmax.f32 %v684_v38, -9.2103405  ;;  %v4308_v7 = vmax.f32 %v685_v26, -9.2103405  ;;  %v700_v29 = vsub.f32 %v5671_v18, %v4080_v42 }
 0x125   : > { %v4312_v44 = vmax.f32 %v686_v6, -9.2103405  ;;  %v4314_v31 = vmax.f32 %v687_v43, -9.2103405  ;;  %v4316_v36 = vmax.f32 %v688_v35, -9.2103405  ;;  %v701_v8 = vsub.f32 %v4165_v46, %v4084_v0 }
 0x126   : > { %v4320_v54 = vmax.f32 %v689_v57, -9.2103405  ;;  %v4322_v47 = vmax.f32 %v690_v22, -9.2103405  ;;  %v4324_v61 = vmax.f32 %v691_v62, -9.2103405  ;;  %v1214_v46 = vmul.f32 %v3770_v19, %v3770_v19 }
 0x127   : > { %v4326_v59 = vmax.f32 %v692_v30, -9.2103405  ;;  %v4328_v12 = vmax.f32 %v693_v14, -9.2103405  ;;  %v4330_v42 = vmax.f32 %v694_v16, -9.2103405  ;;  %v1216_v13 = vmul.f32 %v5719_v37, %v5719_v37 }
 0x128   : > { %v4332_v18 = vmax.f32 %v695_v33, -9.2103405  ;;  %v4334_v27 = vmax.f32 %v696_v17, -9.2103405  ;;  %v4336_v35 = vmax.f32 %v697_v20, -9.2103405  ;;  %v4394_v30 = vmul.f32 %v5723_v55, %v5723_v55 }
 0x129   : > { %v4338_v4 = vmax.f32 %v698_v53, -9.2103405  ;;  %v4340_v57 = vmax.f32 %v699_v52, -9.2103405  ;;  %v4342_v0 = vmax.f32 %v700_v29, -9.2103405  ;;  %v4413_v55 = vmul.f32 %v5724_v58, %v5724_v58 }
 0x12a   : > { %v4346_v3 = vmax.f32 %v701_v8, -9.2103405  ;;  %v734_v38 = vmin.f32 %v4272_v5, -0.000100005  ;;  %v735_v26 = vmin.f32 %v4274_v32, -0.000100005  ;;  %v4404_v8 = vmul.f32 %v3854_v34, %v3854_v34 }
 0x12b   : > { %5717 = vst [vmem:[#allocation63_spill] sm:$0xff] %v4338_v4  ;;  %v5718_v6 = vld [vmem:[#allocation42_spill] sm:$0xff]  ;;  %v736_v63 = vmin.f32 %v4276_v21, -0.000100005  ;;  %v5720_v22 = vld [vmem:[#allocation44_spill] sm:$0xff]  ;;  %v5721_v14 = vld [vmem:[#allocation45_spill] sm:$0xff] }
 0x12c   : > { %v1215_v43 = vmul.f32 %v5718_v6, %v5718_v6  ;;  %v1217_v25 = vmul.f32 %v5720_v22, %v5720_v22  ;;  %v4367_v16 = vmul.f32 %v5721_v14, %v5721_v14  ;;  %v4372_v40 = vld [vmem:[%s2850_s5] sm:$0xff]  ;;  %v4376_v45 = vld [vmem:[%s2850_s5 + $0x8] sm:$0xff]  ;;  %v4389_v17 = vld [vmem:[%s2850_s5 + $0x10] sm:$0xff]  ;;  %v1027_v15 = vsub.f32 1.0, %v4424_v60 }
 0x12d   : > { %v1022_v5 = vsub.f32 1.0, %v4372_v40  ;;  %v1023_v32 = vsub.f32 1.0, %v4376_v45  ;;  %v5722_v53 = vld [vmem:[#allocation89_spill] sm:$0xff]  ;;  %v1024_v33 = vsub.f32 1.0, %v4389_v17  ;;  %v4399_v21 = vld [vmem:[%s2850_s5 + $0x18] sm:$0xff]  ;;  %v1246_v22 = vmul.f32 %v1214_v46, %v734_v38  ;;  %v5725_v19 = vld [vmem:[#allocation50_spill] sm:$0xff] }
 0x12e   : > { %v4384_v52 = vmul.f32 %v5722_v53, %v5722_v53  ;;  %v1025_v62 = vsub.f32 1.0, %v4399_v21  ;;  %v4418_v14 = vld [vmem:[%s2850_s5 + $0x20] sm:$0xff]  ;;  %v1247_v53 = vmul.f32 %v1215_v43, %v735_v26  ;;  %v4432_v50 = vmul.f32 %v5725_v19, %v5725_v19  ;;  %v4435_v20 = vld [vmem:[%s2850_s5 + $0x30] sm:$0xff]  ;;  %v4441_v46 = vld [vmem:[%s2850_s5 + $0x38] sm:$0xff] }
 0x12f   : > { %v1054_v48 = vmul.f32 %v1022_v5, %v1022_v5  ;;  %v1055_v24 = vmul.f32 %v1023_v32, %v1023_v32  ;;  %v1026_v5 = vsub.f32 1.0, %v4418_v14  ;;  %v1056_v32 = vmul.f32 %v1024_v33, %v1024_v33 }
 0x130   : > { %v1057_v29 = vmul.f32 %v1025_v62, %v1025_v62  ;;  %v1028_v4 = vsub.f32 1.0, %v4435_v20  ;;  %vm990_vm14 = vcmp.lt.f32.partialorder %v4372_v40, 1.0  ;;  %vm991_vm13 = vcmp.lt.f32.partialorder %v4376_v45, 1.0 }
 0x131   : > { %v1086_v58 = vmul.f32 %v1054_v48, %v1054_v48  ;;  %v1087_v34 = vmul.f32 %v1055_v24, %v1055_v24  ;;  %v1058_v62 = vmul.f32 %v1026_v5, %v1026_v5  ;;  %v1088_v48 = vmul.f32 %v1056_v32, %v1056_v32 }
 0x132   : > { %v1248_v24 = vmul.f32 %v1216_v13, %v736_v63  ;;  %v1029_v38 = vsub.f32 1.0, %v4441_v46  ;;  %v1059_v26 = vmul.f32 %v1027_v15, %v1027_v15  ;;  %v1089_v43 = vmul.f32 %v1057_v29, %v1057_v29  ;;  %v4450_v63 = vld [vmem:[%s2850_s5 + $0x40] sm:$0xff] }
 0x133   : > { %v5726_v33 = vmin.f32 %v4278_v11, -0.000100005  ;;  %v1278_v37 = vmul.f32 %v1246_v22, %v1086_v58  ;;  %v1279_v19 = vmul.f32 %v1247_v53, %v1087_v34  ;;  %vm992_vm15 = vcmp.lt.f32.partialorder %v4389_v17, 1.0  ;;  %v4458_v34 = vld [vmem:[%s2850_s5 + $0x48] sm:$0xff]  ;;  %v4491_v17 = vld [vmem:[%s2850_s5 + $0x60] sm:$0xff] }
 0x134   : > { %vm993_vm8 = vcmp.lt.f32.partialorder %v4399_v21, 1.0  ;;  %vm994_vm9 = vcmp.lt.f32.partialorder %v4418_v14, 1.0  ;;  %v1030_v13 = vsub.f32 1.0, %v4450_v63  ;;  %v1060_v5 = vmul.f32 %v1028_v4, %v1028_v4 }
 0x135   : > { %v1249_v6 = vmul.f32 %v1217_v25, %v5726_v33  ;;  %v1090_v32 = vmul.f32 %v1058_v62, %v1058_v62  ;;  %v5727_v15 = vmin.f32 %v4282_v56, -0.000100005  ;;  %v1280_v25 = vmul.f32 %v1248_v24, %v1088_v48  ;;  %v4471_v62 = vld [vmem:[%s2850_s5 + $0x50] sm:$0xff] }
 0x136   : > { %vm995_vm7 = vcmp.lt.f32.partialorder %v4424_v60, 1.0  ;;  %v1031_v58 = vsub.f32 1.0, %v4458_v34  ;;  %v1061_v22 = vmul.f32 %v1029_v38, %v1029_v38  ;;  %v1091_v53 = vmul.f32 %v1059_v26, %v1059_v26 }
 0x137   : > { %v1250_v11 = vmul.f32 %v4367_v16, %v5727_v15  ;;  %v5728_v29 = vmin.f32 %v4284_v28, -0.000100005  ;;  %v1281_v4 = vmul.f32 %v1249_v6, %v1089_v43  ;;  %v1382_v56 = vsel %vm990_vm14, %v1278_v37, 0.0 }
 0x138   : > { %v1383_v16 = vsel %vm991_vm13, %v1279_v19, 0.0  ;;  %vm996_vm3 = vcmp.lt.f32.partialorder %v4435_v20, 1.0  ;;  %vm997_vm4 = vcmp.lt.f32.partialorder %v4441_v46, 1.0  ;;  %v1032_v48 = vsub.f32 1.0, %v4471_v62  ;;  %v4481_v19 = vld [vmem:[%s2850_s5 + $0x58] sm:$0xff] }
 0x139   : > { %v1251_v33 = vmul.f32 %v4384_v52, %v5728_v29  ;;  %v1062_v24 = vmul.f32 %v1030_v13, %v1030_v13  ;;  %v1092_v28 = vmul.f32 %v1060_v5, %v1060_v5  ;;  %v5729_v52 = vmin.f32 %v4286_v9, -0.000100005  ;;  %v4503_v29 = vld [vmem:[%s2850_s5 + $0x68] sm:$0xff] }
 0x13a   : > { %v1282_v40 = vmul.f32 %v1250_v11, %v1090_v32  ;;  %v1384_v37 = vsel %vm992_vm15, %v1280_v25, 0.0  ;;  %vm998_vm5 = vcmp.lt.f32.partialorder %v4450_v63, 1.0  ;;  %v1033_v45 = vsub.f32 1.0, %v4481_v19 }
 0x13b   : > { %v1252_v6 = vmul.f32 %v4394_v30, %v5729_v52  ;;  %v1063_v38 = vmul.f32 %v1031_v58, %v1031_v58  ;;  %v1414_v26 = vadd.f32 %v1383_v16, %v1382_v56  ;;  %v1093_v43 = vmul.f32 %v1061_v22, %v1061_v22  ;;  %v5731_v58 = vld [vmem:[#allocation52_spill] sm:$0xff]  ;;  %v4515_v52 = vld [vmem:[%s2850_s5 + $0x70] sm:$0xff] }
 0x13c   : > { %v5730_v13 = vmin.f32 %v4288_v23, -0.000100005  ;;  %v1283_v5 = vmul.f32 %v1251_v33, %v1091_v53  ;;  %v1385_v30 = vsel %vm993_vm8, %v1281_v4, 0.0  ;;  %vm999_vm6 = vcmp.lt.f32.partialorder %v4458_v34, 1.0 }
 0x13d   : > { %v1034_v32 = vsub.f32 1.0, %v4491_v17  ;;  %v1064_v15 = vmul.f32 %v1032_v48, %v1032_v48  ;;  %v1094_v11 = vmul.f32 %v1062_v24, %v1062_v24  ;;  %v1415_v25 = vadd.f32 %v1414_v26, %v1384_v37  ;;  %v5733_v48 = vld [vmem:[#allocation54_spill] sm:$0xff] }
 0x13e   : > { %v1253_v9 = vmul.f32 %v4404_v8, %v5730_v13  ;;  %v1224_v22 = vmul.f32 %v5731_v58, %v5731_v58  ;;  %v5732_v23 = vmin.f32 %v4290_v10, -0.000100005  ;;  %v1284_v53 = vmul.f32 %v1252_v6, %v1092_v28  ;;  %v4526_v13 = vld [vmem:[%s2850_s5 + $0x78] sm:$0xff] }
 0x13f   : > { %v1386_v21 = vsel %vm994_vm9, %v1282_v40, 0.0  ;;  %vm1000_vm0 = vcmp.lt.f32.partialorder %v4471_v62, 1.0  ;;  %v1035_v33 = vsub.f32 1.0, %v4503_v29  ;;  %v1065_v4 = vmul.f32 %v1033_v45, %v1033_v45 }
 0x140   : > { %v1254_v8 = vmul.f32 %v4413_v55, %v5732_v23  ;;  %v1095_v56 = vmul.f32 %v1063_v38, %v1063_v38  ;;  %v1416_v16 = vadd.f32 %v1415_v25, %v1385_v30  ;;  %v1225_v24 = vmul.f32 %v5733_v48, %v5733_v48  ;;  %v5735_v38 = vld [vmem:[#allocation90_spill] sm:$0xff]  ;;  %v4537_v23 = vld [vmem:[%s2850_s5 + $0x80] sm:$0xff] }
 0x141   : > { %v5734_v10 = vmin.f32 %v4292_v39, -0.000100005  ;;  %v1285_v28 = vmul.f32 %v1253_v9, %v1093_v43  ;;  %v1387_v14 = vsel %vm995_vm7, %v1283_v5, 0.0  ;;  %vm1001_vm1 = vcmp.lt.f32.partialorder %v4481_v19, 1.0 }
 0x142   : > { %v1036_v6 = vsub.f32 1.0, %v4515_v52  ;;  %v1066_v40 = vmul.f32 %v1034_v32, %v1034_v32  ;;  %v1096_v37 = vmul.f32 %v1064_v15, %v1064_v15  ;;  %v1417_v45 = vadd.f32 %v1416_v16, %v1386_v21  ;;  %v5737_v15 = vld [vmem:[#allocation91_spill] sm:$0xff] }
 0x143   : > { %v1255_v55 = vmul.f32 %v4432_v50, %v5734_v10  ;;  %v1226_v26 = vmul.f32 %v5735_v38, %v5735_v38  ;;  %v5736_v39 = vmin.f32 %v4296_v2, -0.000100005  ;;  %v1286_v43 = vmul.f32 %v1254_v8, %v1094_v11  ;;  %v4548_v10 = vld [vmem:[%s2850_s5 + $0x88] sm:$0xff] }
 0x144   : > { %v1388_v60 = vsel %vm996_vm3, %v1284_v53, 0.0  ;;  %vm1002_vm2 = vcmp.lt.f32.partialorder %v4491_v17, 1.0  ;;  %v1037_v9 = vsub.f32 1.0, %v4526_v13  ;;  %v1067_v5 = vmul.f32 %v1035_v33, %v1035_v33 }
 0x145   : > { %v1256_v50 = vmul.f32 %v1224_v22, %v5736_v39  ;;  %v1097_v30 = vmul.f32 %v1065_v4, %v1065_v4  ;;  %v1418_v32 = vadd.f32 %v1417_v45, %v1387_v14  ;;  %v1227_v25 = vmul.f32 %v5737_v15, %v5737_v15  ;;  %v5739_v4 = vld [vmem:[#allocation55_spill] sm:$0xff] }
 0x146   : > { %v5738_v2 = vmin.f32 %v4298_v41, -0.000100005  ;;  %v1287_v11 = vmul.f32 %v1255_v55, %v1095_v56  ;;  %v1389_v20 = vsel %vm997_vm4, %v1285_v28, 0.0  ;;  %vm1003_vm10 = vcmp.lt.f32.partialorder %v4503_v29, 1.0  ;;  %v4559_v39 = vld [vmem:[%s2850_s5 + $0x90] sm:$0xff] }
 0x147   : > { %v1038_v8 = vsub.f32 1.0, %v4537_v23  ;;  %v1068_v53 = vmul.f32 %v1036_v6, %v1036_v6  ;;  %v1098_v21 = vmul.f32 %v1066_v40, %v1066_v40  ;;  %v1419_v33 = vadd.f32 %v1418_v32, %v1388_v60  ;;  %v5741_v40 = vld [vmem:[#allocation92_spill] sm:$0xff] }
 0x148   : > { %v1257_v22 = vmul.f32 %v1225_v24, %v5738_v2  ;;  %v1228_v16 = vmul.f32 %v5739_v4, %v5739_v4  ;;  %v5740_v41 = vmin.f32 %v4300_v51, -0.000100005  ;;  %v1288_v56 = vmul.f32 %v1256_v50, %v1096_v37  ;;  %v4570_v2 = vld [vmem:[%s2850_s5 + $0x98] sm:$0xff] }
 0x149   : > { %v1390_v46 = vsel %vm998_vm5, %v1286_v43, 0.0  ;;  %vm1004_vm11 = vcmp.lt.f32.partialorder %v4515_v52, 1.0  ;;  %v1039_v55 = vsub.f32 1.0, %v4548_v10  ;;  %v1069_v28 = vmul.f32 %v1037_v9, %v1037_v9 }
 0x14a   : > { %v1258_v24 = vmul.f32 %v1226_v26, %v5740_v41  ;;  %v1099_v14 = vmul.f32 %v1067_v5, %v1067_v5  ;;  %v1420_v6 = vadd.f32 %v1419_v33, %v1389_v20  ;;  %v1229_v45 = vmul.f32 %v5741_v40, %v5741_v40  ;;  %v5743_v5 = vld [vmem:[#allocation56_spill] sm:$0xff]  ;;  %v4581_v41 = vld [vmem:[%s2850_s5 + $0xa0] sm:$0xff] }
 0x14b   : > { %v5742_v51 = vmin.f32 %v4304_v1, -0.000100005  ;;  %v1289_v37 = vmul.f32 %v1257_v22, %v1097_v30  ;;  %v1391_v63 = vsel %vm999_vm6, %v1287_v11, 0.0  ;;  %vm1005_vm12 = vcmp.lt.f32.partialorder %v4526_v13, 1.0 }
 0x14c   : > { %v1040_v50 = vsub.f32 1.0, %v4559_v39  ;;  %v1070_v43 = vmul.f32 %v1038_v8, %v1038_v8  ;;  %v1100_v60 = vmul.f32 %v1068_v53, %v1068_v53  ;;  %v1421_v9 = vadd.f32 %v1420_v6, %v1390_v46  ;;  %v5745_v53 = vld [vmem:[#allocation93_spill] sm:$0xff] }
 0x14d   : > { %v1259_v26 = vmul.f32 %v1227_v25, %v5742_v51  ;;  %v1230_v32 = vmul.f32 %v5743_v5, %v5743_v5  ;;  %v5744_v1 = vmin.f32 %v4306_v49, -0.000100005  ;;  %v1290_v30 = vmul.f32 %v1258_v24, %v1098_v21  ;;  %v4592_v51 = vld [vmem:[%s2850_s5 + $0xa8] sm:$0xff] }
 0x14e   : > { %v1392_v34 = vsel %vm1000_vm0, %v1288_v56, 0.0  ;;  %vm1006_vm14 = vcmp.lt.f32.partialorder %v4537_v23, 1.0  ;;  %v1041_v22 = vsub.f32 1.0, %v4570_v2  ;;  %v1071_v11 = vmul.f32 %v1039_v55, %v1039_v55 }
 0x14f   : > { %v1260_v25 = vmul.f32 %v1228_v16, %v5744_v1  ;;  %v1101_v20 = vmul.f32 %v1069_v28, %v1069_v28  ;;  %v1422_v8 = vadd.f32 %v1421_v9, %v1391_v63  ;;  %v1231_v33 = vmul.f32 %v5745_v53, %v5745_v53  ;;  %v5747_v28 = vld [vmem:[#allocation57_spill] sm:$0xff]  ;;  %v4603_v1 = vld [vmem:[%s2850_s5 + $0xb0] sm:$0xff] }
 0x150   : > { %v5746_v49 = vmin.f32 %v4308_v7, -0.000100005  ;;  %v1291_v21 = vmul.f32 %v1259_v26, %v1099_v14  ;;  %v1393_v62 = vsel %vm1001_vm1, %v1289_v37, 0.0  ;;  %vm1007_vm13 = vcmp.lt.f32.partialorder %v4548_v10, 1.0 }
 0x151   : > { %v1042_v24 = vsub.f32 1.0, %v4581_v41  ;;  %v1072_v56 = vmul.f32 %v1040_v50, %v1040_v50  ;;  %v1102_v46 = vmul.f32 %v1070_v43, %v1070_v43  ;;  %v1423_v55 = vadd.f32 %v1422_v8, %v1392_v34  ;;  %v5749_v43 = vld [vmem:[#allocation94_spill] sm:$0xff] }
 0x152   : > { %v1261_v16 = vmul.f32 %v1229_v45, %v5746_v49  ;;  %v1232_v6 = vmul.f32 %v5747_v28, %v5747_v28  ;;  %v5748_v7 = vmin.f32 %v4312_v44, -0.000100005  ;;  %v1292_v14 = vmul.f32 %v1260_v25, %v1100_v60  ;;  %v4614_v49 = vld [vmem:[%s2850_s5 + $0xb8] sm:$0xff] }
 0x153   : > { %v1394_v19 = vsel %vm1002_vm2, %v1290_v30, 0.0  ;;  %vm1008_vm15 = vcmp.lt.f32.partialorder %v4559_v39, 1.0  ;;  %v1043_v26 = vsub.f32 1.0, %v4592_v51  ;;  %v1073_v37 = vmul.f32 %v1041_v22, %v1041_v22 }
 0x154   : > { %v1262_v45 = vmul.f32 %v1230_v32, %v5748_v7  ;;  %v1103_v63 = vmul.f32 %v1071_v11, %v1071_v11  ;;  %v1424_v50 = vadd.f32 %v1423_v55, %v1393_v62  ;;  %v1233_v9 = vmul.f32 %v5749_v43, %v5749_v43  ;;  %v5751_v11 = vld [vmem:[#allocation58_spill] sm:$0xff]  ;;  %v4625_v7 = vld [vmem:[%s2850_s5 + $0xc0] sm:$0xff] }
 0x155   : > { %v5750_v44 = vmin.f32 %v4314_v31, -0.000100005  ;;  %v1293_v60 = vmul.f32 %v1261_v16, %v1101_v20  ;;  %v1395_v17 = vsel %vm1003_vm10, %v1291_v21, 0.0  ;;  %vm1009_vm8 = vcmp.lt.f32.partialorder %v4570_v2, 1.0  ;;  %v4678_v2 = vld [vmem:[%s2850_s5 + $0xe8] sm:$0xff] }
 0x156   : > { %v1044_v25 = vsub.f32 1.0, %v4603_v1  ;;  %v1074_v30 = vmul.f32 %v1042_v24, %v1042_v24  ;;  %v1104_v34 = vmul.f32 %v1072_v56, %v1072_v56  ;;  %v1425_v22 = vadd.f32 %v1424_v50, %v1394_v19  ;;  %v5753_v56 = vld [vmem:[#allocation95_spill] sm:$0xff] }
 0x157   : > { %v1263_v32 = vmul.f32 %v1231_v33, %v5750_v44  ;;  %v1234_v8 = vmul.f32 %v5751_v11, %v5751_v11  ;;  %v5752_v31 = vmin.f32 %v4316_v36, -0.000100005  ;;  %v1294_v20 = vmul.f32 %v1262_v45, %v1102_v46  ;;  %v4636_v44 = vld [vmem:[%s2850_s5 + $0xc8] sm:$0xff] }
 0x158   : > { %v1396_v29 = vsel %vm1004_vm11, %v1292_v14, 0.0  ;;  %vm1010_vm9 = vcmp.lt.f32.partialorder %v4581_v41, 1.0  ;;  %v1045_v16 = vsub.f32 1.0, %v4614_v49  ;;  %v1075_v21 = vmul.f32 %v1043_v26, %v1043_v26  ;;  %v2700_v41 = vld [vmem:[%s2850_s5 + $0xf0] sm:$0xff] }
 0x159   : > { %v1264_v33 = vmul.f32 %v1232_v6, %v5752_v31  ;;  %v1105_v62 = vmul.f32 %v1073_v37, %v1073_v37  ;;  %v1426_v24 = vadd.f32 %v1425_v22, %v1395_v17  ;;  %v1235_v55 = vmul.f32 %v5753_v56, %v5753_v56  ;;  %v5755_v37 = vld [vmem:[#allocation59_spill] sm:$0xff] }
 0x15a   : > { %v5754_v36 = vmin.f32 %v4320_v54, -0.000100005  ;;  %v1295_v46 = vmul.f32 %v1263_v32, %v1103_v63  ;;  %v1397_v52 = vsel %vm1005_vm12, %v1293_v60, 0.0  ;;  %vm1011_vm7 = vcmp.lt.f32.partialorder %v4592_v51, 1.0  ;;  %v4647_v31 = vld [vmem:[%s2850_s5 + $0xd0] sm:$0xff] }
 0x15b   : > { %v1046_v45 = vsub.f32 1.0, %v4625_v7  ;;  %v1076_v14 = vmul.f32 %v1044_v25, %v1044_v25  ;;  %v1106_v19 = vmul.f32 %v1074_v30, %v1074_v30  ;;  %v1427_v26 = vadd.f32 %v1426_v24, %v1396_v29  ;;  %v5757_v30 = vld [vmem:[#allocation96_spill] sm:$0xff] }
 0x15c   : > { %v1265_v6 = vmul.f32 %v1233_v9, %v5754_v36  ;;  %v1236_v50 = vmul.f32 %v5755_v37, %v5755_v37  ;;  %v5756_v54 = vmin.f32 %v4322_v47, -0.000100005  ;;  %v1296_v63 = vmul.f32 %v1264_v33, %v1104_v34  ;;  %v4658_v36 = vld [vmem:[%s2850_s5 + $0xd8] sm:$0xff] }
 0x15d   : > { %v1398_v13 = vsel %vm1006_vm14, %v1294_v20, 0.0  ;;  %vm1012_vm3 = vcmp.lt.f32.partialorder %v4603_v1, 1.0  ;;  %v1047_v32 = vsub.f32 1.0, %v4636_v44  ;;  %v1077_v60 = vmul.f32 %v1045_v16, %v1045_v16 }
 0x15e   : > { %v1266_v9 = vmul.f32 %v1234_v8, %v5756_v54  ;;  %v1107_v17 = vmul.f32 %v1075_v21, %v1075_v21  ;;  %v1428_v25 = vadd.f32 %v1427_v26, %v1397_v52  ;;  %v1237_v22 = vmul.f32 %v5757_v30, %v5757_v30  ;;  %v5759_v21 = vld [vmem:[#allocation97_spill] sm:$0xff] }
 0x15f   : > { %v5758_v47 = vmin.f32 %v4324_v61, -0.000100005  ;;  %v1297_v34 = vmul.f32 %v1265_v6, %v1105_v62  ;;  %v1399_v23 = vsel %vm1007_vm13, %v1295_v46, 0.0  ;;  %vm1013_vm4 = vcmp.lt.f32.partialorder %v4614_v49, 1.0  ;;  %v4668_v54 = vld [vmem:[%s2850_s5 + $0xe0] sm:$0xff] }
 0x160   : > { %v1048_v33 = vsub.f32 1.0, %v4647_v31  ;;  %v1078_v20 = vmul.f32 %v1046_v45, %v1046_v45  ;;  %v1108_v29 = vmul.f32 %v1076_v14, %v1076_v14  ;;  %v1429_v16 = vadd.f32 %v1428_v25, %v1398_v13  ;;  %v5761_v14 = vld [vmem:[#allocation60_spill] sm:$0xff] }
 0x161   : > { %v1267_v8 = vmul.f32 %v1235_v55, %v5758_v47  ;;  %v1238_v24 = vmul.f32 %v5759_v21, %v5759_v21  ;;  %v5760_v61 = vmin.f32 %v4326_v59, -0.000100005  ;;  %v1298_v62 = vmul.f32 %v1266_v9, %v1106_v19 }
 0x162   : > { %v1400_v10 = vsel %vm1008_vm15, %v1296_v63, 0.0  ;;  %vm1014_vm5 = vcmp.lt.f32.partialorder %v4625_v7, 1.0  ;;  %v1049_v6 = vsub.f32 1.0, %v4658_v36  ;;  %v1079_v46 = vmul.f32 %v1047_v32, %v1047_v32 }
 0x163   : > { %v1268_v55 = vmul.f32 %v1236_v50, %v5760_v61  ;;  %v1109_v52 = vmul.f32 %v1077_v60, %v1077_v60  ;;  %v1430_v45 = vadd.f32 %v1429_v16, %v1399_v23  ;;  %v1239_v26 = vmul.f32 %v5761_v14, %v5761_v14  ;;  %v5763_v60 = vld [vmem:[#allocation98_spill] sm:$0xff] }
 0x164   : > { %v5762_v59 = vmin.f32 %v4328_v12, -0.000100005  ;;  %v1299_v19 = vmul.f32 %v1267_v8, %v1107_v17  ;;  %v1401_v39 = vsel %vm1009_vm8, %v1297_v34, 0.0  ;;  %v1050_v9 = vsub.f32 1.0, %v4668_v54 }
 0x165   : > { %v1080_v63 = vmul.f32 %v1048_v33, %v1048_v33  ;;  %v1110_v13 = vmul.f32 %v1078_v20, %v1078_v20  ;;  %v1431_v32 = vadd.f32 %v1430_v45, %v1400_v10  ;;  %v1240_v25 = vmul.f32 %v5763_v60, %v5763_v60  ;;  %v5765_v20 = vld [vmem:[#allocation61_spill] sm:$0xff] }
 0x166   : > { %v1269_v50 = vmul.f32 %v1237_v22, %v5762_v59  ;;  %v5764_v47 = vmin.f32 %v4330_v42, -0.000100005  ;;  %v1300_v12 = vmul.f32 %v1268_v55, %v1108_v29  ;;  %v1402_v17 = vsel %vm1010_vm9, %v1298_v62, 0.0  ;;  %v5767_v59 = vld [vmem:[#allocation99_spill] sm:$0xff] }
 0x167   : > { %v1051_v22 = vsub.f32 1.0, %v4678_v2  ;;  %v1081_v8 = vmul.f32 %v1049_v6, %v1049_v6  ;;  %v1111_v34 = vmul.f32 %v1079_v46, %v1079_v46  ;;  %v1432_v33 = vadd.f32 %v1431_v32, %v1401_v39 }
 0x168   : > { %v1270_v23 = vmul.f32 %v1238_v24, %v5764_v47  ;;  %v1241_v16 = vmul.f32 %v5765_v20, %v5765_v20  ;;  %v5766_v61 = vmin.f32 %v4332_v18, -0.000100005  ;;  %v1301_v42 = vmul.f32 %v1269_v50, %v1109_v52  ;;  %v5769_v47 = vld [vmem:[#allocation62_spill] sm:$0xff] }
 0x169   : > { %v1403_v29 = vsel %vm1011_vm7, %v1299_v19, 0.0  ;;  %v1052_v24 = vsub.f32 1.0, %v2700_v41  ;;  %v1082_v55 = vmul.f32 %v1050_v9, %v1050_v9  ;;  %v1112_v62 = vmul.f32 %v1080_v63, %v1080_v63 }
 0x16a   : > { %v1271_v10 = vmul.f32 %v1239_v26, %v5766_v61  ;;  %v1433_v45 = vadd.f32 %v1432_v33, %v1402_v17  ;;  %v1242_v6 = vmul.f32 %v5767_v59, %v5767_v59  ;;  %v5768_v46 = vmin.f32 %v4334_v27, -0.000100005  ;;  %v2701_v26 = vld [vmem:[%s2850_s5 + $0xf8] sm:$0xff]  ;;  %s2767_s5 = smov [#allocation2]  }
 0x16b   : > { %v1302_v32 = vmul.f32 %v1270_v23, %v1110_v13  ;;  %v1404_v18 = vsel %vm1012_vm3, %v1300_v12, 0.0  ;;  %v1053_v52 = vsub.f32 1.0, %v2701_v26  ;;  %v1083_v50 = vmul.f32 %v1051_v22, %v1051_v22  ;;  %v5771_v23 = vld [vmem:[#allocation100_spill] sm:$0xff]  ;;  %v5772_v22 = vld [vmem:[#allocation63_spill] sm:$0xff]  ;;  %s2706_s6 = sshll.u32 %s2767_s5, 4  ;;  %s2707_s6 = int_to_ptr.vmem [resolvable:$false] %s2706_s6 }
 0x16c   : > { %v1272_v39 = vmul.f32 %v1240_v25, %v5768_v46  ;;  %v1113_v51 = vmul.f32 %v1081_v8, %v1081_v8  ;;  %v1434_v19 = vadd.f32 %v1433_v45, %v1403_v29  ;;  %v1243_v9 = vmul.f32 %v5769_v47, %v5769_v47  ;;  %s2708_s7 = scalar_lea.vmem %s2707_s6, 4096  ;;  %p2709_p0 = scmp.lt.s32.totalorder %s4997_s22, %s2707_s6 }
 0x16d   : > { %v5770_v63 = vmin.f32 %v4336_v35, -0.000100005  ;;  %v1303_v33 = vmul.f32 %v1271_v10, %v1111_v34  ;;  %v1405_v27 = vsel %vm1013_vm4, %v1301_v42, 0.0  ;;  %vm1015_vm6 = vcmp.lt.f32.partialorder %v4636_v44, 1.0  ;;  %v5774_v10 = vld [vmem:[#allocation102_spill] sm:$0xff]  ;;  %p2710_p1 = scmp.lt.s32.totalorder %s2708_s7, %s2702_s30 }
 0x16e   : > { %v1084_v13 = vmul.f32 %v1052_v24, %v1052_v24  ;;  %v1114_v1 = vmul.f32 %v1082_v55, %v1082_v55  ;;  %v1435_v25 = vadd.f32 %v1434_v19, %v1404_v18  ;;  %v1244_v12 = vmul.f32 %v5771_v23, %v5771_v23 }
 0x16f   : > { %v1273_v17 = vmul.f32 %v1241_v16, %v5770_v63  ;;  %v5773_v8 = vmin.f32 %v5772_v22, -0.000100005  ;;  %v1304_v29 = vmul.f32 %v1272_v39, %v1112_v62  ;;  %v1406_v35 = vsel %vm1014_vm5, %v1302_v32, 0.0  ;;  %p2711_p2 = por %p2710_p1, %p2709_p0 }
 0x170   : > { %vm1016_vm0 = vcmp.lt.f32.partialorder %v4647_v31, 1.0  ;;  %v1085_v34 = vmul.f32 %v1053_v52, %v1053_v52  ;;  %v1115_v49 = vmul.f32 %v1083_v50, %v1083_v50  ;;  %v1436_v16 = vadd.f32 %v1435_v25, %v1405_v27 }
 0x171   : > { %v1274_v61 = vmul.f32 %v1242_v6, %v5773_v8  ;;  %v1245_v44 = vmul.f32 %v5774_v10, %v5774_v10  ;;  %v5775_v42 = vmin.f32 %v4340_v57, -0.000100005  ;;  %v1305_v55 = vmul.f32 %v1273_v17, %v1113_v51  ;;  %p2712_p3 = pnand %p2711_p2, %p2705_p13 }
 0x172   : > { %v1407_v45 = vsel %vm1015_vm6, %v1303_v33, 0.0  ;;  %vm1017_vm1 = vcmp.lt.f32.partialorder %v4658_v36, 1.0  ;;  %v1437_v6 = vadd.f32 %v1436_v16, %v1406_v35  ;;  %v1116_v62 = vmul.f32 %v1084_v13, %v1084_v13 }
 0x173   : > { %v1275_v24 = vmul.f32 %v1243_v9, %v5775_v42  ;;  %v5776_v7 = vmin.f32 %v4342_v0, -0.000100005  ;;  %v1306_v39 = vmul.f32 %v1274_v61, %v1114_v1  ;;  %v1408_v31 = vsel %vm1016_vm0, %v1304_v29, 0.0 }
 0x174   : > { %vm1018_vm2 = vcmp.lt.f32.partialorder %v4668_v54, 1.0  ;;  %v1438_v32 = vadd.f32 %v1437_v6, %v1407_v45  ;;  %v1117_v18 = vmul.f32 %v1085_v34, %v1085_v34  ;;  %v5777_v52 = vmin.f32 %v4346_v3, -0.000100005  ;;  %v5779_v34 = vld [vmem:[#allocation42_spill] sm:$0xff]  ;;  %v5783_v45 = vld [vmem:[#allocation89_spill] sm:$0xff] }
 0x175   : > { %v1276_v46 = vmul.f32 %v1244_v12, %v5776_v7  ;;  %v1307_v57 = vmul.f32 %v1275_v24, %v1115_v49  ;;  %v1409_v19 = vsel %vm1017_vm1, %v1305_v55, 0.0  ;;  %vm1019_vm10 = vcmp.lt.f32.partialorder %v4678_v2, 1.0  ;;  %v5782_v24 = vld [vmem:[#allocation45_spill] sm:$0xff] }
 0x176   : > { %v1277_v50 = vmul.f32 %v1245_v44, %v5777_v52  ;;  %v1439_v51 = vadd.f32 %v1438_v32, %v1408_v31  ;;  %v1410_v9 = vsel %vm1018_vm2, %v1306_v39, 0.0  ;;  %vm1020_vm11 = vcmp.lt.f32.partialorder %v2700_v41, 1.0  ;;  %v5778_v41 = vld [vmem:[#allocation87_spill] sm:$0xff]  ;;  %v5781_v44 = vld [vmem:[#allocation44_spill] sm:$0xff] }
 0x177   : > { %v1308_v36 = vmul.f32 %v1276_v46, %v1116_v62  ;;  %v1411_v17 = vsel %vm1019_vm10, %v1307_v57, 0.0  ;;  %vm1021_vm12 = vcmp.lt.f32.partialorder %v2701_v26, 1.0  ;;  %v2137_v35 = vadd.f32 -0.5, %v5778_v41  ;;  %v5780_v26 = vld [vmem:[#allocation88_spill] sm:$0xff]  ;;  %v5784_v62 = vld [vmem:[#allocation47_spill] sm:$0xff]  ;;  %v5785_v46 = vld [vmem:[#allocation46_spill] sm:$0xff] }
 0x178   : > { %v1440_v63 = vadd.f32 %v1439_v51, %v1409_v19  ;;  %v1309_v0 = vmul.f32 %v1277_v50, %v1117_v18  ;;  %v2138_v49 = vadd.f32 -0.5, %v5779_v34  ;;  %v2139_v16 = vadd.f32 -0.5, %v5780_v26  ;;  %v5786_v31 = vld [vmem:[#allocation48_spill] sm:$0xff]  ;;  %v5787_v18 = vld [vmem:[#allocation50_spill] sm:$0xff] }
 0x179   : > { %v1412_v27 = vsel %vm1020_vm11, %v1308_v36, 0.0  ;;  %v2140_v42 = vadd.f32 -0.5, %v5781_v44  ;;  %v2141_v55 = vadd.f32 -0.5, %v5782_v24  ;;  %v2142_v6 = vadd.f32 -0.5, %v5783_v45 }
 0x17a   : > { %v1441_v33 = vadd.f32 %v1440_v63, %v1410_v9  ;;  %v1413_v13 = vsel %vm1021_vm12, %v1309_v0, 0.0  ;;  %v2143_v7 = vadd.f32 -0.5, %v5784_v62  ;;  %v2144_v39 = vadd.f32 -0.5, %v5785_v46 }
 0x17b   : > { %v2145_v32 = vadd.f32 -0.5, %v5786_v31  ;;  %v2146_v52 = vadd.f32 -0.5, %v5787_v18  ;;  %v2147_v50 = vadd.f32 -0.5, %v5731_v58  ;;  %v2148_v57 = vadd.f32 -0.5, %v5733_v48 }
 0x17c   : > { %v1442_v54 = vadd.f32 %v1441_v33, %v1411_v17  ;;  %v1558_v19 = vmul.f32 3.5, %v2137_v35  ;;  %v2149_v51 = vadd.f32 -0.5, %v5735_v38  ;;  %v2150_v36 = vadd.f32 -0.5, %v5737_v15 }
 0x17d   : > { %v2151_v9 = vadd.f32 -0.5, %v5739_v4  ;;  %v1559_v63 = vmul.f32 3.5, %v2138_v49  ;;  %v2152_v0 = vadd.f32 -0.5, %v5741_v40  ;;  %v2153_v17 = vadd.f32 -0.5, %v5743_v5 }
 0x17e   : > { %v1443_v1 = vadd.f32 %v1442_v54, %v1412_v27  ;;  %v2154_v33 = vadd.f32 -0.5, %v5745_v53  ;;  %v1560_v27 = vmul.f32 3.5, %v2139_v16  ;;  %v2155_v54 = vadd.f32 -0.5, %v5747_v28 }
 0x17f   : > { %v2156_v58 = vadd.f32 -0.5, %v5749_v43  ;;  %v2157_v48 = vadd.f32 -0.5, %v5751_v11  ;;  %v2158_v38 = vadd.f32 -0.5, %v5753_v56  ;;  %v2159_v15 = vadd.f32 -0.5, %v5755_v37 }
 0x180   : > { %v1444_v25 = vadd.f32 %v1443_v1, %v1413_v13  ;;  %v1561_v13 = vmul.f32 3.5, %v2140_v42  ;;  %v1562_v4 = vmul.f32 3.5, %v2141_v55  ;;  %2574 = vtanh.f32 %v1558_v19 }
 0x181   : > { %v2160_v40 = vadd.f32 -0.5, %v5757_v30  ;;  %v2161_v5 = vadd.f32 -0.5, %v5759_v21  ;;  %v1563_v1 = vmul.f32 3.5, %v2142_v6  ;;  %2576 = vtanh.f32 %v1559_v63 }
 0x182   : > { %1445 = vadd.xlane.f32.xlu0 %v1444_v25  ;;  %v2162_v53 = vadd.f32 -0.5, %v5761_v14  ;;  %v2163_v28 = vadd.f32 -0.5, %v5763_v60  ;;  %v1564_v43 = vmul.f32 3.5, %v2143_v7  ;;  %2578 = vtanh.f32 %v1560_v27 }
 0x183   : > { %v2164_v11 = vadd.f32 -0.5, %v5765_v20  ;;  %v2165_v56 = vadd.f32 -0.5, %v5767_v59  ;;  %v1565_v25 = vmul.f32 3.5, %v2144_v39  ;;  %2580 = vtanh.f32 %v1561_v13 }
 0x184   : > { %v2166_v37 = vadd.f32 -0.5, %v5769_v47  ;;  %v2167_v30 = vadd.f32 -0.5, %v5771_v23  ;;  %2582 = vtanh.f32 %v1562_v4  ;;  %v2168_v21 = vadd.f32 -0.5, %v5774_v10 }
 0x185   : > { %v1568_v14 = vmul.f32 3.5, %v2147_v50  ;;  %2584 = vtanh.f32 %v1563_v1  ;;  %v1569_v60 = vmul.f32 3.5, %v2148_v57  ;;  %v1572_v20 = vmul.f32 3.5, %v2151_v9 }
 0x186   : > { %2586 = vtanh.f32 %v1564_v43  ;;  %v1574_v59 = vmul.f32 3.5, %v2153_v17  ;;  %v1577_v47 = vmul.f32 3.5, %v2156_v58  ;;  %v1578_v23 = vmul.f32 3.5, %v2157_v48 }
 0x187   : > { %2588 = vtanh.f32 %v1565_v25  ;;  %v1579_v41 = vmul.f32 3.5, %v2158_v38  ;;  %v1580_v35 = vmul.f32 3.5, %v2159_v15  ;;  %v4752_v34 = vmul.f32 3.5, %v2160_v40 }
 0x188   : > { %v4754_v49 = vmul.f32 3.5, %v2161_v5  ;;  %v4756_v26 = vmul.f32 3.5, %v2162_v53  ;;  %v4758_v44 = vmul.f32 3.5, %v2163_v28  ;;  %v4760_v42 = vmul.f32 3.5, %v2164_v11 }
 0x189   : > { %v4762_v45 = vmul.f32 3.5, %v2165_v56  ;;  %v4764_v6 = vmul.f32 3.5, %v2166_v37  ;;  %v4766_v46 = vmul.f32 3.5, %v2167_v30  ;;  %v4770_v18 = vmul.f32 3.5, %v2168_v21 }
 0x18a   : > { %v2575_v10 = vpop.eup %2574 }
 0x18b   : > { %v2577_v16 = vpop.eup %2576  ;;  %v1622_v24 = vmul.f32 0.5, %v2575_v10 }
 0x18c   : > { %v2579_v55 = vpop.eup %2578  ;;  %v1623_v62 = vmul.f32 0.5, %v2577_v16 }
 0x18d   : > { %v2581_v7 = vpop.eup %2580  ;;  %v1624_v39 = vmul.f32 0.5, %v2579_v55  ;;  %v4768_v31 = vadd.f32 0.5, %v1622_v24 }
 0x18e   : > { %v4772_v50 = vadd.f32 0.5, %v1623_v62 }
 0x190   : > { %v1687_v17 = vmax.f32 %v4772_v50, 0.0001 }
 0x1b0   : > { %v1374_v3 = vpop.xlane.xlu0 %1373 }
 0x1b1   : > { %v1375_v12 = vrot.slane %v1374_v3, 4 }
 0x1b3   : > { %v1376_v22 = vadd.f32 %v1375_v12, %v1374_v3  ;;  %v1566_v3 = vmul.f32 3.5, %v2145_v32  ;;  %v1567_v12 = vmul.f32 3.5, %v2146_v52  ;;  %v2583_v32 = vpop.eup %2582  ;;  %v1625_v52 = vmul.f32 0.5, %v2581_v7 }
 0x1b4   : > { %v2585_v57 = vpop.eup %2584  ;;  %v1626_v19 = vmul.f32 0.5, %v2583_v32 }
 0x1b5   : > { %v1377_v8 = vrot.slane %v1376_v22, 2  ;;  %2590 = vtanh.f32 %v1566_v3  ;;  %v2587_v9 = vpop.eup %2586  ;;  %v1627_v63 = vmul.f32 0.5, %v2585_v57 }
 0x1b6   : > { %2592 = vtanh.f32 %v1567_v12  ;;  %v1628_v27 = vmul.f32 0.5, %v2587_v9 }
 0x1b7   : > { %v1378_v2 = vadd.f32 %v1377_v8, %v1376_v22  ;;  %v1570_v22 = vmul.f32 3.5, %v2149_v51  ;;  %v1571_v8 = vmul.f32 3.5, %v2150_v36  ;;  %2594 = vtanh.f32 %v1568_v14 }
 0x1b8   : > { %2596 = vtanh.f32 %v1569_v60  ;;  %v4774_v51 = vadd.f32 0.5, %v1624_v39  ;;  %v1686_v36 = vmax.f32 %v4768_v31, 0.0001  ;;  %v4783_v38 = vadd.f32 0.5, %v1627_v63 }
 0x1b9   : > { %v1379_v61 = vrot.slane %v1378_v2, 1  ;;  %2598 = vtanh.f32 %v1570_v22  ;;  %v4786_v5 = vadd.f32 0.5, %v1628_v27 }
 0x1ba   : > { %2600 = vtanh.f32 %v1571_v8  ;;  %v1688_v58 = vmax.f32 %v4774_v51, 0.0001  ;;  %v1691_v11 = vmax.f32 %v4783_v38, 0.0001 }
 0x1bb   : > { %v1380_v29 = vadd.f32 %v1379_v61, %v1378_v2  ;;  %v1573_v2 = vmul.f32 3.5, %v2152_v0  ;;  %v1575_v61 = vmul.f32 3.5, %v2154_v33  ;;  %2602 = vtanh.f32 %v1572_v20  ;;  %v2589_v33 = vpop.eup %2588 }
 0x1bc   : > { %v4777_v0 = vadd.f32 0.5, %v1625_v52  ;;  %v1629_v13 = vmul.f32 0.5, %v2589_v33  ;;  %v1692_v30 = vmax.f32 %v4786_v5, 0.0001 }
 0x1bd   : > { %2334 = vpush %v1380_v29  ;;  %v1576_v29 = vmul.f32 3.5, %v2155_v54  ;;  %2604 = vtanh.f32 %v1573_v2  ;;  %v4780_v54 = vadd.f32 0.5, %v1626_v19 }
 0x1be   : > { %2606 = vtanh.f32 %v1574_v59  ;;  %v1689_v15 = vmax.f32 %v4777_v0, 0.0001  ;;  %v4789_v43 = vadd.f32 0.5, %v1629_v13  ;;  %v4875_v0 = vmin.f32 %v1691_v11, 0.9999 }
 0x1bf   : > { %2608 = vtanh.f32 %v1575_v61  ;;  %v2591_v48 = vpop.eup %2590  ;;  %v1690_v1 = vmax.f32 %v4780_v54, 0.0001  ;;  %v4882_v54 = vmin.f32 %v1692_v30, 0.9999 }
 0x1c0   : > { %2610 = vtanh.f32 %v1576_v29  ;;  %v2593_v4 = vpop.eup %2592  ;;  %v1630_v40 = vmul.f32 0.5, %v2591_v48  ;;  %v1693_v14 = vmax.f32 %v4789_v43, 0.0001 }
 0x1c1   : > { %2612 = vtanh.f32 %v1577_v47  ;;  %v2595_v53 = vpop.eup %2594  ;;  %v1631_v28 = vmul.f32 0.5, %v2593_v4 }
 0x1c2   : > { %2614 = vtanh.f32 %v1578_v23  ;;  %v2597_v56 = vpop.eup %2596  ;;  %v1632_v25 = vmul.f32 0.5, %v2595_v53  ;;  %v4792_v37 = vadd.f32 0.5, %v1630_v40  ;;  %v4890_v11 = vmin.f32 %v1693_v14, 0.9999 }
 0x1c3   : > { %2616 = vtanh.f32 %v1579_v41  ;;  %v2599_v3 = vpop.eup %2598  ;;  %v1633_v21 = vmul.f32 0.5, %v2597_v56  ;;  %v4795_v12 = vadd.f32 0.5, %v1631_v28  ;;  %v1718_v28 = vmin.f32 %v1686_v36, 0.9999 }
 0x1c4   : > { %2618 = vtanh.f32 %v1580_v35  ;;  %v2601_v60 = vpop.eup %2600  ;;  %v1634_v22 = vmul.f32 0.5, %v2599_v3  ;;  %v4799_v8 = vadd.f32 0.5, %v1632_v25  ;;  %v1694_v20 = vmax.f32 %v4792_v37, 0.0001 }
 0x1c5   : > { %2620 = vtanh.f32 %v4752_v34  ;;  %v2603_v2 = vpop.eup %2602  ;;  %v1635_v59 = vmul.f32 0.5, %v2601_v60  ;;  %v4803_v61 = vadd.f32 0.5, %v1633_v21  ;;  %v1695_v29 = vmax.f32 %v4795_v12, 0.0001 }
 0x1c6   : > { %2622 = vtanh.f32 %v4754_v49  ;;  %v1636_v23 = vmul.f32 0.5, %v2603_v2  ;;  %v4807_v41 = vadd.f32 0.5, %v1634_v22  ;;  %v1696_v35 = vmax.f32 %v4799_v8, 0.0001 }
 0x1c7   : > { %v2605_v47 = vpop.eup %2604  ;;  %2624 = vtanh.f32 %v4756_v26  ;;  %v4811_v16 = vadd.f32 0.5, %v1635_v59  ;;  %v1697_v49 = vmax.f32 %v4803_v61, 0.0001  ;;  %v1719_v21 = vmin.f32 %v1687_v17, 0.9999 }
 0x1c8   : > { %v2607_v10 = vpop.eup %2606  ;;  %2626 = vtanh.f32 %v4758_v44  ;;  %v1637_v34 = vmul.f32 0.5, %v2605_v47  ;;  %v4815_v62 = vadd.f32 0.5, %v1636_v23  ;;  %v1698_v26 = vmax.f32 %v4807_v41, 0.0001 }
 0x1c9   : > { %v2609_v24 = vpop.eup %2608  ;;  %2628 = vtanh.f32 %v4760_v42  ;;  %v1638_v55 = vmul.f32 0.5, %v2607_v10  ;;  %v1699_v32 = vmax.f32 %v4811_v16, 0.0001  ;;  %v1720_v47 = vmin.f32 %v1688_v58, 0.9999 }
 0x1ca   : > { %v2611_v7 = vpop.eup %2610  ;;  %2630 = vtanh.f32 %v4762_v45  ;;  %v1639_v39 = vmul.f32 0.5, %v2609_v24  ;;  %v4820_v44 = vadd.f32 0.5, %v1637_v34  ;;  %v1700_v19 = vmax.f32 %v4815_v62, 0.0001 }
 0x1cb   : > { %v2613_v52 = vpop.eup %2612  ;;  %2632 = vtanh.f32 %v4764_v6  ;;  %v1640_v57 = vmul.f32 0.5, %v2611_v7  ;;  %v4824_v42 = vadd.f32 0.5, %v1638_v55  ;;  %v1721_v17 = vmin.f32 %v1689_v15, 0.9999 }
 0x1cc   : > { %v2615_v9 = vpop.eup %2614  ;;  %2634 = vtanh.f32 %v4766_v46  ;;  %v1641_v63 = vmul.f32 0.5, %v2613_v52  ;;  %v4828_v33 = vadd.f32 0.5, %v1639_v39  ;;  %v1701_v45 = vmax.f32 %v4820_v44, 0.0001 }
 0x1cd   : > { %v2617_v27 = vpop.eup %2616  ;;  %2636 = vtanh.f32 %v4770_v18  ;;  %v1642_v6 = vmul.f32 0.5, %v2615_v9  ;;  %v4836_v48 = vadd.f32 0.5, %v1640_v57  ;;  %v1702_v13 = vmax.f32 %v4824_v42, 0.0001  ;;  %v1761_v42 = vld [vmem:[%s4858_s13 + $0x58] sm:$0xff] }
 0x1ce   : > { %v2619_v4 = vpop.eup %2618  ;;  %v1643_v40 = vmul.f32 0.5, %v2617_v27  ;;  %v4839_v46 = vadd.f32 0.5, %v1641_v63  ;;  %v1703_v53 = vmax.f32 %v4828_v33, 0.0001  ;;  %v1722_v58 = vmin.f32 %v1690_v1, 0.9999 }
 0x1cf   : > { %v2621_v56 = vpop.eup %2620  ;;  %v1644_v25 = vmul.f32 0.5, %v2619_v4  ;;  %v4844_v3 = vadd.f32 0.5, %v1642_v6  ;;  %v1704_v18 = vmax.f32 %v4836_v48, 0.0001  ;;  %v1750_v1 = vld [vmem:[%s4858_s13] sm:$0xff] }
 0x1d0   : > { %v2623_v60 = vpop.eup %2622  ;;  %v1645_v22 = vmul.f32 0.5, %v2621_v56  ;;  %v4849_v2 = vadd.f32 0.5, %v1643_v40  ;;  %v1705_v59 = vmax.f32 %v4839_v46, 0.0001  ;;  %v1751_v40 = vld [vmem:[%s4858_s13 + $0x8] sm:$0xff]  ;;  %v4911_v12 = vmul.f32 %v1750_v1, %v1718_v28  ;;  %v1757_v28 = vld [vmem:[%s4858_s13 + $0x38] sm:$0xff] }
 0x1d1   : > { %v2625_v31 = vpop.eup %2624  ;;  %v1646_v36 = vmul.f32 0.5, %v2623_v60  ;;  %v4860_v23 = vadd.f32 0.5, %v1644_v25  ;;  %v1706_v50 = vmax.f32 %v4844_v3, 0.0001  ;;  %v4896_v30 = vmin.f32 %v1694_v20, 0.9999 }
 0x1d2   : > { %v2627_v10 = vpop.eup %2626  ;;  %v1647_v34 = vmul.f32 0.5, %v2625_v31  ;;  %v4865_v24 = vadd.f32 0.5, %v1645_v22  ;;  %v1707_v51 = vmax.f32 %v4849_v2, 0.0001  ;;  %v1752_v22 = vld [vmem:[%s4858_s13 + $0x10] sm:$0xff]  ;;  %v1754_v20 = vld [vmem:[%s4858_s13 + $0x20] sm:$0xff]  ;;  %v4916_v8 = vmul.f32 %v1751_v40, %v1719_v21 }
 0x1d3   : > { %v2629_v55 = vpop.eup %2628  ;;  %v1648_v7 = vmul.f32 0.5, %v2627_v10  ;;  %v4870_v39 = vadd.f32 0.5, %v1646_v36  ;;  %v1708_v52 = vmax.f32 %v4860_v23, 0.0001  ;;  %v4902_v14 = vmin.f32 %v1695_v29, 0.9999 }
 0x1d4   : > { %v2631_v15 = vpop.eup %2630  ;;  %v1649_v57 = vmul.f32 0.5, %v2629_v55  ;;  %v4877_v9 = vadd.f32 0.5, %v1647_v34  ;;  %v1709_v63 = vmax.f32 %v4865_v24, 0.0001  ;;  %v1753_v10 = vld [vmem:[%s4858_s13 + $0x18] sm:$0xff]  ;;  %v4923_v1 = vmul.f32 %v1752_v22, %v1720_v47  ;;  %v1758_v21 = vld [vmem:[%s4858_s13 + $0x40] sm:$0xff] }
 0x1d5   : > { %v2633_v27 = vpop.eup %2632  ;;  %v1650_v6 = vmul.f32 0.5, %v2631_v15  ;;  %v4885_v4 = vadd.f32 0.5, %v1648_v7  ;;  %v1710_v38 = vmax.f32 %v4870_v39, 0.0001  ;;  %v1728_v37 = vmin.f32 %v1696_v35, 0.9999 }
 0x1d6   : > { %v2635_v56 = vpop.eup %2634  ;;  %v1651_v25 = vmul.f32 0.5, %v2633_v27  ;;  %v1681_v60 = vadd.f32 0.5, %v1649_v57  ;;  %v1711_v5 = vmax.f32 %v4877_v9, 0.0001  ;;  %v1729_v15 = vmin.f32 %v1697_v49, 0.9999 }
 0x1d7   : > { %v2637_v31 = vpop.eup %2636  ;;  %v1652_v36 = vmul.f32 0.5, %v2635_v56  ;;  %v1682_v23 = vadd.f32 0.5, %v1650_v6  ;;  %v1712_v43 = vmax.f32 %v4885_v4, 0.0001  ;;  %v1755_v57 = vld [vmem:[%s4858_s13 + $0x28] sm:$0xff]  ;;  %v1756_v6 = vld [vmem:[%s4858_s13 + $0x30] sm:$0xff]  ;;  %v4930_v16 = vmul.f32 %v1753_v10, %v1721_v17 }
 0x1d8   : > { %v1653_v34 = vmul.f32 0.5, %v2637_v31  ;;  %v1683_v24 = vadd.f32 0.5, %v1651_v25  ;;  %v1713_v55 = vmax.f32 %v1681_v60, 0.0001  ;;  %v1730_v27 = vmin.f32 %v1698_v26, 0.9999 }
 0x1d9   : > { %v1684_v7 = vadd.f32 0.5, %v1652_v36  ;;  %v1714_v39 = vmax.f32 %v1682_v23, 0.0001  ;;  %v1731_v61 = vmin.f32 %v1699_v32, 0.9999  ;;  %5788 = vst [vmem:[#allocation105_spill] sm:$0xff] %v4930_v16  ;;  %v4942_v47 = vmul.f32 %v1754_v20, %v1722_v58 }
 0x1da   : > { %v1685_v29 = vadd.f32 0.5, %v1653_v34  ;;  %v1715_v9 = vmax.f32 %v1683_v24, 0.0001  ;;  %v1732_v49 = vmin.f32 %v1700_v19, 0.9999  ;;  %v1759_v19 = vld [vmem:[%s4858_s13 + $0x48] sm:$0xff]  ;;  %v4953_v40 = vmul.f32 %v1755_v57, %v4875_v0 }
 0x1db   : > { %v1716_v35 = vmax.f32 %v1684_v7, 0.0001  ;;  %v1733_v41 = vmin.f32 %v1701_v45, 0.9999  ;;  %v1734_v26 = vmin.f32 %v1702_v13, 0.9999  ;;  %v1790_v10 = vmul.f32 %v1758_v21, %v4896_v30 }
 0x1dc   : > { %v1717_v4 = vmax.f32 %v1685_v29, 0.0001  ;;  %v1735_v62 = vmin.f32 %v1703_v53, 0.9999  ;;  %v1736_v32 = vmin.f32 %v1704_v18, 0.9999  ;;  %v1791_v24 = vmul.f32 %v1759_v19, %v4902_v14 }
 0x1dd   : > { %v1737_v44 = vmin.f32 %v1705_v59, 0.9999  ;;  %v1760_v45 = vld [vmem:[%s4858_s13 + $0x50] sm:$0xff]  ;;  %v1762_v13 = vld [vmem:[%s4858_s13 + $0x60] sm:$0xff]  ;;  %5789 = vst [vmem:[#allocation64_spill] sm:$0xff] %v4942_v47  ;;  %v1763_v18 = vld [vmem:[%s4858_s13 + $0x68] sm:$0xff]  ;;  %v1793_v20 = vmul.f32 %v1761_v42, %v1729_v15 }
 0x1de   : > { %v1738_v33 = vmin.f32 %v1706_v50, 0.9999  ;;  %v1739_v48 = vmin.f32 %v1707_v51, 0.9999  ;;  %v1740_v53 = vmin.f32 %v1708_v52, 0.9999  ;;  %v1788_v51 = vmul.f32 %v1756_v6, %v4882_v54 }
 0x1df   : > { %v1764_v46 = vld [vmem:[%s4858_s13 + $0x70] sm:$0xff]  ;;  %v1765_v59 = vld [vmem:[%s4858_s13 + $0x78] sm:$0xff]  ;;  %v1766_v17 = vld [vmem:[%s4858_s13 + $0x80] sm:$0xff]  ;;  %5790 = vst [vmem:[#allocation106_spill] sm:$0xff] %v4953_v40  ;;  %v1741_v56 = vmin.f32 %v1709_v63, 0.9999  ;;  %v1789_v63 = vmul.f32 %v1757_v28, %v4890_v11  ;;  %v1794_v7 = vmul.f32 %v1762_v13, %v1730_v27  ;;  %v1795_v11 = vmul.f32 %v1763_v18, %v1731_v61 }
 0x1e0   : > { %v1742_v25 = vmin.f32 %v1710_v38, 0.9999  ;;  %v1743_v58 = vmin.f32 %v1711_v5, 0.9999  ;;  %v1767_v60 = vld [vmem:[%s4858_s13 + $0x88] sm:$0xff]  ;;  %v1768_v3 = vld [vmem:[%s4858_s13 + $0x90] sm:$0xff]  ;;  %v1797_v6 = vmul.f32 %v1765_v59, %v1733_v41  ;;  %v2242_v13 = vpack.c.bf16 %v4916_v8, %v4911_v12 }
 0x1e1   : > { %v1769_v2 = vld [vmem:[%s4858_s13 + $0x98] sm:$0xff]  ;;  %v1770_v50 = vld [vmem:[%s4858_s13 + $0xa0] sm:$0xff]  ;;  %v1744_v52 = vmin.f32 %v1712_v43, 0.9999  ;;  %v1745_v22 = vmin.f32 %v1713_v55, 0.9999  ;;  %v1792_v55 = vmul.f32 %v1760_v45, %v1728_v37  ;;  %v1799_v21 = vmul.f32 %v1767_v60, %v1735_v62  ;;  %v4981_v62 = vpop.xlane.xlu1 %1517 }
 0x1e2   : > { %v1746_v31 = vmin.f32 %v1714_v39, 0.9999  ;;  %v1771_v36 = vld [vmem:[%s4858_s13 + $0xa8] sm:$0xff]  ;;  %v1772_v0 = vld [vmem:[%s4858_s13 + $0xb0] sm:$0xff]  ;;  %v1747_v38 = vmin.f32 %v1715_v9, 0.9999  ;;  %v1796_v9 = vmul.f32 %v1764_v46, %v1732_v49  ;;  %v1800_v40 = vmul.f32 %v1768_v3, %v1736_v32  ;;  %2243 = vst [vmem:[%s4978_s20] sm:$0xff] %v2242_v13  }
 0x1e3   : > { %v1748_v5 = vmin.f32 %v1716_v35, 0.9999  ;;  %v1749_v23 = vmin.f32 %v1717_v4, 0.9999  ;;  %v1773_v34 = vld [vmem:[%s4858_s13 + $0xb8] sm:$0xff]  ;;  %v1774_v54 = vld [vmem:[%s4858_s13 + $0xc0] sm:$0xff]  ;;  %v1798_v35 = vmul.f32 %v1766_v17, %v1734_v26  ;;  %v1801_v47 = vmul.f32 %v1769_v2, %v1737_v44 }
 0x1e4   : > { %v1775_v43 = vld [vmem:[%s4858_s13 + $0xc8] sm:$0xff]  ;;  %v1776_v39 = vld [vmem:[%s4858_s13 + $0xd0] sm:$0xff]  ;;  %v1777_v57 = vld [vmem:[%s4858_s13 + $0xd8] sm:$0xff]  ;;  %v1802_v16 = vmul.f32 %v1770_v50, %v1738_v33  ;;  %v1803_v14 = vmul.f32 %v1771_v36, %v1739_v48  ;;  %v1804_v37 = vmul.f32 %v1772_v0, %v1740_v53  ;;  %v1805_v15 = vmul.f32 %v1773_v34, %v1741_v56 }
 0x1e5   : > { %v1778_v29 = vld [vmem:[%s4858_s13 + $0xe0] sm:$0xff]  ;;  %v1779_v28 = vld [vmem:[%s4858_s13 + $0xe8] sm:$0xff]  ;;  %v1780_v4 = vld [vmem:[%s4858_s13 + $0xf0] sm:$0xff]  ;;  %v1806_v27 = vmul.f32 %v1774_v54, %v1742_v25  ;;  %v1807_v19 = vmul.f32 %v1775_v43, %v1743_v58  ;;  %v1808_v45 = vmul.f32 %v1776_v39, %v1744_v52  ;;  %v1809_v42 = vmul.f32 %v1777_v57, %v1745_v22 }
 0x1e6   : > { %v1781_v30 = vld [vmem:[%s4858_s13 + $0xf8] sm:$0xff]  ;;  %v1810_v61 = vmul.f32 %v1778_v29, %v1746_v31  ;;  %v1811_v49 = vmul.f32 %v1779_v28, %v1747_v38  ;;  %v1812_v41 = vmul.f32 %v1780_v4, %v1748_v5  ;;  %v5791_v32 = vld [vmem:[#allocation105_spill] sm:$0xff]  ;;  %v5793_v48 = vld [vmem:[#allocation106_spill] sm:$0xff]  ;;  %v2257_v18 = vpack.c.bf16 %v1789_v63, %v1788_v51 }
 0x1e7   : > { %v1813_v26 = vmul.f32 %v1781_v30, %v1749_v23  ;;  %v2247_v44 = vpack.c.bf16 %v5791_v32, %v4923_v1  ;;  %v5792_v33 = vld [vmem:[#allocation64_spill] sm:$0xff]  ;;  %v2262_v12 = vpack.c.bf16 %v1791_v24, %v1790_v10  ;;  %v2267_v8 = vpack.c.bf16 %v1793_v20, %v1792_v55 }
 0x1e8   : > { %v2252_v53 = vpack.c.bf16 %v5793_v48, %v5792_v33  ;;  %v2272_v46 = vpack.c.bf16 %v1795_v11, %v1794_v7  ;;  %v2277_v59 = vpack.c.bf16 %v1797_v6, %v1796_v9  ;;  %v2282_v17 = vpack.c.bf16 %v1799_v21, %v1798_v35  ;;  %2321 = vst [vmem:[%s4978_s20 + $0x18] sm:$0xff] %v2257_v18  }
 0x1e9   : > { %2319 = vst [vmem:[%s4978_s20 + $0x8] sm:$0xff] %v2247_v44   ;;  %2322 = vst [vmem:[%s4978_s20 + $0x20] sm:$0xff] %v2262_v12   ;;  %v2287_v1 = vpack.c.bf16 %v1801_v47, %v1800_v40  ;;  %v2292_v56 = vpack.c.bf16 %v1803_v14, %v1802_v16  ;;  %v2297_v25 = vpack.c.bf16 %v1805_v15, %v1804_v37  ;;  %v1519_v60 = vrot.slane %v4981_v62, 4 }
 0x1ea   : > { %2320 = vst [vmem:[%s4978_s20 + $0x10] sm:$0xff] %v2252_v53   ;;  %v2302_v58 = vpack.c.bf16 %v1807_v19, %v1806_v27  ;;  %2323 = vst [vmem:[%s4978_s20 + $0x28] sm:$0xff] %v2267_v8   ;;  %v2307_v16 = vpack.c.bf16 %v1809_v42, %v1808_v45  ;;  %v2312_v47 = vpack.c.bf16 %v1811_v49, %v1810_v61 }
 0x1eb   : > { %2324 = vst [vmem:[%s4978_s20 + $0x30] sm:$0xff] %v2272_v46   ;;  %2325 = vst [vmem:[%s4978_s20 + $0x38] sm:$0xff] %v2277_v59   ;;  %v2317_v40 = vpack.c.bf16 %v1813_v26, %v1812_v41 }
 0x1ec   : > { %2326 = vst [vmem:[%s4978_s20 + $0x40] sm:$0xff] %v2282_v17   ;;  %2327 = vst [vmem:[%s4978_s20 + $0x48] sm:$0xff] %v2287_v1  }
 0x1ed   : > { %2328 = vst [vmem:[%s4978_s20 + $0x50] sm:$0xff] %v2292_v56   ;;  %2329 = vst [vmem:[%s4978_s20 + $0x58] sm:$0xff] %v2297_v25  }
 0x1ee   : > { %2330 = vst [vmem:[%s4978_s20 + $0x60] sm:$0xff] %v2302_v58   ;;  %2331 = vst [vmem:[%s4978_s20 + $0x68] sm:$0xff] %v2307_v16  }
 0x1ef   : > { %2332 = vst [vmem:[%s4978_s20 + $0x70] sm:$0xff] %v2312_v47   ;;  %2333 = vst [vmem:[%s4978_s20 + $0x78] sm:$0xff] %v2317_v40  }
 0x1f0   : > { %2715 = shalt.err (!%p2712_p3)
}
 0x1f1   : > { %s2716_s8 = scalar_lea.hbm %s4995_s28, 2048  ;;  %s2720_s11 = scalar_lea.hbm %s5063_s3, 4096 }
 0x1f2   : > { %p2717_p4 = scmp.ne.s32.totalorder %s4995_s28, %s2716_s8  ;;  %p2721_p9 = scmp.lt.u32.totalorder %s4995_s28, %s5063_s3 }
 0x1f3   : > { %p2722_p10 = scmp.lt.u32.totalorder %s2720_s11, %s2716_s8  ;;  %p2724_p12 = scmp.lt.u32.totalorder %s2716_s8, %s4995_s28 }
 0x1f4   : > { %p2718_p7 = pnand %p2717_p4, %p2833_p5 }
 0x1f5   : > { %p2723_p11 = por %p2722_p10, %p2721_p9 }
 0x1f6   : > { %p2719_p8 = pneg %p2718_p7 }
 0x1f7   : > { %p2725_p13 = por %p2724_p12, %p2723_p11 }
 0x1f9   : > { %p2726_p0 = pnand %p2725_p13, %p2719_p8 }
 0x1fb   : > { %2729 = shalt.err (!%p2726_p0)
}
 0x1fc   : > { %s2768_s14 = smov 64   ;;  %s2769_s20 = smov 4   ;;  %v1520_v3 = vadd.f32 %v1519_v60, %v4981_v62  ;;  %v1974_v23 = vlaneseq }
 0x1fd   : > { %2340 = dma.vmem_to_hbm [thread:$0]  (%p2833_p5), %s4997_s22, 2048, %s4995_s28, %s5013_s29, %s2768_s14, %s2768_s14, %s2769_s20  }
 0x1fe   : > { %v1521_v50 = vrot.slane %v1520_v3, 2  ;;  %v1975_v10 = vshrl.u32 %v1974_v23, 7  ;;  %v1977_v34 = vand.u32 127, %v1974_v23  ;;  %p250_p5 = scmp.lt.s32.totalorder %s2816_s19, 1  ;;  %s2335_s25 = spop %2334 }
 0x1ff   : > { %v1981_v54 = vstv %s2335_s25 }
 0x200   : > { %v1522_v22 = vadd.f32 %v1521_v50, %v1520_v3  ;;  %vm1978_vm14 = vcmp.eq.s32.totalorder %v1975_v10, 0  ;;  %vm1979_vm13 = vcmp.eq.s32.totalorder %v1977_v34, 0  ;;  %vm1983_vm15 = vcmp.eq.s32.totalorder %v1977_v34, 1  ;;  %s5801_s19 = smov (!%p250_p5, %s2816_s19), 1 }
 0x201   : > { %vm1980_vm8 = vmand %vm1978_vm14, %vm1979_vm13  ;;  %vm1988_vm9 = vcmp.eq.s32.totalorder %v1977_v34, 2  ;;  %s2136_s23 = sshll.u32 %s5801_s19, 3 }
 0x202   : > { %v1523_v0 = vrot.slane %v1522_v22, 1  ;;  %vm1984_vm7 = vmand %vm1978_vm14, %vm1983_vm15  ;;  %v1982_v24 = vsel %vm1980_vm8, %v1981_v54, 0.0  ;;  %s253_s30 = scalar_lea.vmem %s5064_s4, %s2136_s23 }
 0x203   : > { %vm1989_vm3 = vmand %vm1978_vm14, %vm1988_vm9 }
 0x204   : > { %v1524_v5 = vadd.f32 %v1523_v0, %v1522_v22 }
 0x20f   : > { %v1446_v2 = vpop.xlane.xlu0 %1445 }
 0x210   : > { %v1447_v51 = vrot.slane %v1446_v2, 4 }
 0x212   : > { %v1448_v52 = vadd.f32 %v1447_v51, %v1446_v2 }
 0x214   : > { %v1449_v31 = vrot.slane %v1448_v52, 2 }
 0x216   : > { %v1450_v36 = vadd.f32 %v1449_v31, %v1448_v52 }
 0x218   : > { %v1451_v63 = vrot.slane %v1450_v36, 1 }
 0x21a   : > { %v1452_v38 = vadd.f32 %v1451_v63, %v1450_v36 }
 0x21c   : > { %2336 = vpush %v1452_v38 }
 0x21d   : > { %2338 = vpush %v1524_v5 }
 0x24d   : > { %s2337_s22 = spop %2336 }
 0x24e   : > { %s2339_s27 = spop %2338  ;;  %v1985_v43 = vstv %s2337_s22 }
 0x24f   : > { %v1986_v55 = vsel %vm1984_vm7, %v1985_v43, 0.0  ;;  %v1990_v20 = vstv %s2339_s27 }
 0x250   : > { %v1987_v7 = vadd.f32 %v1986_v55, %v1982_v24  ;;  %v1991_v39 = vsel %vm1989_vm3, %v1990_v20, 0.0 }
 0x252   : > { %v1992_v57 = vadd.f32 %v1991_v39, %v1987_v7 }
 0x254   : > { %1993 = vst [vmem:[%s253_s30] sm:$0xff] %v1992_v57 }
 0x255 PF: > { %p2346_p1 = scmp.ge.s32.totalorder %s2764_s18, 2  ;;  %s2030_s19 = sand.u32 1, %s2752_s15  }
 0x256   : > { %s2031_s5 = scalar_lea.sflag [#allocation3], %s2030_s19 }
 0x257   : > { %p2343_p2 = pnand %p2346_p1, %p2837_p6 }
 0x259   : > { %2747 = dma.done.wait (!%p2343_p2), %s2031_s5, 2048  }
 0x25a   : > { %2749 = vsyncadd (!%p2343_p2), %s2031_s5, 4294965248  ;;  %p15_p3 = scmp.ge.s32.totalorder %s2820_s21, 4   ;;  %s5794_s15 = smov %s2756_s16 }
 0x25b   : > { %s5795_s16 = smov %s2760_s17  ;;  %s5796_s17 = smov %s2831_s24 }
 0x25c   : > { %s5797_s18 = smov %s2820_s21  ;;  %17 = sbr.rel (!%p15_p3) target bundleno = 3 (0x3), region = 85 }
 0x263   :  { %2043 = vsyncpa [#allocation3], 1 }
 0x264   :  { %2045 = vsyncpa [#allocation3 + $0x1], 1 }

</bundles_post_ra>
